<compile_context>
chip_gen: v6e
topology: v6e:2x2x1
jax: 0.10.0
libtpu: 0.0.40
codegen_flags: <defaults>
</compile_context>

<pallas_src>
import functools

import jax
import jax.numpy as jnp
from jax.experimental import pallas as pl
from jax.experimental.pallas import tpu as pltpu


# ------------------------------- kernel --------------------------------------
def _window_attention_kernel(
    x_ref, relb_ref, *rest, num_heads, matmul_dtype, has_mask, has_qkv_bias,
):
    # x_ref:     (TW, N, C)   tile of TW windows
    # relb_ref:  (H, N, N)    relative position bias (bf16, VMEM-resident)
    # mask_ref:  (TW, N, N)   optional shift mask (bf16)
    # wqkv_ref:  (C, 3C)      QKV weight, transposed, bf16, scale folded into Q cols
    # bqkv_ref:  (1, 3C)      optional QKV bias (f32, scale folded into Q part)
    # wproj_ref: (C, C)       proj weight, transposed, bf16
    # bproj_ref: (1, C)       proj bias (f32)
    # o_ref:     (TW, N, C)
    rest = list(rest)
    mask_ref = rest.pop(0) if has_mask else None
    wqkv_ref = rest.pop(0)
    bqkv_ref = rest.pop(0) if has_qkv_bias else None
    wproj_ref = rest.pop(0)
    bproj_ref = rest.pop(0)
    o_ref = rest.pop(0)

    TW, N, C = x_ref.shape
    hd = C // num_heads

    # ---- fused QKV projection: one (TW*N, C) @ (C, 3C) MXU matmul ----------
    xf = x_ref[...].reshape(TW * N, C).astype(matmul_dtype)
    qkv = jnp.dot(xf, wqkv_ref[...], preferred_element_type=jnp.float32)
    if has_qkv_bias:
        qkv = qkv + bqkv_ref[...]
    qkv = qkv.astype(matmul_dtype)                              # (TW*N, 3C) bf16

    relb = relb_ref[...].astype(jnp.float32)                    # (H, N, N) f32
    mask_f = mask_ref[...].astype(jnp.float32) if has_mask else None  # (TW,N,N)

    # ---- per-head attention (static unroll; windows are the batch dim) ------
    head_outs = []
    for h in range(num_heads):
        q_h = qkv[:, h * hd:(h + 1) * hd].reshape(TW, N, hd)        # scale pre-folded
        k_h = qkv[:, C + h * hd:C + (h + 1) * hd].reshape(TW, N, hd)
        v_h = qkv[:, 2 * C + h * hd:2 * C + (h + 1) * hd].reshape(TW, N, hd)

        attn = jnp.einsum("wqd,wkd->wqk", q_h, k_h,
                          preferred_element_type=jnp.float32)   # (TW, N, N) f32
        attn = attn + relb[h][None]                              # rel-pos bias
        if has_mask:
            attn = attn + mask_f                                 # shift mask

        # numerically stable softmax, f32 (v5e-safe VPU/EUP math)
        attn = attn - jnp.max(attn, axis=-1, keepdims=True)
        p = jnp.exp(attn)
        denom = jnp.sum(p, axis=-1, keepdims=True)
        p = p * pl.reciprocal(denom, approx=True)

        # TODO(synk): attn_drop not implemented (rate defaults to 0.0 -> identity).
        head_outs.append(
            jnp.einsum("wqk,wkd->wqd", p.astype(matmul_dtype), v_h,
                       preferred_element_type=jnp.float32).astype(matmul_dtype)
        )                                                        # (TW, N, hd) bf16

    y = jnp.concatenate(head_outs, axis=-1).reshape(TW * N, C)   # bf16

    # ---- output projection (lane-dense C-wide store) ------------------------
    y = jnp.dot(y, wproj_ref[...], preferred_element_type=jnp.float32)
    y = y + bproj_ref[...]
    o_ref[...] = y.reshape(TW, N, C).astype(o_ref.dtype)


# --------------------------- planning helpers --------------------------------
def _round_up(a, b):
    return -(-a // b) * b


def _vmem_capacity_bytes():
    """Physical VMEM per core (generation-aware), conservative fallback = v7x."""
    try:
        info = pltpu.get_tpu_info()
        for attr in ("vmem_capacity_bytes", "vmem_bytes", "vmem_size_bytes"):
            v = getattr(info, attr, None)
            if v:
                return int(v)
    except Exception:
        pass
    return 64 * 1024 * 1024


def _pick_windows_per_tile(Wn, G, N, C, H, x_dtype, target_rows, vmem_budget):
    """Largest divisor TW of Wn whose lane-padded per-step working set fits the
    VMEM budget, whose MXU tile height TW*N stays near the row target, and
    which leaves at least 2 grid steps (so both v7x TensorCores get work)."""
    hd = C // H
    x_bytes = jnp.dtype(x_dtype).itemsize
    N_l = _round_up(N, 128)       # scores / bias lane-pad
    C_l = _round_up(C, 128)
    hd_l = _round_up(hd, 128)
    N_s = _round_up(N, 8)

    min_steps = 2 if Wn * G >= 2 else 1
    row_limit = max(target_rows, N)
    best = 1
    for tw in range(1, Wn + 1):
        if Wn % tw:
            continue
        rows = tw * N
        if rows > row_limit:
            break
        rows_s = _round_up(rows, 8)
        approx = (
            2 * 2 * tw * N_s * C_l * x_bytes          # x & o tiles, double-buffered
            + rows_s * 3 * C_l * (4 + 2)              # qkv f32 matmul result + bf16 copy
            + 3 * tw * N_s * hd_l * 2                 # per-head q/k/v slices (bf16, padded)
            + 2 * tw * N_s * N_l * 4                  # scores + probs (f32, lane-padded)
            + H * tw * N_s * hd_l * 2                 # per-head outputs (bf16, padded)
            + rows_s * C_l * (4 + 2)                  # concat y (bf16) + f32 proj result
            + 2 * H * N_s * N_l * 2                   # rel-pos bias (bf16, dbl-buffered)
            + 2 * tw * N_s * N_l * 2                  # shift mask (bf16, dbl-buffered)
            + 2 * (C * 3 * C_l + C * C_l) * 2         # bf16 weights, dbl-buffered
        )
        if approx > vmem_budget:
            break
        if (Wn // tw) * G >= min_steps:
            best = tw
    return best


# -------------------------------- wrapper -------------------------------------
def window_attention_3d(
    x, rel_bias, w_qkv, b_qkv, w_proj, b_proj, *,
    num_heads, scale=None, mask=None,
    matmul_dtype=jnp.bfloat16, bias_dtype=jnp.bfloat16,
    target_rows=1024, vmem_budget_bytes=None,
):
    """x: (B_, N, C) = (num_windows*B, window_volume, dim).  Returns (B_, N, C)."""
    B_, N, C = x.shape
    assert C % num_heads == 0
    hd = C // num_heads
    if scale is None:
        scale = hd ** -0.5

    # torch nn.Linear stores weight as (out, in); kernel computes x @ W^T.
    # Fold the qk scale into the Q columns of the weight (and Q part of the bias).
    col_scale = jnp.concatenate(
        [jnp.full((C,), float(scale), jnp.float32), jnp.ones((2 * C,), jnp.float32)])
    wqkv_t = (jnp.asarray(w_qkv, jnp.float32).T * col_scale[None, :]).astype(matmul_dtype)
    wproj_t = jnp.asarray(w_proj, jnp.float32).T.astype(matmul_dtype)
    has_qkv_bias = b_qkv is not None
    bqkv = ((jnp.asarray(b_qkv, jnp.float32) * col_scale).reshape(1, 3 * C)
            if has_qkv_bias else None)
    bproj = jnp.asarray(b_proj, jnp.float32).reshape(1, C)

    # Bias / mask stay separate (no fused (nW,H,N,N) HBM array) and are bf16 in HBM.
    relb = jnp.asarray(rel_bias).astype(bias_dtype)               # (H, N, N)
    has_mask = mask is not None
    if has_mask:
        nW = mask.shape[0]
        assert B_ % nW == 0, "B_ must be a multiple of the number of windows"
        G, Wn = B_ // nW, nW
        mask_in = jnp.asarray(mask).astype(bias_dtype)            # (Wn, N, N)
    else:
        G, Wn = 1, B_
        mask_in = None

    phys_vmem = _vmem_capacity_bytes()
    if vmem_budget_bytes is None:
        vmem_budget_bytes = min(phys_vmem // 2, 64 * 1024 * 1024)
    TW = _pick_windows_per_tile(Wn, G, N, C, num_heads, x.dtype,
                                target_rows, vmem_budget_bytes)

    x4 = x.reshape(G, Wn, N, C)

    # Grid = (window-blocks, batch-groups): mask / bias block index is constant
    # across the inner G steps, so Pallas skips their re-fetch.
    in_specs = [
        pl.BlockSpec((None, TW, N, C), lambda w, g: (g, w, 0, 0)),
        pl.BlockSpec((num_heads, N, N), lambda w, g: (0, 0, 0)),
    ]
    operands = [x4, relb]
    if has_mask:
        in_specs.append(pl.BlockSpec((TW, N, N), lambda w, g: (w, 0, 0)))
        operands.append(mask_in)
    in_specs.append(pl.BlockSpec((C, 3 * C), lambda w, g: (0, 0)))
    operands.append(wqkv_t)
    if has_qkv_bias:
        in_specs.append(pl.BlockSpec((1, 3 * C), lambda w, g: (0, 0)))
        operands.append(bqkv)
    in_specs.append(pl.BlockSpec((C, C), lambda w, g: (0, 0)))
    operands.append(wproj_t)
    in_specs.append(pl.BlockSpec((1, C), lambda w, g: (0, 0)))
    operands.append(bproj)

    kernel = functools.partial(
        _window_attention_kernel,
        num_heads=num_heads, matmul_dtype=matmul_dtype,
        has_mask=has_mask, has_qkv_bias=has_qkv_bias)

    out = pl.pallas_call(
        kernel,
        out_shape=jax.ShapeDtypeStruct((G, Wn, N, C), x.dtype),
        grid_spec=pltpu.PrefetchScalarGridSpec(
            num_scalar_prefetch=0,
            grid=(Wn // TW, G),
            in_specs=in_specs,
            out_specs=pl.BlockSpec((None, TW, N, C), lambda w, g: (g, w, 0, 0)),
        ),
        compiler_params=pltpu.CompilerParams(
            dimension_semantics=("parallel", "parallel"),
            vmem_limit_bytes=int(phys_vmem * 3 // 4),
        ),
    )(*operands)

    # TODO(synk): proj_drop not implemented (rate defaults to 0.0 -> identity).
    return out.reshape(B_, N, C)


# -------------------------- parameter precompute ------------------------------
def _make_relative_position_index(window_size):
    """Matches the torch buffer precompute in WindowAttention3D.__init__."""
    Wd, Wh, Ww = window_size
    coords = jnp.stack(
        jnp.meshgrid(jnp.arange(Wd), jnp.arange(Wh), jnp.arange(Ww),
                     indexing="ij"))                          # (3, Wd, Wh, Ww)
    coords_flatten = coords.reshape(3, -1)                    # (3, N)
    rel = coords_flatten[:, :, None] - coords_flatten[:, None, :]  # (3, N, N)
    rel = jnp.transpose(rel, (1, 2, 0))                       # (N, N, 3)
    rel = rel + jnp.array([Wd - 1, Wh - 1, Ww - 1])
    rel = rel * jnp.array([(2 * Wh - 1) * (2 * Ww - 1), 2 * Ww - 1, 1])
    return rel.sum(-1)                                        # (N, N) int32


# ------------------------------ plain-JAX reference ----------------------------
def _reference(x, rel_bias, w_qkv, b_qkv, w_proj, b_proj, *,
               num_heads, scale, mask=None):
    B_, N, C = x.shape
    hd = C // num_heads
    qkv = jnp.einsum("bnc,oc->bno", x, w_qkv)
    if b_qkv is not None:
        qkv = qkv + b_qkv
    qkv = qkv.reshape(B_, N, 3, num_heads, hd).transpose(2, 0, 3, 1, 4)
    q, k, v = qkv[0] * scale, qkv[1], qkv[2]
    attn = jnp.einsum("bhqd,bhkd->bhqk", q, k) + rel_bias[None]
    if mask is not None:
        nW = mask.shape[0]
        attn = attn.reshape(B_ // nW, nW, num_heads, N, N) + mask[None, :, None]
        attn = attn.reshape(B_, num_heads, N, N)
    attn = jax.nn.softmax(attn, axis=-1)
    out = jnp.einsum("bhqk,bhkd->bhqd", attn, v)
    out = out.transpose(0, 2, 1, 3).reshape(B_, N, C)
    return jnp.einsum("bnc,oc->bno", out, w_proj) + b_proj


if __name__ == "__main__":
    key = jax.random.PRNGKey(0)
    k_x, k_qkv, k_proj, k_bp, k_tab, k_msk = jax.random.split(key, 6)

    dim, num_heads = 128, 4
    window_size = (2, 4, 4)
    N = window_size[0] * window_size[1] * window_size[2]      # 32 tokens/window
    B, nW = 2, 4
    B_ = B * nW                                               # 8 windows total
    head_dim = dim // num_heads
    scale = head_dim ** -0.5

    x = jax.random.normal(k_x, (B_, N, dim), dtype=jnp.float32)

    # nn.Linear(dim, 3*dim, bias=False) and nn.Linear(dim, dim) parameters
    w_qkv = jax.random.normal(k_qkv, (3 * dim, dim), jnp.float32) * dim ** -0.5
    b_qkv = None                                              # qkv_bias=False
    w_proj = jax.random.normal(k_proj, (dim, dim), jnp.float32) * dim ** -0.5
    b_proj = 0.02 * jax.random.normal(k_bp, (dim,), jnp.float32)

    # relative position bias table + gathered (H, N, N) bias
    table_len = ((2 * window_size[0] - 1) * (2 * window_size[1] - 1)
                 * (2 * window_size[2] - 1))
    table = 0.02 * jax.random.normal(k_tab, (table_len, num_heads), jnp.float32)
    rel_idx = _make_relative_position_index(window_size)      # (N, N)
    rel_bias = table[rel_idx.reshape(-1)].reshape(N, N, num_heads)
    rel_bias = rel_bias.transpose(2, 0, 1)                    # (H, N, N)

    # shifted-window style additive mask: 0 where allowed, -100 where blocked
    mask = jnp.where(jax.random.bernoulli(k_msk, 0.25, (nW, N, N)),
                     -100.0, 0.0).astype(jnp.float32)

    # ---- no-mask path --------------------------------------------------------
    out0 = window_attention_3d(x, rel_bias, w_qkv, b_qkv, w_proj, b_proj,
                               num_heads=num_heads, scale=scale, mask=None)
    out0 = jax.block_until_ready(out0)
    ref0 = _reference(x, rel_bias, w_qkv, b_qkv, w_proj, b_proj,
                      num_heads=num_heads, scale=scale, mask=None)
    assert out0.shape == (B_, N, dim), out0.shape
    err0 = float(jnp.max(jnp.abs(out0 - ref0)))
    assert jnp.allclose(out0, ref0, atol=2e-2, rtol=2e-2), err0

    # ---- masked (shifted-window) path; small row target exercises tiling ----
    out1 = window_attention_3d(x, rel_bias, w_qkv, b_qkv, w_proj, b_proj,
                               num_heads=num_heads, scale=scale, mask=mask,
                               target_rows=64)
    out1 = jax.block_until_ready(out1)
    ref1 = _reference(x, rel_bias, w_qkv, b_qkv, w_proj, b_proj,
                      num_heads=num_heads, scale=scale, mask=mask)
    err1 = float(jnp.max(jnp.abs(out1 - ref1)))
    assert jnp.allclose(out1, ref1, atol=2e-2, rtol=2e-2), err1

    print("KERNEL_OK")
</pallas_src>

<mosaic_0001>
module attributes {stable_mosaic.version = 11 : i64} {
  func.func @_window_attention_kernel(%arg0: i32, %arg1: i32, %arg2: memref<1x4x32x128xf32, #tpu.memory_space<vmem>>, %arg3: memref<4x32x32xbf16, #tpu.memory_space<vmem>>, %arg4: memref<128x384xbf16, #tpu.memory_space<vmem>>, %arg5: memref<128x128xbf16, #tpu.memory_space<vmem>>, %arg6: memref<1x128xf32, #tpu.memory_space<vmem>>, %arg7: memref<1x4x32x128xf32, #tpu.memory_space<vmem>>) attributes {dimension_semantics = [#tpu.dimension_semantics<parallel>, #tpu.dimension_semantics<parallel>], iteration_bounds = array<i64: 2, 1>, scalar_prefetch = 0 : i64, scratch_operands = 0 : i64, tpu.core_type = #tpu.core_type<tc>, window_params = [{transform_indices = @transform_0, window_bounds = array<i64: 1, 4, 32, 128>}, {pipeline_mode = #tpu.pipeline_mode<synchronous>, transform_indices = @transform_1, window_bounds = array<i64: 4, 32, 32>}, {pipeline_mode = #tpu.pipeline_mode<synchronous>, transform_indices = @transform_2, window_bounds = array<i64: 128, 384>}, {pipeline_mode = #tpu.pipeline_mode<synchronous>, transform_indices = @transform_3, window_bounds = array<i64: 128, 128>}, {pipeline_mode = #tpu.pipeline_mode<synchronous>, transform_indices = @transform_4, window_bounds = array<i64: 1, 128>}, {transform_indices = @transform_5, window_bounds = array<i64: 1, 4, 32, 128>}]} {
    %c0 = arith.constant 0 : index
    %c0_0 = arith.constant 0 : index
    %c0_1 = arith.constant 0 : index
    %c0_2 = arith.constant 0 : index
    %0 = vector.load %arg2[%c0, %c0_0, %c0_1, %c0_2] : memref<1x4x32x128xf32, #tpu.memory_space<vmem>>, vector<1x4x32x128xf32>
    %1 = vector.shape_cast %0 : vector<1x4x32x128xf32> to vector<4x32x128xf32>
    %2 = vector.shape_cast %1 : vector<4x32x128xf32> to vector<128x128xf32>
    %3 = arith.truncf %2 : vector<128x128xf32> to vector<128x128xbf16>
    %c0_3 = arith.constant 0 : index
    %c0_4 = arith.constant 0 : index
    %4 = vector.load %arg4[%c0_3, %c0_4] : memref<128x384xbf16, #tpu.memory_space<vmem>>, vector<128x384xbf16>
    %cst = arith.constant dense<0.000000e+00> : vector<128x384xf32>
    %5 = tpu.matmul %3, %4, %cst {dimension_numbers = #tpu.dot_dimension_numbers<[1], [0], [0], [1], [0, 0, 1, 1], [], []>} : vector<128x128xbf16>, vector<128x384xbf16>, vector<128x384xf32> -> vector<128x384xf32>
    %6 = arith.truncf %5 : vector<128x384xf32> to vector<128x384xbf16>
    %c0_5 = arith.constant 0 : index
    %c0_6 = arith.constant 0 : index
    %c0_7 = arith.constant 0 : index
    %7 = vector.load %arg3[%c0_5, %c0_6, %c0_7] : memref<4x32x32xbf16, #tpu.memory_space<vmem>>, vector<4x32x32xbf16>
    %8 = arith.extf %7 : vector<4x32x32xbf16> to vector<4x32x32xf32>
    %9 = vector.extract_strided_slice %6 {offsets = [0, 0], sizes = [128, 32], strides = [1, 1]} : vector<128x384xbf16> to vector<128x32xbf16>
    %10 = vector.shape_cast %9 : vector<128x32xbf16> to vector<4x32x32xbf16>
    %11 = vector.extract_strided_slice %6 {offsets = [0, 128], sizes = [128, 32], strides = [1, 1]} : vector<128x384xbf16> to vector<128x32xbf16>
    %12 = vector.shape_cast %11 : vector<128x32xbf16> to vector<4x32x32xbf16>
    %13 = vector.extract_strided_slice %6 {offsets = [0, 256], sizes = [128, 32], strides = [1, 1]} : vector<128x384xbf16> to vector<128x32xbf16>
    %14 = vector.shape_cast %13 : vector<128x32xbf16> to vector<4x32x32xbf16>
    "tpu.trace_start"() <{level = 10 : i32, message = "wqd,wkd->wqk"}> : () -> ()
    %cst_8 = arith.constant dense<0.000000e+00> : vector<4x32x32xf32>
    %15 = tpu.matmul %10, %12, %cst_8 {dimension_numbers = #tpu.dot_dimension_numbers<[2], [2], [1], [1], [0, 0, 0, 1, 1, 1], [0], [0]>} : vector<4x32x32xbf16>, vector<4x32x32xbf16>, vector<4x32x32xf32> -> vector<4x32x32xf32>
    "tpu.trace_stop"() : () -> ()
    %16 = vector.extract_strided_slice %8 {offsets = [0, 0, 0], sizes = [1, 32, 32], strides = [1, 1, 1]} : vector<4x32x32xf32> to vector<1x32x32xf32>
    %17 = vector.shape_cast %16 : vector<1x32x32xf32> to vector<32x32xf32>
    %18 = vector.shape_cast %17 : vector<32x32xf32> to vector<1x32x32xf32>
    %19 = vector.broadcast %18 : vector<1x32x32xf32> to vector<4x32x32xf32>
    %20 = arith.addf %15, %19 : vector<4x32x32xf32>
    %cst_9 = arith.constant dense<0xFF800000> : vector<4x32xf32>
    %21 = vector.multi_reduction <maximumf>, %20, %cst_9 [2] : vector<4x32x32xf32> to vector<4x32xf32>
    %22 = vector.shape_cast %21 : vector<4x32xf32> to vector<4x32x1xf32>
    %23 = vector.broadcast %22 : vector<4x32x1xf32> to vector<4x32x32xf32>
    %24 = arith.subf %20, %23 : vector<4x32x32xf32>
    %25 = math.exp %24 : vector<4x32x32xf32>
    %cst_10 = arith.constant dense<0.000000e+00> : vector<4x32xf32>
    %26 = vector.multi_reduction <add>, %25, %cst_10 [2] : vector<4x32x32xf32> to vector<4x32xf32>
    %27 = vector.shape_cast %26 : vector<4x32xf32> to vector<4x32x1xf32>
    %28 = tpu.reciprocal %27 {approx = true} : vector<4x32x1xf32> -> vector<4x32x1xf32>
    %29 = vector.broadcast %28 : vector<4x32x1xf32> to vector<4x32x32xf32>
    %30 = arith.mulf %25, %29 : vector<4x32x32xf32>
    %31 = arith.truncf %30 : vector<4x32x32xf32> to vector<4x32x32xbf16>
    "tpu.trace_start"() <{level = 10 : i32, message = "wqk,wkd->wqd"}> : () -> ()
    %cst_11 = arith.constant dense<0.000000e+00> : vector<4x32x32xf32>
    %32 = tpu.matmul %31, %14, %cst_11 {dimension_numbers = #tpu.dot_dimension_numbers<[2], [1], [1], [2], [0, 0, 0, 1, 1, 2], [0], [0]>} : vector<4x32x32xbf16>, vector<4x32x32xbf16>, vector<4x32x32xf32> -> vector<4x32x32xf32>
    "tpu.trace_stop"() : () -> ()
    %33 = arith.truncf %32 : vector<4x32x32xf32> to vector<4x32x32xbf16>
    %34 = vector.extract_strided_slice %6 {offsets = [0, 32], sizes = [128, 32], strides = [1, 1]} : vector<128x384xbf16> to vector<128x32xbf16>
    %35 = vector.shape_cast %34 : vector<128x32xbf16> to vector<4x32x32xbf16>
    %36 = vector.extract_strided_slice %6 {offsets = [0, 160], sizes = [128, 32], strides = [1, 1]} : vector<128x384xbf16> to vector<128x32xbf16>
    %37 = vector.shape_cast %36 : vector<128x32xbf16> to vector<4x32x32xbf16>
    %38 = vector.extract_strided_slice %6 {offsets = [0, 288], sizes = [128, 32], strides = [1, 1]} : vector<128x384xbf16> to vector<128x32xbf16>
    %39 = vector.shape_cast %38 : vector<128x32xbf16> to vector<4x32x32xbf16>
    "tpu.trace_start"() <{level = 10 : i32, message = "wqd,wkd->wqk"}> : () -> ()
    %cst_12 = arith.constant dense<0.000000e+00> : vector<4x32x32xf32>
    %40 = tpu.matmul %35, %37, %cst_12 {dimension_numbers = #tpu.dot_dimension_numbers<[2], [2], [1], [1], [0, 0, 0, 1, 1, 1], [0], [0]>} : vector<4x32x32xbf16>, vector<4x32x32xbf16>, vector<4x32x32xf32> -> vector<4x32x32xf32>
    "tpu.trace_stop"() : () -> ()
    %41 = vector.extract_strided_slice %8 {offsets = [1, 0, 0], sizes = [1, 32, 32], strides = [1, 1, 1]} : vector<4x32x32xf32> to vector<1x32x32xf32>
    %42 = vector.shape_cast %41 : vector<1x32x32xf32> to vector<32x32xf32>
    %43 = vector.shape_cast %42 : vector<32x32xf32> to vector<1x32x32xf32>
    %44 = vector.broadcast %43 : vector<1x32x32xf32> to vector<4x32x32xf32>
    %45 = arith.addf %40, %44 : vector<4x32x32xf32>
    %cst_13 = arith.constant dense<0xFF800000> : vector<4x32xf32>
    %46 = vector.multi_reduction <maximumf>, %45, %cst_13 [2] : vector<4x32x32xf32> to vector<4x32xf32>
    %47 = vector.shape_cast %46 : vector<4x32xf32> to vector<4x32x1xf32>
    %48 = vector.broadcast %47 : vector<4x32x1xf32> to vector<4x32x32xf32>
    %49 = arith.subf %45, %48 : vector<4x32x32xf32>
    %50 = math.exp %49 : vector<4x32x32xf32>
    %cst_14 = arith.constant dense<0.000000e+00> : vector<4x32xf32>
    %51 = vector.multi_reduction <add>, %50, %cst_14 [2] : vector<4x32x32xf32> to vector<4x32xf32>
    %52 = vector.shape_cast %51 : vector<4x32xf32> to vector<4x32x1xf32>
    %53 = tpu.reciprocal %52 {approx = true} : vector<4x32x1xf32> -> vector<4x32x1xf32>
    %54 = vector.broadcast %53 : vector<4x32x1xf32> to vector<4x32x32xf32>
    %55 = arith.mulf %50, %54 : vector<4x32x32xf32>
    %56 = arith.truncf %55 : vector<4x32x32xf32> to vector<4x32x32xbf16>
    "tpu.trace_start"() <{level = 10 : i32, message = "wqk,wkd->wqd"}> : () -> ()
    %cst_15 = arith.constant dense<0.000000e+00> : vector<4x32x32xf32>
    %57 = tpu.matmul %56, %39, %cst_15 {dimension_numbers = #tpu.dot_dimension_numbers<[2], [1], [1], [2], [0, 0, 0, 1, 1, 2], [0], [0]>} : vector<4x32x32xbf16>, vector<4x32x32xbf16>, vector<4x32x32xf32> -> vector<4x32x32xf32>
    "tpu.trace_stop"() : () -> ()
    %58 = arith.truncf %57 : vector<4x32x32xf32> to vector<4x32x32xbf16>
    %59 = vector.extract_strided_slice %6 {offsets = [0, 64], sizes = [128, 32], strides = [1, 1]} : vector<128x384xbf16> to vector<128x32xbf16>
    %60 = vector.shape_cast %59 : vector<128x32xbf16> to vector<4x32x32xbf16>
    %61 = vector.extract_strided_slice %6 {offsets = [0, 192], sizes = [128, 32], strides = [1, 1]} : vector<128x384xbf16> to vector<128x32xbf16>
    %62 = vector.shape_cast %61 : vector<128x32xbf16> to vector<4x32x32xbf16>
    %63 = vector.extract_strided_slice %6 {offsets = [0, 320], sizes = [128, 32], strides = [1, 1]} : vector<128x384xbf16> to vector<128x32xbf16>
    %64 = vector.shape_cast %63 : vector<128x32xbf16> to vector<4x32x32xbf16>
    "tpu.trace_start"() <{level = 10 : i32, message = "wqd,wkd->wqk"}> : () -> ()
    %cst_16 = arith.constant dense<0.000000e+00> : vector<4x32x32xf32>
    %65 = tpu.matmul %60, %62, %cst_16 {dimension_numbers = #tpu.dot_dimension_numbers<[2], [2], [1], [1], [0, 0, 0, 1, 1, 1], [0], [0]>} : vector<4x32x32xbf16>, vector<4x32x32xbf16>, vector<4x32x32xf32> -> vector<4x32x32xf32>
    "tpu.trace_stop"() : () -> ()
    %66 = vector.extract_strided_slice %8 {offsets = [2, 0, 0], sizes = [1, 32, 32], strides = [1, 1, 1]} : vector<4x32x32xf32> to vector<1x32x32xf32>
    %67 = vector.shape_cast %66 : vector<1x32x32xf32> to vector<32x32xf32>
    %68 = vector.shape_cast %67 : vector<32x32xf32> to vector<1x32x32xf32>
    %69 = vector.broadcast %68 : vector<1x32x32xf32> to vector<4x32x32xf32>
    %70 = arith.addf %65, %69 : vector<4x32x32xf32>
    %cst_17 = arith.constant dense<0xFF800000> : vector<4x32xf32>
    %71 = vector.multi_reduction <maximumf>, %70, %cst_17 [2] : vector<4x32x32xf32> to vector<4x32xf32>
    %72 = vector.shape_cast %71 : vector<4x32xf32> to vector<4x32x1xf32>
    %73 = vector.broadcast %72 : vector<4x32x1xf32> to vector<4x32x32xf32>
    %74 = arith.subf %70, %73 : vector<4x32x32xf32>
    %75 = math.exp %74 : vector<4x32x32xf32>
    %cst_18 = arith.constant dense<0.000000e+00> : vector<4x32xf32>
    %76 = vector.multi_reduction <add>, %75, %cst_18 [2] : vector<4x32x32xf32> to vector<4x32xf32>
    %77 = vector.shape_cast %76 : vector<4x32xf32> to vector<4x32x1xf32>
    %78 = tpu.reciprocal %77 {approx = true} : vector<4x32x1xf32> -> vector<4x32x1xf32>
    %79 = vector.broadcast %78 : vector<4x32x1xf32> to vector<4x32x32xf32>
    %80 = arith.mulf %75, %79 : vector<4x32x32xf32>
    %81 = arith.truncf %80 : vector<4x32x32xf32> to vector<4x32x32xbf16>
    "tpu.trace_start"() <{level = 10 : i32, message = "wqk,wkd->wqd"}> : () -> ()
    %cst_19 = arith.constant dense<0.000000e+00> : vector<4x32x32xf32>
    %82 = tpu.matmul %81, %64, %cst_19 {dimension_numbers = #tpu.dot_dimension_numbers<[2], [1], [1], [2], [0, 0, 0, 1, 1, 2], [0], [0]>} : vector<4x32x32xbf16>, vector<4x32x32xbf16>, vector<4x32x32xf32> -> vector<4x32x32xf32>
    "tpu.trace_stop"() : () -> ()
    %83 = arith.truncf %82 : vector<4x32x32xf32> to vector<4x32x32xbf16>
    %84 = vector.extract_strided_slice %6 {offsets = [0, 96], sizes = [128, 32], strides = [1, 1]} : vector<128x384xbf16> to vector<128x32xbf16>
    %85 = vector.shape_cast %84 : vector<128x32xbf16> to vector<4x32x32xbf16>
    %86 = vector.extract_strided_slice %6 {offsets = [0, 224], sizes = [128, 32], strides = [1, 1]} : vector<128x384xbf16> to vector<128x32xbf16>
    %87 = vector.shape_cast %86 : vector<128x32xbf16> to vector<4x32x32xbf16>
    %88 = vector.extract_strided_slice %6 {offsets = [0, 352], sizes = [128, 32], strides = [1, 1]} : vector<128x384xbf16> to vector<128x32xbf16>
    %89 = vector.shape_cast %88 : vector<128x32xbf16> to vector<4x32x32xbf16>
    "tpu.trace_start"() <{level = 10 : i32, message = "wqd,wkd->wqk"}> : () -> ()
    %cst_20 = arith.constant dense<0.000000e+00> : vector<4x32x32xf32>
    %90 = tpu.matmul %85, %87, %cst_20 {dimension_numbers = #tpu.dot_dimension_numbers<[2], [2], [1], [1], [0, 0, 0, 1, 1, 1], [0], [0]>} : vector<4x32x32xbf16>, vector<4x32x32xbf16>, vector<4x32x32xf32> -> vector<4x32x32xf32>
    "tpu.trace_stop"() : () -> ()
    %91 = vector.extract_strided_slice %8 {offsets = [3, 0, 0], sizes = [1, 32, 32], strides = [1, 1, 1]} : vector<4x32x32xf32> to vector<1x32x32xf32>
    %92 = vector.shape_cast %91 : vector<1x32x32xf32> to vector<32x32xf32>
    %93 = vector.shape_cast %92 : vector<32x32xf32> to vector<1x32x32xf32>
    %94 = vector.broadcast %93 : vector<1x32x32xf32> to vector<4x32x32xf32>
    %95 = arith.addf %90, %94 : vector<4x32x32xf32>
    %cst_21 = arith.constant dense<0xFF800000> : vector<4x32xf32>
    %96 = vector.multi_reduction <maximumf>, %95, %cst_21 [2] : vector<4x32x32xf32> to vector<4x32xf32>
    %97 = vector.shape_cast %96 : vector<4x32xf32> to vector<4x32x1xf32>
    %98 = vector.broadcast %97 : vector<4x32x1xf32> to vector<4x32x32xf32>
    %99 = arith.subf %95, %98 : vector<4x32x32xf32>
    %100 = math.exp %99 : vector<4x32x32xf32>
    %cst_22 = arith.constant dense<0.000000e+00> : vector<4x32xf32>
    %101 = vector.multi_reduction <add>, %100, %cst_22 [2] : vector<4x32x32xf32> to vector<4x32xf32>
    %102 = vector.shape_cast %101 : vector<4x32xf32> to vector<4x32x1xf32>
    %103 = tpu.reciprocal %102 {approx = true} : vector<4x32x1xf32> -> vector<4x32x1xf32>
    %104 = vector.broadcast %103 : vector<4x32x1xf32> to vector<4x32x32xf32>
    %105 = arith.mulf %100, %104 : vector<4x32x32xf32>
    %106 = arith.truncf %105 : vector<4x32x32xf32> to vector<4x32x32xbf16>
    "tpu.trace_start"() <{level = 10 : i32, message = "wqk,wkd->wqd"}> : () -> ()
    %cst_23 = arith.constant dense<0.000000e+00> : vector<4x32x32xf32>
    %107 = tpu.matmul %106, %89, %cst_23 {dimension_numbers = #tpu.dot_dimension_numbers<[2], [1], [1], [2], [0, 0, 0, 1, 1, 2], [0], [0]>} : vector<4x32x32xbf16>, vector<4x32x32xbf16>, vector<4x32x32xf32> -> vector<4x32x32xf32>
    "tpu.trace_stop"() : () -> ()
    %108 = arith.truncf %107 : vector<4x32x32xf32> to vector<4x32x32xbf16>
    %109 = tpu.concatenate %33, %58, %83, %108 in 2 : vector<4x32x32xbf16>, vector<4x32x32xbf16>, vector<4x32x32xbf16>, vector<4x32x32xbf16> -> vector<4x32x128xbf16>
    %110 = vector.shape_cast %109 : vector<4x32x128xbf16> to vector<128x128xbf16>
    %c0_24 = arith.constant 0 : index
    %c0_25 = arith.constant 0 : index
    %111 = vector.load %arg5[%c0_24, %c0_25] : memref<128x128xbf16, #tpu.memory_space<vmem>>, vector<128x128xbf16>
    %cst_26 = arith.constant dense<0.000000e+00> : vector<128x128xf32>
    %112 = tpu.matmul %110, %111, %cst_26 {dimension_numbers = #tpu.dot_dimension_numbers<[1], [0], [0], [1], [0, 0, 1, 1], [], []>} : vector<128x128xbf16>, vector<128x128xbf16>, vector<128x128xf32> -> vector<128x128xf32>
    %c0_27 = arith.constant 0 : index
    %c0_28 = arith.constant 0 : index
    %113 = vector.load %arg6[%c0_27, %c0_28] : memref<1x128xf32, #tpu.memory_space<vmem>>, vector<1x128xf32>
    %114 = vector.broadcast %113 : vector<1x128xf32> to vector<128x128xf32>
    %115 = arith.addf %112, %114 : vector<128x128xf32>
    %116 = vector.shape_cast %115 : vector<128x128xf32> to vector<4x32x128xf32>
    %c0_29 = arith.constant 0 : index
    %c0_30 = arith.constant 0 : index
    %c0_31 = arith.constant 0 : index
    %c0_32 = arith.constant 0 : index
    %117 = vector.load %arg7[%c0_29, %c0_30, %c0_31, %c0_32] : memref<1x4x32x128xf32, #tpu.memory_space<vmem>>, vector<1x4x32x128xf32>
    %118 = vector.shape_cast %117 : vector<1x4x32x128xf32> to vector<4x32x128xf32>
    %119 = vector.shape_cast %116 : vector<4x32x128xf32> to vector<1x4x32x128xf32>
    tpu.vector_store %arg7[%c0_29, %c0_30, %c0_31, %c0_32], %119 {strides = array<i32>} : memref<1x4x32x128xf32, #tpu.memory_space<vmem>>, vector<1x4x32x128xf32>,
    return
  }
  func.func @transform_0(%arg0: i32, %arg1: i32) -> (i32, i32, i32, i32) {
    %c0_i32 = arith.constant 0 : i32
    %c0_i32_0 = arith.constant 0 : i32
    %c0_i32_1 = arith.constant 0 : i32
    return %arg1, %arg0, %c0_i32, %c0_i32_0 : i32, i32, i32, i32
  }
  func.func @transform_1(%arg0: i32, %arg1: i32) -> (i32, i32, i32) {
    %c0_i32 = arith.constant 0 : i32
    %c0_i32_0 = arith.constant 0 : i32
    %c0_i32_1 = arith.constant 0 : i32
    %c0_i32_2 = arith.constant 0 : i32
    return %c0_i32, %c0_i32_0, %c0_i32_1 : i32, i32, i32
  }
  func.func @transform_2(%arg0: i32, %arg1: i32) -> (i32, i32) {
    %c0_i32 = arith.constant 0 : i32
    %c0_i32_0 = arith.constant 0 : i32
    %c0_i32_1 = arith.constant 0 : i32
    return %c0_i32, %c0_i32_0 : i32, i32
  }
  func.func @transform_3(%arg0: i32, %arg1: i32) -> (i32, i32) {
    %c0_i32 = arith.constant 0 : i32
    %c0_i32_0 = arith.constant 0 : i32
    %c0_i32_1 = arith.constant 0 : i32
    return %c0_i32, %c0_i32_0 : i32, i32
  }
  func.func @transform_4(%arg0: i32, %arg1: i32) -> (i32, i32) {
    %c0_i32 = arith.constant 0 : i32
    %c0_i32_0 = arith.constant 0 : i32
    %c0_i32_1 = arith.constant 0 : i32
    return %c0_i32, %c0_i32_0 : i32, i32
  }
  func.func @transform_5(%arg0: i32, %arg1: i32) -> (i32, i32, i32, i32) {
    %c0_i32 = arith.constant 0 : i32
    %c0_i32_0 = arith.constant 0 : i32
    %c0_i32_1 = arith.constant 0 : i32
    return %arg1, %arg0, %c0_i32, %c0_i32_0 : i32, i32, i32, i32
  }
}

</mosaic_0001>

<bundles_post_ra>
// kernel: tpu_custom_call.1
= control target key start
LH: loop header
LB: loop body
LE: loop exit
PB: predicated region body
PF: predicated region fallthrough
CT: control target
= control target key end

     0   :  { %s6944_s0 = inlined_call_operand.hbm [shape: f32[1,8,32,128], index: 0, kind: input, shape index: {}]   ;;  %s6945_s1 = inlined_call_operand.hbm [shape: bf16[4,32,32], index: 1, kind: input, shape index: {}]   ;;  %s6946_s2 = inlined_call_operand.hbm [shape: bf16[128,384], index: 2, kind: input, shape index: {}]   ;;  %s6947_s3 = inlined_call_operand.hbm [shape: bf16[128,128], index: 3, kind: input, shape index: {}]   ;;  %s6948_s4 = inlined_call_operand.vmem [shape: f32[1,128], index: 4, kind: input, shape index: {}]   ;;  %s6949_s5 = inlined_call_operand.hbm [shape: f32[1,8,32,128], index: 5, kind: output, shape index: {}]  }
   0x1   :  { %6975 = sst [smem:[#allocation35_spill]] %s6945_s1 }
   0x2   :  { %6976 = sst [smem:[#allocation36_spill]] %s6946_s2 }
   0x3   :  { %10 = vsyncpa [#allocation3], 0 }
   0x4   :  { %12 = vsyncpa [#allocation3 + $0x1], 0 }
   0x5   :  { %13 = vsyncpa [#allocation6], 0 }
   0x6   :  { %14 = vsyncpa [#allocation9], 0 }
   0x7   :  { %15 = vsyncpa [#allocation4], 0 }
   0x8   :  { %17 = vsyncpa [#allocation4 + $0x1], 0  ;;  %s5350_s18 = smov 0   ;;  %s5352_s19 = smov 0  }
   0x9   :  { %s5354_s20 = smov 0   ;;  %s5356_s21 = smov 0  }
   0xa   :  { %s5358_s22 = smov 0   ;;  %s5360_s23 = smov 0  }
   0xb LB: > { %s4031_s24 = sadd.s32 4294967295, %s5301_s23   ;;  %s4032_s25 = sadd.s32 4294967294, %s5301_s23   ;;  %s5301_s23 = sphi %s5360_s23, %s23_s23   ;;  %s5297_s22 = sphi %s5358_s22, %s7061_s22   ;;  %s5293_s21 = sphi %s5356_s21, %s7060_s21   ;;  %s5289_s20 = sphi %s5354_s20, %s7059_s20   ;;  %s5285_s19 = sphi %s5352_s19, %s7058_s19   ;;  %s5281_s18 = sphi %s5350_s18, %s7057_s18  }
   0xc   : > { %p57_p0 = scmp.ne.s32.totalorder %s5285_s19, %s5281_s18  ;;  %p5384_p1 = scmp.eq.s32.totalorder %s4031_s24, 0 }
   0xd   : > { %p5388_p2 = scmp.eq.s32.totalorder %s4031_s24, 1  ;;  %p173_p3 = scmp.eq.s32.totalorder %s4032_s25, 1 }
   0xe   : > { %p5394_p4 = por %p5384_p1, %p57_p0  ;;  %p4033_p5 = scmp.ge.s32.totalorder %s5301_s23, 1 }
   0xf   : > { %p5399_p6 = por %p173_p3, %p57_p0  ;;  %p180_p7 = scmp.lt.s32.totalorder %s5301_s23, 3 }
  0x10   : > { %s5303_s6 = smov [#allocation5]   ;;  %s5304_s9 = smov [#allocation7]  }
  0x11   : > { %s6980_s29 = scalar_select %p5399_p6, 1, 0 }
  0x12   : > { %p5404_p8 = pnand %p4033_p5, %p180_p7  ;;  %s192_s7 = sshll.u32 %s5303_s6, 4  ;;  %s193_s7 = int_to_ptr.vmem [resolvable:$true] %s192_s7 }
  0x13   : > { %s205_s10 = sshll.u32 %s5304_s9, 4  ;;  %s5118_s11 = scalar_lea.vmem %s193_s7, 1024  ;;  %s206_s10 = int_to_ptr.vmem [resolvable:$true] %s205_s10 }
  0x14   : > { %p4722_p9 = pneg %p5404_p8  ;;  %p5119_p13 = scmp.ne.s32.totalorder %s193_s7, %s5118_s11 }
  0x15   : > { %p5126_p5 = scmp.lt.s32.totalorder %s193_s7, %s193_s7  ;;  %p5127_p7 = scmp.lt.s32.totalorder %s5118_s11, %s5118_s11 }
  0x16   : > { %p5413_p11 = pnand %p4722_p9, %p5384_p1 }
  0x17   : > { %p5128_p10 = por %p5127_p7, %p5126_p5 }
  0x18   : > { %p5109_p12 = pneg %p5413_p11 }
  0x1a   : > { %p5121_p0 = pnand %p5119_p13, %p5109_p12 }
  0x1c   : > { %p5122_p3 = pneg %p5121_p0 }
  0x1e   : > { %p5129_p9 = pnand %p5128_p10, %p5122_p3 }
  0x20   : > { %5132 = shalt.err (!%p5129_p9)
}
  0x21   : > { %s5305_s12 = smov 64   ;;  %s5306_s13 = smov 4  }
  0x22   : > { %s6983_s1 = sld [smem:[#allocation35_spill]]  ;;  %s5144_s16 = scalar_lea.vmem %s206_s10, 3072 }
  0x23   : > { %p5145_p13 = scmp.ne.s32.totalorder %s206_s10, %s5144_s16  ;;  %p5152_p10 = scmp.lt.s32.totalorder %s206_s10, %s206_s10 }
  0x24   : > { %p5153_p3 = scmp.lt.s32.totalorder %s5144_s16, %s5144_s16 }
  0x25   : > { %p5147_p0 = pnand %p5145_p13, %p5109_p12 }
  0x26   : > { %p5154_p7 = por %p5153_p3, %p5152_p10 }
  0x27   : > { %p5148_p5 = pneg %p5147_p0 }
  0x28   : > { %4725 = dma.hbm_to_vmem [thread:$0]  (!%p5413_p11), %s6983_s1, 1024, %s193_s7, [#allocation6], %s5305_s12, %s5305_s12, %s5306_s13  }
  0x29   : > { %p5155_p9 = pnand %p5154_p7, %p5148_p5 }
  0x2b   : > { %5158 = shalt.err (!%p5155_p9)
}
  0x2c   : > { %s5307_s17 = smov 192   ;;  %s5308_s24 = smov 12  }
  0x2d   : > { %s6984_s2 = sld [smem:[#allocation36_spill]]  ;;  %s5309_s7 = smov [#allocation8]  }
  0x2e   : > { %s218_s9 = sshll.u32 %s5309_s7, 4  ;;  %s219_s9 = int_to_ptr.vmem [resolvable:$true] %s218_s9 }
  0x2f   : > { %s5170_s11 = scalar_lea.vmem %s219_s9, 1024  ;;  %p5178_p5 = scmp.lt.s32.totalorder %s219_s9, %s219_s9 }
  0x30   : > { %p5171_p13 = scmp.ne.s32.totalorder %s219_s9, %s5170_s11  ;;  %p5179_p3 = scmp.lt.s32.totalorder %s5170_s11, %s5170_s11 }
  0x32   : > { %p5173_p0 = pnand %p5171_p13, %p5109_p12  ;;  %p5180_p7 = por %p5179_p3, %p5178_p5 }
  0x33   : > { %4728 = dma.hbm_to_vmem [thread:$0]  (!%p5413_p11), %s6984_s2, 3072, %s206_s10, [#allocation6], %s5307_s17, %s5307_s17, %s5308_s24  }
  0x34   : > { %p5174_p10 = pneg %p5173_p0 }
  0x36   : > { %p5181_p9 = pnand %p5180_p7, %p5174_p10 }
  0x38   : > { %5184 = shalt.err (!%p5181_p9)
}
  0x39   : > { %4731 = dma.hbm_to_vmem [thread:$0]  (!%p5413_p11), %s6947_s3, 1024, %s219_s9, [#allocation9], %s5305_s12, %s5305_s12, %s5306_s13  }
  0x3a   : > { %s35_s15 = sadd.s32 1, %s5297_s22  ;;  %s44_s8 = sadd.s32 1, %s5289_s20 }
  0x3b   : > { %p37_p12 = scmp.ge.s32.totalorder %s35_s15, 2  ;;  %p51_p13 = scmp.ne.s32.totalorder %s5289_s20, %s5285_s19 }
  0x3c   : > { %p52_p0 = scmp.eq.s32.totalorder %s5301_s23, 0  ;;  %p4743_p11 = scmp.lt.s32.totalorder %s5301_s23, 2 }
  0x3d   : > { %s7063_s15 = smov (%p37_p12, %s35_s15), 0  ;;  %p5462_p5 = por %p5388_p2, %p51_p13 }
  0x3e   : > { %p5456_p10 = por %p52_p0, %p51_p13  ;;  %s40_s24 = ssub.s32 %s5297_s22, %s7063_s15 }
  0x3f   : > { %s6986_s17 = scalar_select %p5462_p5, 1, 0 }
  0x40   : > { %p42_p3 = scmp.eq.s32.totalorder %s40_s24, 0  ;;  %s235_s12 = sand.u32 1, %s5289_s20  }
  0x41   : > { %s4038_s13 = sshll.u32 %s235_s12, 7  ;;  %s4152_s6 = sshll.u32 %s5297_s22, 11 }
  0x42   : > { %s5471_s25 = scalar_select %p42_p3, %s5289_s20, %s44_s8  }
  0x43   : > { %s248_s11 = scalar_lea.hbm %s6944_s0, %s4152_s6  ;;  %s239_s10 = scalar_lea.vmem [#allocation2], %s4038_s13 }
  0x44   : > { %s249_s14 = sshll.u32 %s239_s10, 4  ;;  %p5479_p2 = pnand %p4743_p11, %p5456_p10  ;;  %s250_s14 = int_to_ptr.vmem [resolvable:$true] %s249_s14 }
  0x45   : > { %s236_s1 = scalar_lea.sflag [#allocation3], %s235_s12  ;;  %s5198_s24 = scalar_lea.vmem %s250_s14, 2048 }
  0x46   : > { %p5187_p7 = pneg %p5479_p2  ;;  %p5199_p9 = scmp.ne.s32.totalorder %s250_s14, %s5198_s24 }
  0x47   : > { %s5310_s8 = smov [#allocation2]  }
  0x48   : > { %p5201_p12 = pnand %p5199_p9, %p5187_p7  ;;  %s5203_s2 = sshll.u32 %s5310_s8, 4  ;;  %s5204_s2 = int_to_ptr.vmem [resolvable:$false] %s5203_s2 }
  0x49   : > { %s5205_s6 = scalar_lea.vmem %s5204_s2, 4096  ;;  %p5206_p0 = scmp.lt.s32.totalorder %s250_s14, %s5204_s2 }
  0x4a   : > { %p5202_p13 = pneg %p5201_p12  ;;  %p5207_p3 = scmp.lt.s32.totalorder %s5205_s6, %s5198_s24 }
  0x4c   : > { %p5208_p6 = por %p5207_p3, %p5206_p0 }
  0x4e   : > { %p5209_p5 = pnand %p5208_p6, %p5202_p13 }
  0x50   : > { %5212 = shalt.err (!%p5209_p5)
}
  0x51   : > { %s5311_s16 = smov 128   ;;  %s5312_s13 = smov 8  }
  0x52   : > { %4735 = dma.hbm_to_vmem [thread:$0]  (!%p5479_p2), %s248_s11, 2048, %s250_s14, %s236_s1, %s5311_s16, %s5311_s16, %s5312_s13  }
  0x53   : > { %261 = sbr.rel (%p5404_p8) target bundleno = 3217 (0xc91), region = 40 }
  0x58   : > { %s5490_s12 = sand.u32 1, %s5285_s19  }
  0x59   : > { %s4043_s2 = sshll.u32 %s5490_s12, 7  ;;  %s264_s7 = scalar_lea.sflag [#allocation3], %s5490_s12 }
  0x5a   : > { %s5496_s9 = scalar_lea.vmem [#allocation2], %s4043_s2 }
  0x5b   : > { %5264 = dma.done.wait (%p5394_p4), %s264_s7, 2048  }
  0x5c   : > { %5266 = vsyncadd (%p5394_p4), %s264_s7, 4294965248 }
  0x5d   : > { %5268 = dma.done.wait (%p5384_p1), [#allocation6], 4096  }
  0x5e   : > { %5270 = vsyncadd (%p5384_p1), [#allocation6], 4294963200 }
  0x5f   : > { %5272 = dma.done.wait (%p5384_p1), [#allocation9], 1024  }
  0x60   : > { %5274 = vsyncadd (%p5384_p1), [#allocation9], 4294966272  ;;  %v5313_v0 = vmov 0   ;;  %v4811_v1 = vld [vmem:[#allocation7 + $0xac] ss:$12 sps:$4 sm:$0xff]   ;;  %v309_v8 = vld [vmem:[%s5496_s9] sm:$0xff] }
  0x61   : > { %525 = vmatprep.mubr.bf16.mxu0 %v5313_v0  ;;  %v4813_v2 = vld [vmem:[#allocation7 + $0xa8] ss:$12 sps:$4 sm:$0xff]   ;;  %493 = vmatprep.subr.bf16.mxu0 %v4811_v1  ;;  %v4816_v4 = vld [vmem:[#allocation7 + $0x90] ss:$12 sps:$4 sm:$0xff]   ;;  %v4819_v6 = vld [vmem:[#allocation7 + $0x78] ss:$12 sps:$4 sm:$0xff]  }
  0x62   : > { %v4814_v3 = vld [vmem:[#allocation7 + $0x94] ss:$12 sps:$4 sm:$0xff]   ;;  %494 = vmatpush1.bf16.msra.mxu0 %v4813_v2  ;;  %v4817_v5 = vld [vmem:[#allocation7 + $0x7c] ss:$12 sps:$4 sm:$0xff]   ;;  %v4820_v7 = vld [vmem:[#allocation7 + $0x64] ss:$12 sps:$4 sm:$0xff]  }
  0x63   : > { %495 = vmatprep.subr.bf16.mxu0 %v4814_v3  ;;  %v4822_v9 = vld [vmem:[#allocation7 + $0x60] ss:$12 sps:$4 sm:$0xff]   ;;  %v4825_v13 = vld [vmem:[#allocation7 + $0x48] ss:$12 sps:$4 sm:$0xff]   ;;  %v4835_v15 = vld [vmem:[#allocation7 + $0xb0] ss:$12 sps:$4 sm:$0xff]  }
  0x64   : > { %v310_v10 = vld [vmem:[%s5496_s9 + $0x8] sm:$0xff]  ;;  %v4826_v14 = vld [vmem:[#allocation7 + $0x34] ss:$12 sps:$4 sm:$0xff]   ;;  %v4836_v16 = vld [vmem:[#allocation7 + $0x98] ss:$12 sps:$4 sm:$0xff]   ;;  %4354 = vmatprep.subr.bf16.mxu1 %v4835_v15  ;;  %vm759_vm0 = vcmask 261120  }
  0x65   : > { %v4823_v11 = vld [vmem:[#allocation7 + $0x4c] ss:$12 sps:$4 sm:$0xff]   ;;  %v325_v12 = vpack.c.bf16 %v310_v10, %v309_v8  ;;  %v4828_v17 = vld [vmem:[#allocation7 + $0x30] ss:$12 sps:$4 sm:$0xff]   ;;  %4355 = vmatpush3.bf16.msra.mxu1 %v4835_v15  ;;  %v4838_v22 = vld [vmem:[#allocation7 + $0x68] ss:$12 sps:$4 sm:$0xff]  }
  0x66   : > { %496 = vmatpush1.bf16.msra.mxu0 %v4816_v4  ;;  %v4829_v18 = vld [vmem:[#allocation7 + $0x1c] ss:$12 sps:$4 sm:$0xff]   ;;  %4356 = vmatprep.subr.bf16.mxu1 %v4836_v16  ;;  %v4837_v19 = vld [vmem:[#allocation7 + $0x80] ss:$12 sps:$4 sm:$0xff]   ;;  %v4831_v20 = vld [vmem:[#allocation7 + $0x18] ss:$12 sps:$4 sm:$0xff]  }
  0x67   : > { %497 = vmatprep.subr.bf16.mxu0 %v4817_v5  ;;  %4370 = vmatprep.mubr.bf16.mxu1 %v325_v12  ;;  %v4832_v21 = vld [vmem:[#allocation7 + $0x4] ss:$12 sps:$4 sm:$0xff]   ;;  %v4834_v23 = vld [vmem:[#allocation7] ss:$12 sps:$4 sm:$0xff]   ;;  %v312_v27 = vld [vmem:[%s5496_s9 + $0x18] sm:$0xff]  ;;  %s5314_s1 = smov 96  }
  0x68   : > { %v4839_v24 = vld [vmem:[#allocation7 + $0x50] ss:$12 sps:$4 sm:$0xff]   ;;  %v4840_v25 = vld [vmem:[#allocation7 + $0x38] ss:$12 sps:$4 sm:$0xff]   ;;  %v4841_v28 = vld [vmem:[#allocation7 + $0x20] ss:$12 sps:$4 sm:$0xff]  }
  0x69   : > { %4357 = vmatpush3.bf16.msra.mxu1 %v4836_v16  ;;  %v311_v26 = vld [vmem:[%s5496_s9 + $0x10] sm:$0xff]  ;;  %v313_v31 = vld [vmem:[%s5496_s9 + $0x20] sm:$0xff]  ;;  %v314_v32 = vld [vmem:[%s5496_s9 + $0x28] sm:$0xff]  ;;  %s5315_s26 = smov 64   ;;  %s5316_s28 = smov 32   ;;  %vm3672_vm1 = vcmask 523264  }
  0x6a   : > { %498 = vmatpush1.bf16.msra.mxu0 %v4819_v6  ;;  %4358 = vmatprep.subr.bf16.mxu1 %v4837_v19  ;;  %v326_v29 = vpack.c.bf16 %v312_v27, %v311_v26  ;;  %v4842_v30 = vld [vmem:[#allocation7 + $0x8] ss:$12 sps:$4 sm:$0xff]   ;;  %v327_v33 = vpack.c.bf16 %v314_v32, %v313_v31  ;;  %v316_v35 = vld [vmem:[%s5496_s9 + $0x38] sm:$0xff]  ;;  %v317_v37 = vld [vmem:[%s5496_s9 + $0x40] sm:$0xff]  ;;  %vm3689_vm2 = vcmask 785408   ;;  %s6871_s10 = scalar_lea.vmem [#allocation10], %s4043_s2 }
  0x6b   : > { %499 = vmatprep.subr.bf16.mxu0 %v4820_v7  ;;  %v315_v34 = vld [vmem:[%s5496_s9 + $0x30] sm:$0xff]  ;;  %v318_v38 = vld [vmem:[%s5496_s9 + $0x48] sm:$0xff]  ;;  %v320_v41 = vld [vmem:[%s5496_s9 + $0x58] sm:$0xff]  ;;  %s4154_s14 = sshll.u32 %s5293_s21, 11  ;;  %s3915_s27 = sshll.u32 %s6871_s10, 4  ;;  %s6894_s27 = int_to_ptr.vmem [resolvable:$true] %s3915_s27 }
  0x6c   : > { %v328_v36 = vpack.c.bf16 %v316_v35, %v315_v34  ;;  %v329_v39 = vpack.c.bf16 %v318_v38, %v317_v37  ;;  %v319_v40 = vld [vmem:[%s5496_s9 + $0x50] sm:$0xff]  ;;  %v321_v42 = vld [vmem:[%s5496_s9 + $0x60] sm:$0xff]  ;;  %v322_v43 = vld [vmem:[%s5496_s9 + $0x68] sm:$0xff]  ;;  %s6892_s6 = scalar_lea.hbm %s6949_s5, %s4154_s14  ;;  %s3899_s16 = scalar_lea.sflag [#allocation4], %s5490_s12 }
  0x6d   : > { %4359 = vmatpush3.bf16.msra.mxu1 %v4837_v19  ;;  %v330_v44 = vpack.c.bf16 %v320_v41, %v319_v40  ;;  %v331_v45 = vpack.c.bf16 %v322_v43, %v321_v42  ;;  %v323_v46 = vld [vmem:[%s5496_s9 + $0x70] sm:$0xff]  ;;  %v324_v47 = vld [vmem:[%s5496_s9 + $0x78] sm:$0xff]  ;;  %s5213_s21 = scalar_lea.vmem %s6894_s27, 2048  ;;  %p7054_p4 = scmp.ne.s32.totalorder %s6986_s17, 0 }
  0x6e   : > { %500 = vmatpush1.bf16.msra.mxu0 %v4822_v9  ;;  %4360 = vmatprep.subr.bf16.mxu1 %v4838_v22  ;;  %v332_v48 = vpack.c.bf16 %v324_v47, %v323_v46  ;;  %p5214_p1 = scmp.ne.s32.totalorder %s6894_s27, %s5213_s21  ;;  %s5317_s13 = smov [#allocation10]  }
  0x6f   : > { %501 = vmatprep.subr.bf16.mxu0 %v4823_v11  ;;  %s5217_s2 = sshll.u32 %s5317_s13, 4  ;;  %s5218_s2 = int_to_ptr.vmem [resolvable:$false] %s5217_s2 }
  0x70   : > { %p5215_p6 = pnand %p5214_p1, %p7054_p4  ;;  %s5219_s7 = scalar_lea.vmem %s5218_s2, 4096 }
  0x71   : > { %4361 = vmatpush3.bf16.msra.mxu1 %v4838_v22  ;;  %p5220_p10 = scmp.lt.s32.totalorder %s6894_s27, %s5218_s2  ;;  %p5221_p5 = scmp.lt.s32.totalorder %s5219_s7, %s5213_s21 }
  0x72   : > { %502 = vmatpush1.bf16.msra.mxu0 %v4825_v13  ;;  %4362 = vmatprep.subr.bf16.mxu1 %v4839_v24  ;;  %p5216_p8 = pneg %p5215_p6 }
  0x73   : > { %503 = vmatprep.subr.bf16.mxu0 %v4826_v14  ;;  %p5222_p11 = por %p5221_p5, %p5220_p10 }
  0x75   : > { %4363 = vmatpush3.bf16.msra.mxu1 %v4839_v24  ;;  %p5223_p2 = pnand %p5222_p11, %p5216_p8 }
  0x76   : > { %504 = vmatpush1.bf16.msra.mxu0 %v4828_v17  ;;  %4364 = vmatprep.subr.bf16.mxu1 %v4840_v25 }
  0x77   : > { %505 = vmatprep.subr.bf16.mxu0 %v4829_v18 }
  0x79   : > { %4365 = vmatpush3.bf16.msra.mxu1 %v4840_v25 }
  0x7a   : > { %506 = vmatpush1.bf16.msra.mxu0 %v4831_v20  ;;  %4366 = vmatprep.subr.bf16.mxu1 %v4841_v28 }
  0x7b   : > { %507 = vmatprep.subr.bf16.mxu0 %v4832_v21 }
  0x7d   : > { %4367 = vmatpush3.bf16.msra.mxu1 %v4841_v28 }
  0x7e   : > { %508 = vmatpush1.bf16.msra.mxu0 %v4834_v23  ;;  %4368 = vmatprep.subr.bf16.mxu1 %v4842_v30 }
  0x81   : > { %526 = vmatmul.mubr.bf16.vlgmr.msra.gmra.mxu0 %v325_v12  ;;  %4369 = vmatpush3.bf16.msra.mxu1 %v4842_v30 }
  0x82   : > { %535 = vmatprep.mubr.bf16.mxu0 %v5313_v0 }
  0x84   : > { %4371 = vmatmul.mubr.bf16.vlgmr.msra.gmra.mxu1 %v326_v29 }
  0x85   : > { %4374 = vmatprep.mubr.bf16.mxu1 %v327_v33 }
  0x89   : > { %536 = vmatmul.mubr.bf16.gmra.mxu0 %v326_v29 }
  0x8a   : > { %545 = vmatprep.mubr.bf16.mxu0 %v5313_v0 }
  0x8c   : > { %4375 = vmatmul.mubr.bf16.gmra.mxu1 %v328_v36 }
  0x8d   : > { %4378 = vmatprep.mubr.bf16.mxu1 %v329_v39 }
  0x91   : > { %546 = vmatmul.mubr.bf16.gmra.mxu0 %v327_v33 }
  0x92   : > { %555 = vmatprep.mubr.bf16.mxu0 %v5313_v0 }
  0x94   : > { %4379 = vmatmul.mubr.bf16.gmra.mxu1 %v330_v44 }
  0x95   : > { %4382 = vmatprep.mubr.bf16.mxu1 %v331_v45 }
  0x99   : > { %556 = vmatmul.mubr.bf16.gmra.mxu0 %v328_v36 }
  0x9a   : > { %565 = vmatprep.mubr.bf16.mxu0 %v5313_v0 }
  0x9c   : > { %4383 = vmatmul.mubr.bf16.gmra.mxu1 %v332_v48 }
  0xa1   : > { %566 = vmatmul.mubr.bf16.gmra.mxu0 %v329_v39 }
  0xa2   : > { %575 = vmatprep.mubr.bf16.mxu0 %v5313_v0 }
  0xa9   : > { %576 = vmatmul.mubr.bf16.gmra.mxu0 %v330_v44 }
  0xaa   : > { %585 = vmatprep.mubr.bf16.mxu0 %v5313_v0 }
  0xb1   : > { %586 = vmatmul.mubr.bf16.gmra.mxu0 %v331_v45 }
  0xb2   : > { %595 = vmatprep.mubr.bf16.mxu0 %v5313_v0 }
  0xb9   : > { %596 = vmatmul.mubr.bf16.gmra.mxu0 %v332_v48 }
 0x141   : > { %v527_v49 = vpop.f32.mrf.mxu0 }
 0x143   : > { %v529_v50 = vpop.f32.mrf.mxu0 }
 0x144   : > { %v4372_v60 = vpop.f32.mrf.mxu1 }
 0x145   : > { %v531_v51 = vpop.f32.mrf.mxu0 }
 0x146   : > { %v5534_v52 = vpack.c.bf16 %v531_v51, %v527_v49  ;;  %v640_v0 = vpop.f32.mrf.mxu1 }
 0x147   : > { %v533_v53 = vpop.f32.mrf.mxu0 }
 0x148   : > { %4390 = vmatprep.mubr.msk.bf16.mxu1 %vm759_vm0, %v5534_v52  ;;  %v5540_v61 = vpack.c.bf16 %v533_v53, %v529_v50  ;;  %v4373_v2 = vpop.f32.mrf.mxu1 }
 0x149   : > { %v537_v54 = vpop.f32.mrf.mxu0  ;;  %v5548_v3 = vpack.c.bf16 %v4373_v2, %v4372_v60 }
 0x14a   : > { %v643_v5 = vpop.f32.mrf.mxu1  ;;  %v767_v9 = vsel %vm759_vm0, %v5540_v61, 0 }
 0x14b   : > { %v539_v55 = vpop.f32.mrf.mxu0  ;;  %v5550_v6 = vpack.c.bf16 %v643_v5, %v640_v0  ;;  %4418 = vmatprep.subr.bf16.mxu0 %v5548_v3 }
 0x14c   : > { %v5553_v8 = vpop.f32.mrf.mxu1  ;;  %4419 = vmatpush3.bf16.msra.mxu0 %v5548_v3 }
 0x14d   : > { %v541_v56 = vpop.f32.mrf.mxu0  ;;  %4420 = vmatprep.subr.bf16.mxu0 %v5550_v6 }
 0x14e   : > { %v5559_v11 = vpop.f32.mrf.mxu1  ;;  %v5564_v16 = vpack.c.bf16 %v541_v56, %v537_v54 }
 0x14f   : > { %v543_v57 = vpop.f32.mrf.mxu0 }
 0x150   : > { %v5538_v58 = vpack.c.bf16 %v543_v57, %v539_v55  ;;  %v4377_v13 = vpop.f32.mrf.mxu1  ;;  %4421 = vmatpush3.bf16.msra.mxu0 %v5550_v6 }
 0x151   : > { %v547_v59 = vpop.f32.mrf.mxu0  ;;  %v5628_v56 = vpack.c.bf16 %v4377_v13, %v5553_v8  ;;  %v4187_v8 = vld [vmem:[#allocation5 + $0x8] sm:$0xff]  }
 0x152   : > { %4674 = vmatprep.subr.msk.bf16.mxu1 %vm759_vm0, %v5538_v58  ;;  %v770_v62 = vsel %vm759_vm0, %v5538_v58, 0  ;;  %v5562_v15 = vpop.f32.mrf.mxu1 }
 0x153   : > { %v549_v63 = vpop.f32.mrf.mxu0  ;;  %4387 = vmatpush3.bf16.xpose.msra.mxu1 %v770_v62  ;;  %6989 = vst [vmem:[#allocation16_spill] sm:$0xff] %v5628_v56 }
 0x154   : > { %4675 = vmatprep.subr.msk.bf16.mxu1 %vm759_vm0, %v5540_v61  ;;  %v4380_v20 = vpop.f32.mrf.mxu1 }
 0x155   : > { %v551_v1 = vpop.f32.mrf.mxu0 }
 0x156   : > { %v5568_v18 = vpack.c.bf16 %v551_v1, %v547_v59  ;;  %v672_v24 = vpop.f32.mrf.mxu1 }
 0x157   : > { %v553_v4 = vpop.f32.mrf.mxu0 }
 0x158   : > { %v5570_v21 = vpack.c.bf16 %v553_v4, %v549_v63  ;;  %v4381_v26 = vpop.f32.mrf.mxu1  ;;  %v5639_v63 = vpack.c.bf16 %v5562_v15, %v5559_v11  ;;  %v4161_v11 = vunpack.c.l.bf16 %v4187_v8 }
 0x159   : > { %v557_v7 = vpop.f32.mrf.mxu0  ;;  %v5582_v27 = vpack.c.bf16 %v4381_v26, %v4380_v20 }
 0x15a   : > { %v675_v29 = vpop.f32.mrf.mxu1  ;;  %v828_v32 = vsel %vm759_vm0, %v5570_v21, 0  ;;  %6990 = vst [vmem:[#allocation17_spill] sm:$0xff] %v5639_v63 }
 0x15b   : > { %v559_v10 = vpop.f32.mrf.mxu0  ;;  %4389 = vmatpush3.bf16.xpose.msra.mxu1 %v767_v9  ;;  %6988 = vst [vmem:[#allocation15_spill] sm:$0xff] %v5582_v27  ;;  %v5584_v30 = vpack.c.bf16 %v675_v29, %v672_v24  ;;  %4434 = vmatprep.subr.bf16.mxu0 %v5582_v27  ;;  %v4156_v9 = vld [vmem:[#allocation5] sm:$0xff]  }
 0x15c   : > { %v4384_v59 = vpop.f32.mrf.mxu1  ;;  %v4157_v13 = vunpack.c.l.bf16 %v4156_v9  ;;  %v4158_v24 = vunpack.c.h.bf16 %v4156_v9 }
 0x15d   : > { %v561_v12 = vpop.f32.mrf.mxu0 }
 0x15e   : > { %v5589_v36 = vpack.c.bf16 %v561_v12, %v557_v7  ;;  %v5633_v60 = vpop.f32.mrf.mxu1 }
 0x15f   : > { %v563_v14 = vpop.f32.mrf.mxu0 }
 0x160   : > { %v5566_v17 = vpack.c.bf16 %v563_v14, %v559_v10  ;;  %v4385_v0 = vpop.f32.mrf.mxu1 }
 0x161   : > { %v567_v19 = vpop.f32.mrf.mxu0  ;;  %v5645_v1 = vpack.c.bf16 %v4385_v0, %v4384_v59 }
 0x162   : > { %4391 = vmatmul.mubr.msk.bf16.vlgmr.msra.gmra.mxu1 %vm759_vm0, %v5564_v16  ;;  %4676 = vmatprep.subr.msk.bf16.mxu1 %vm759_vm0, %v5566_v17  ;;  %v831_v22 = vsel %vm759_vm0, %v5566_v17, 0  ;;  %v5649_v2 = vpop.f32.mrf.mxu1 }
 0x163   : > { %v569_v23 = vpop.f32.mrf.mxu0  ;;  %4395 = vmatpush3.bf16.xpose.msra.mxu1 %v831_v22  ;;  %4398 = vmatprep.mubr.msk.bf16.mxu1 %vm759_vm0, %v5568_v18  ;;  %6991 = vst [vmem:[#allocation18_spill] sm:$0xff] %v5645_v1 }
 0x164   : > { %4677 = vmatprep.subr.msk.bf16.mxu1 %vm759_vm0, %v5570_v21 }
 0x165   : > { %v571_v25 = vpop.f32.mrf.mxu0 }
 0x166   : > { %v5593_v38 = vpack.c.bf16 %v571_v25, %v567_v19  ;;  %v4162_v19 = vunpack.c.h.bf16 %v4187_v8 }
 0x167   : > { %v573_v28 = vpop.f32.mrf.mxu0 }
 0x168   : > { %v5595_v40 = vpack.c.bf16 %v573_v28, %v569_v23 }
 0x169   : > { %v577_v31 = vpop.f32.mrf.mxu0 }
 0x16a   : > { %v889_v46 = vsel %vm759_vm0, %v5595_v40, 0 }
 0x16b   : > { %v579_v33 = vpop.f32.mrf.mxu0  ;;  %4397 = vmatpush3.bf16.xpose.msra.mxu1 %v828_v32 }
 0x16d   : > { %v581_v34 = vpop.f32.mrf.mxu0 }
 0x16e   : > { %v5609_v50 = vpack.c.bf16 %v581_v34, %v577_v31 }
 0x16f   : > { %v583_v35 = vpop.f32.mrf.mxu0 }
 0x170   : > { %v5591_v37 = vpack.c.bf16 %v583_v35, %v579_v33 }
 0x171   : > { %v587_v39 = vpop.f32.mrf.mxu0 }
 0x172   : > { %4399 = vmatmul.mubr.msk.bf16.vlgmr.msra.gmra.mxu1 %vm759_vm0, %v5589_v36  ;;  %4678 = vmatprep.subr.msk.bf16.mxu1 %vm759_vm0, %v5591_v37  ;;  %v892_v41 = vsel %vm759_vm0, %v5591_v37, 0 }
 0x173   : > { %v589_v42 = vpop.f32.mrf.mxu0  ;;  %4403 = vmatpush3.bf16.xpose.msra.mxu1 %v892_v41  ;;  %4406 = vmatprep.mubr.msk.bf16.mxu1 %vm759_vm0, %v5593_v38 }
 0x174   : > { %4679 = vmatprep.subr.msk.bf16.mxu1 %vm759_vm0, %v5595_v40 }
 0x175   : > { %v591_v43 = vpop.f32.mrf.mxu0 }
 0x176   : > { %v5613_v53 = vpack.c.bf16 %v591_v43, %v587_v39 }
 0x177   : > { %v593_v44 = vpop.f32.mrf.mxu0 }
 0x178   : > { %v5615_v54 = vpack.c.bf16 %v593_v44, %v589_v42 }
 0x179   : > { %v597_v45 = vpop.f32.mrf.mxu0 }
 0x17a   : > { %v950_v57 = vsel %vm759_vm0, %v5615_v54, 0 }
 0x17b   : > { %v599_v47 = vpop.f32.mrf.mxu0  ;;  %4405 = vmatpush3.bf16.xpose.msra.mxu1 %v889_v46 }
 0x17d   : > { %v601_v48 = vpop.f32.mrf.mxu0 }
 0x17e   : > { %v5635_v62 = vpack.c.bf16 %v601_v48, %v597_v45 }
 0x17f   : > { %v603_v49 = vpop.f32.mrf.mxu0 }
 0x180   : > { %v5611_v51 = vpack.c.bf16 %v603_v49, %v599_v47 }
 0x182   : > { %4407 = vmatmul.mubr.msk.bf16.vlgmr.msra.gmra.mxu1 %vm759_vm0, %v5609_v50  ;;  %4680 = vmatprep.subr.msk.bf16.mxu1 %vm759_vm0, %v5611_v51  ;;  %v953_v55 = vsel %vm759_vm0, %v5611_v51, 0 }
 0x183   : > { %4411 = vmatpush3.bf16.xpose.msra.mxu1 %v953_v55  ;;  %4414 = vmatprep.mubr.msk.bf16.mxu1 %vm759_vm0, %v5613_v53 }
 0x184   : > { %4681 = vmatprep.subr.msk.bf16.mxu1 %vm759_vm0, %v5615_v54 }
 0x18b   : > { %4413 = vmatpush3.bf16.xpose.msra.mxu1 %v950_v57 }
 0x18c   : > { %4426 = vmatprep.subr.bf16.mxu1 %v5628_v56 }
 0x192   : > { %4415 = vmatmul.mubr.msk.bf16.vlgmr.msra.gmra.mxu1 %vm759_vm0, %v5635_v62 }
 0x193   : > { %4427 = vmatpush3.bf16.msra.mxu1 %v5628_v56 }
 0x194   : > { %4428 = vmatprep.subr.bf16.mxu1 %v5639_v63 }
 0x197   : > { %4429 = vmatpush3.bf16.msra.mxu1 %v5639_v63 }
 0x198   : > { %4442 = vmatprep.subr.bf16.mxu1 %v5645_v1 }
 0x222   : > { %v4392_v4 = vpop.f32.mrf.mxu1 }
 0x223   : > { %v815_v0 = vadd.f32 %v4392_v4, %v4161_v11 }
 0x224   : > { %v806_v5 = vpop.f32.mrf.mxu1 }
 0x225   : > { %v807_v49 = vadd.f32 %v4157_v13, %v806_v5 }
 0x226   : > { %v4393_v7 = vpop.f32.mrf.mxu1 }
 0x227   : > { %v818_v5 = vadd.f32 %v4393_v7, %v4162_v19 }
 0x228   : > { %v809_v10 = vpop.f32.mrf.mxu1 }
 0x229   : > { %v810_v8 = vadd.f32 %v4158_v24, %v809_v10  ;;  %v1013_v4 = vsel %vm759_vm0, %v818_v5, -inf }
 0x232   : > { %v4400_v12 = vpop.f32.mrf.mxu1 }
 0x233   : > { %v5651_v14 = vadd.f32 %v4400_v12, %v4161_v11  ;;  %v1004_v12 = vsel %vm759_vm0, %v807_v49, -inf }
 0x234   : > { %v867_v15 = vpop.f32.mrf.mxu1 }
 0x235   : > { %v5653_v20 = vadd.f32 %v4157_v13, %v867_v15  ;;  %v1022_v22 = vsel %vm759_vm0, %v5651_v14, -inf }
 0x236   : > { %1023 = vmax.xlane.f32.xlu1 %v1022_v22  ;;  %v4401_v23 = vpop.f32.mrf.mxu1  ;;  %v1007_v22 = vsel %vm759_vm0, %v810_v8, -inf }
 0x237   : > { %v5657_v25 = vadd.f32 %v4401_v23, %v4162_v19  ;;  %v1016_v26 = vsel %vm759_vm0, %v5653_v20, -inf  ;;  %v1010_v23 = vsel %vm759_vm0, %v815_v0, -inf }
 0x238   : > { %v870_v28 = vpop.f32.mrf.mxu1  ;;  %1017 = vmax.xlane.f32.xlu0 %v1016_v26 }
 0x239   : > { %v5661_v29 = vadd.f32 %v4158_v24, %v870_v28  ;;  %v1025_v31 = vsel %vm759_vm0, %v5657_v25, -inf }
 0x23a   : > { %1026 = vmax.xlane.f32.xlu1 %v1025_v31 }
 0x23b   : > { %v1019_v32 = vsel %vm759_vm0, %v5661_v29, -inf }
 0x23c   : > { %1020 = vmax.xlane.f32.xlu0 %v1019_v32 }
 0x242   : > { %v4408_v33 = vpop.f32.mrf.mxu1 }
 0x243   : > { %v937_v26 = vadd.f32 %v4408_v33, %v4161_v11 }
 0x244   : > { %v928_v34 = vpop.f32.mrf.mxu1 }
 0x245   : > { %v5684_v15 = vadd.f32 %v4157_v13, %v928_v34 }
 0x246   : > { %v4409_v35 = vpop.f32.mrf.mxu1 }
 0x247   : > { %v1028_v10 = vsel %vm759_vm0, %v5684_v15, -inf  ;;  %v5691_v31 = vadd.f32 %v4409_v35, %v4162_v19 }
 0x248   : > { %v931_v39 = vpop.f32.mrf.mxu1 }
 0x249   : > { %v932_v28 = vadd.f32 %v4158_v24, %v931_v39  ;;  %v1037_v32 = vsel %vm759_vm0, %v5691_v31, -inf }
 0x24b   : > { %v1031_v7 = vsel %vm759_vm0, %v932_v28, -inf }
 0x252   : > { %v4416_v41 = vpop.f32.mrf.mxu1 }
 0x253   : > { %v5669_v45 = vadd.f32 %v4416_v41, %v4161_v11 }
 0x254   : > { %v989_v42 = vpop.f32.mrf.mxu1 }
 0x255   : > { %v5667_v43 = vadd.f32 %v4157_v13, %v989_v42  ;;  %v1046_v59 = vsel %vm759_vm0, %v5669_v45, -inf  ;;  %v1034_v13 = vsel %vm759_vm0, %v937_v26, -inf }
 0x256   : > { %v4417_v44 = vpop.f32.mrf.mxu1 }
 0x257   : > { %v1040_v46 = vsel %vm759_vm0, %v5667_v43, -inf  ;;  %v5675_v55 = vadd.f32 %v4417_v44, %v4162_v19 }
 0x258   : > { %v992_v47 = vpop.f32.mrf.mxu1  ;;  %1041 = vmax.xlane.f32.xlu0 %v1040_v46 }
 0x259   : > { %v5673_v48 = vadd.f32 %v4158_v24, %v992_v47  ;;  %v1049_v9 = vsel %vm759_vm0, %v5675_v55, -inf }
 0x25b   : > { %v1043_v57 = vsel %vm759_vm0, %v5673_v48, -inf }
 0x25c   : > { %1044 = vmax.xlane.f32.xlu1 %v1043_v57  ;;  %1047 = vmax.xlane.f32.xlu0 %v1046_v59 }
 0x260   : > { %1050 = vmax.xlane.f32.xlu1 %v1049_v9  ;;  %1005 = vmax.xlane.f32.xlu0 %v1004_v12 }
 0x264   : > { %1008 = vmax.xlane.f32.xlu1 %v1007_v22  ;;  %1011 = vmax.xlane.f32.xlu0 %v1010_v23 }
 0x268   : > { %1014 = vmax.xlane.f32.xlu1 %v1013_v4  ;;  %1029 = vmax.xlane.f32.xlu0 %v1028_v10 }
 0x26c   : > { %1032 = vmax.xlane.f32.xlu1 %v1031_v7  ;;  %1035 = vmax.xlane.f32.xlu0 %v1034_v13 }
 0x270   : > { %1038 = vmax.xlane.f32.xlu1 %v1037_v32 }
 0x2bf   : > { %v1024_v24 = vpop.xlane.xlu1 %1023 }
 0x2c0   : > { %v1058_v12 = vsub.f32 %v5651_v14, %v1024_v24 }
 0x2c1   : > { %v1018_v11 = vpop.xlane.xlu0 %1017 }
 0x2c2   : > { %v1080_v63 = vmul.f32 1.442695, %v1058_v12  ;;  %v1056_v1 = vsub.f32 %v5653_v20, %v1018_v11 }
 0x2c3   : > { %v1027_v34 = vpop.xlane.xlu1 %1026 }
 0x2c4   : > { %v1059_v7 = vsub.f32 %v5657_v25, %v1027_v34  ;;  %v1076_v14 = vmul.f32 1.442695, %v1056_v1 }
 0x2c5   : > { %v1021_v33 = vpop.xlane.xlu0 %1020 }
 0x2e1   : > { %v5697_v39 = vpop.xlane.xlu0 %1041 }
 0x2e5   : > { %v1045_v41 = vpop.xlane.xlu1 %1044  ;;  %v1048_v42 = vpop.xlane.xlu0 %1047 }
 0x2e9   : > { %v1051_v19 = vpop.xlane.xlu1 %1050  ;;  %v1006_v35 = vpop.xlane.xlu0 %1005 }
 0x2ea   : > { %v1052_v44 = vsub.f32 %v807_v49, %v1006_v35  ;;  %v1067_v20 = vsub.f32 %v5675_v55, %v1051_v19 }
 0x2ec   : > { %v1068_v22 = vmul.f32 1.442695, %v1052_v44 }
 0x2ed   : > { %v1009_v46 = vpop.xlane.xlu1 %1008  ;;  %v1012_v47 = vpop.xlane.xlu0 %1011 }
 0x2ee   : > { %v1054_v57 = vsub.f32 %v815_v0, %v1012_v47  ;;  %v1053_v59 = vsub.f32 %v810_v8, %v1009_v46  ;;  %v1082_v0 = vmul.f32 1.442695, %v1059_v7  ;;  %v1057_v8 = vsub.f32 %v5661_v29, %v1021_v33 }
 0x2ef   : > { %v1066_v29 = vsub.f32 %v5669_v45, %v1048_v42  ;;  %v1064_v45 = vsub.f32 %v5667_v43, %v5697_v39 }
 0x2f0   : > { %v1072_v9 = vmul.f32 1.442695, %v1054_v57  ;;  %v1070_v13 = vmul.f32 1.442695, %v1053_v59 }
 0x2f1   : > { %v1015_v23 = vpop.xlane.xlu1 %1014  ;;  %v1030_v4 = vpop.xlane.xlu0 %1029  ;;  %v1096_v42 = vmul.f32 1.442695, %v1066_v29  ;;  %v1092_v43 = vmul.f32 1.442695, %v1064_v45 }
 0x2f2   : > { %v1055_v10 = vsub.f32 %v818_v5, %v1015_v23  ;;  %4851 = vpow2.f32 %v1072_v9  ;;  %v1078_v5 = vmul.f32 1.442695, %v1057_v8  ;;  %v1060_v25 = vsub.f32 %v5684_v15, %v1030_v4 }
 0x2f3   : > { %4853 = vpow2.f32 %v1068_v22  ;;  %v1065_v15 = vsub.f32 %v5673_v48, %v1045_v41 }
 0x2f4   : > { %v1074_v32 = vmul.f32 1.442695, %v1055_v10  ;;  %v1084_v33 = vmul.f32 1.442695, %v1060_v25 }
 0x2f5   : > { %v1036_v49 = vpop.xlane.xlu0 %1035  ;;  %v1033_v24 = vpop.xlane.xlu1 %1032  ;;  %v1094_v48 = vmul.f32 1.442695, %v1065_v15 }
 0x2f6   : > { %4855 = vpow2.f32 %v1074_v32  ;;  %v1062_v35 = vsub.f32 %v937_v26, %v1036_v49  ;;  %v1061_v44 = vsub.f32 %v932_v28, %v1033_v24  ;;  %v1098_v28 = vmul.f32 1.442695, %v1067_v20 }
 0x2f7   : > { %4857 = vpow2.f32 %v1070_v13 }
 0x2f8   : > { %4859 = vpow2.f32 %v1080_v63  ;;  %v1088_v34 = vmul.f32 1.442695, %v1062_v35  ;;  %v1086_v11 = vmul.f32 1.442695, %v1061_v44 }
 0x2f9   : > { %4861 = vpow2.f32 %v1082_v0  ;;  %v1039_v47 = vpop.xlane.xlu1 %1038 }
 0x2fa   : > { %4863 = vpow2.f32 %v1076_v14  ;;  %v1063_v41 = vsub.f32 %v5691_v31, %v1039_v47 }
 0x2fb   : > { %4865 = vpow2.f32 %v1078_v5 }
 0x2fc   : > { %4867 = vpow2.f32 %v1088_v34  ;;  %v1090_v23 = vmul.f32 1.442695, %v1063_v41 }
 0x2fd   : > { %4869 = vpow2.f32 %v1086_v11 }
 0x2fe   : > { %4871 = vpow2.f32 %v1084_v33 }
 0x2ff   : > { %v5704_v46 = vpop.eup %4851  ;;  %4873 = vpow2.f32 %v1098_v28 }
 0x300   : > { %v1106_v63 = vsel %vm759_vm0, %v5704_v46, 0.0  ;;  %v5710_v1 = vpop.eup %4853  ;;  %4875 = vpow2.f32 %v1096_v42 }
 0x301   : > { %1107 = vadd.xlane.f32.xlu0 %v1106_v63  ;;  %v1100_v57 = vsel %vm759_vm0, %v5710_v1, 0.0  ;;  %4877 = vpow2.f32 %v1094_v48 }
 0x302   : > { %4879 = vpow2.f32 %v1092_v43 }
 0x303   : > { %v5712_v26 = vpop.eup %4855  ;;  %4881 = vpow2.f32 %v1090_v23 }
 0x304   : > { %v1109_v55 = vsel %vm759_vm0, %v5712_v26, 0.0  ;;  %v5717_v19 = vpop.eup %4857 }
 0x305   : > { %1110 = vadd.xlane.f32.xlu1 %v1109_v55  ;;  %v5723_v59 = vpop.eup %4859  ;;  %1101 = vadd.xlane.f32.xlu0 %v1100_v57  ;;  %v1103_v9 = vsel %vm759_vm0, %v5717_v19, 0.0 }
 0x306   : > { %v5728_v12 = vpop.eup %4861  ;;  %v1118_v39 = vsel %vm759_vm0, %v5723_v59, 0.0 }
 0x307   : > { %v5732_v22 = vpop.eup %4863  ;;  %v1121_v4 = vsel %vm759_vm0, %v5728_v12, 0.0 }
 0x308   : > { %v5736_v31 = vpop.eup %4865  ;;  %v1112_v10 = vsel %vm759_vm0, %v5732_v22, 0.0 }
 0x309   : > { %1104 = vadd.xlane.f32.xlu1 %v1103_v9  ;;  %1119 = vadd.xlane.f32.xlu0 %v1118_v39  ;;  %v5740_v7 = vpop.eup %4867  ;;  %v1115_v13 = vsel %vm759_vm0, %v5736_v31, 0.0 }
 0x30a   : > { %v5744_v32 = vpop.eup %4869  ;;  %v1130_v49 = vsel %vm759_vm0, %v5740_v7, 0.0 }
 0x30b   : > { %v5748_v0 = vpop.eup %4871  ;;  %v1127_v8 = vsel %vm759_vm0, %v5744_v32, 0.0 }
 0x30c   : > { %v5752_v14 = vpop.eup %4873  ;;  %v1124_v24 = vsel %vm759_vm0, %v5748_v0, 0.0 }
 0x30d   : > { %1122 = vadd.xlane.f32.xlu1 %v1121_v4  ;;  %1113 = vadd.xlane.f32.xlu0 %v1112_v10  ;;  %v5756_v35 = vpop.eup %4875  ;;  %v1145_v5 = vsel %vm759_vm0, %v5752_v14, 0.0 }
 0x30e   : > { %v5760_v44 = vpop.eup %4877  ;;  %v1142_v25 = vsel %vm759_vm0, %v5756_v35, 0.0 }
 0x30f   : > { %v5764_v34 = vpop.eup %4879  ;;  %v1139_v20 = vsel %vm759_vm0, %v5760_v44, 0.0 }
 0x310   : > { %v5768_v11 = vpop.eup %4881  ;;  %v1136_v29 = vsel %vm759_vm0, %v5764_v34, 0.0 }
 0x311   : > { %1116 = vadd.xlane.f32.xlu1 %v1115_v13  ;;  %1131 = vadd.xlane.f32.xlu0 %v1130_v49  ;;  %v1133_v33 = vsel %vm759_vm0, %v5768_v11, 0.0 }
 0x315   : > { %1128 = vadd.xlane.f32.xlu1 %v1127_v8  ;;  %1125 = vadd.xlane.f32.xlu0 %v1124_v24 }
 0x319   : > { %1146 = vadd.xlane.f32.xlu1 %v1145_v5  ;;  %1143 = vadd.xlane.f32.xlu0 %v1142_v25 }
 0x31d   : > { %1140 = vadd.xlane.f32.xlu1 %v1139_v20  ;;  %1137 = vadd.xlane.f32.xlu0 %v1136_v29 }
 0x321   : > { %1134 = vadd.xlane.f32.xlu1 %v1133_v33 }
 0x332   : > { %1424 = vrot.lane.b32.xlu1 %v5540_v61, %s5314_s1 }
 0x333   : > { %1426 = vrot.lane.b32.xlu0 %v5538_v58, %s5314_s1 }
 0x336   : > { %1418 = vrot.lane.b32.xlu1 %v5534_v52, %s5314_s1 }
 0x337   : > { %1420 = vrot.lane.b32.xlu0 %v5564_v16, %s5314_s1 }
 0x33a   : > { %1499 = vrot.lane.b32.xlu1 %v5566_v17, %s5314_s1 }
 0x33b   : > { %1572 = vrot.lane.b32.xlu0 %v5591_v37, %s5314_s1 }
 0x33e   : > { %1497 = vrot.lane.b32.xlu1 %v5570_v21, %s5314_s1 }
 0x33f   : > { %1570 = vrot.lane.b32.xlu0 %v5595_v40, %s5314_s1 }
 0x342   : > { %1491 = vrot.lane.b32.xlu1 %v5568_v18, %s5314_s1 }
 0x343   : > { %1493 = vrot.lane.b32.xlu0 %v5589_v36, %s5314_s1 }
 0x346   : > { %1645 = vrot.lane.b32.xlu1 %v5611_v51, %s5314_s1 }
 0x347   : > { %1566 = vrot.lane.b32.xlu0 %v5609_v50, %s5314_s1 }
 0x34a   : > { %1564 = vrot.lane.b32.xlu1 %v5593_v38, %s5314_s1 }
 0x34b   : > { %1637 = vrot.lane.b32.xlu0 %v5613_v53, %s5314_s1 }
 0x34e   : > { %1643 = vrot.lane.b32.xlu1 %v5615_v54, %s5314_s1 }
 0x34f   : > { %1896 = vrot.lane.b32.xlu0 %v5548_v3, %s5314_s1 }
 0x352   : > { %1639 = vrot.lane.b32.xlu1 %v5635_v62, %s5314_s1 }
 0x356   : > { %1894 = vrot.lane.b32.xlu1 %v5550_v6, %s5314_s1 }
 0x35a   : > { %1959 = vrot.lane.b32.xlu1 %v5628_v56, %s5314_s1 }
 0x35e   : > { %2022 = vrot.lane.b32.xlu1 %v5582_v27, %s5314_s1 }
 0x38a   : > { %v1108_v63 = vpop.xlane.xlu0 %1107 }
 0x38e   : > { %v1111_v15 = vpop.xlane.xlu1 %1110  ;;  %v1102_v28 = vpop.xlane.xlu0 %1101 }
 0x38f   : > { %4883 = vrcp.f32 %v1111_v15 }
 0x390   : > { %4885 = vrcp.f32 %v1102_v28 }
 0x391   : > { %4887 = vrcp.f32 %v1108_v63 }
 0x392   : > { %v1105_v55 = vpop.xlane.xlu1 %1104  ;;  %v1120_v45 = vpop.xlane.xlu0 %1119 }
 0x393   : > { %4889 = vrcp.f32 %v1105_v55 }
 0x396   : > { %v1123_v42 = vpop.xlane.xlu1 %1122  ;;  %v1114_v47 = vpop.xlane.xlu0 %1113 }
 0x397   : > { %4891 = vrcp.f32 %v1123_v42 }
 0x398   : > { %4893 = vrcp.f32 %v1114_v47 }
 0x399   : > { %4895 = vrcp.f32 %v1120_v45 }
 0x39a   : > { %v1117_v57 = vpop.xlane.xlu1 %1116  ;;  %v1132_v48 = vpop.xlane.xlu0 %1131 }
 0x39b   : > { %4897 = vrcp.f32 %v1117_v57 }
 0x39c   : > { %v4884_v41 = vpop.eup %4883 }
 0x39d   : > { %v4886_v9 = vpop.eup %4885  ;;  %v1167_v10 = vmul.f32 %v4884_v41, %v5712_v26 }
 0x39e   : > { %v1129_v43 = vpop.xlane.xlu1 %1128  ;;  %v4888_v39 = vpop.eup %4887  ;;  %v1164_v13 = vmul.f32 %v4886_v9, %v5710_v1 }
 0x39f   : > { %4899 = vrcp.f32 %v1129_v43  ;;  %v1126_v23 = vpop.xlane.xlu0 %1125  ;;  %v1166_v8 = vmul.f32 %v4888_v39, %v5704_v46 }
 0x3a0   : > { %v4890_v4 = vpop.eup %4889  ;;  %4901 = vrcp.f32 %v1126_v23 }
 0x3a1   : > { %v1165_v49 = vmul.f32 %v4890_v4, %v5717_v19  ;;  %v1181_v20 = vpack.c.bf16 %v1167_v10, %v1166_v8 }
 0x3a2   : > { %v1147_v24 = vpop.xlane.xlu1 %1146 }
 0x3a3   : > { %v1144_v5 = vpop.xlane.xlu0 %1143  ;;  %v1180_v25 = vpack.c.bf16 %v1165_v49, %v1164_v13  ;;  %4903 = vrcp.f32 %v1147_v24 }
 0x3a4   : > { %v4892_v29 = vpop.eup %4891  ;;  %4905 = vrcp.f32 %v1144_v5 }
 0x3a5   : > { %4422 = vmatprep.mubr.msk.bf16.mxu0 %vm759_vm0, %v1180_v25  ;;  %v4894_v33 = vpop.eup %4893  ;;  %v1171_v46 = vmul.f32 %v4892_v29, %v5728_v12 }
 0x3a6   : > { %v1141_v63 = vpop.xlane.xlu1 %1140  ;;  %4423 = vmatmul.mubr.msk.bf16.vlgmr.msra.gmra.mxu0 %vm759_vm0, %v1181_v20  ;;  %v4896_v26 = vpop.eup %4895  ;;  %v1168_v15 = vmul.f32 %v4894_v33, %v5732_v22  ;;  %v5831_v22 = vpack.c.bf16 %v5649_v2, %v5633_v60 }
 0x3a7   : > { %4907 = vrcp.f32 %v1141_v63  ;;  %4435 = vmatpush3.bf16.msra.mxu0 %v5582_v27  ;;  %v1138_v1 = vpop.xlane.xlu0 %1137  ;;  %v1170_v45 = vmul.f32 %v4896_v26, %v5723_v59 }
 0x3a8   : > { %v4898_v19 = vpop.eup %4897  ;;  %4909 = vrcp.f32 %v1138_v1  ;;  %4436 = vmatprep.subr.bf16.mxu0 %v5584_v30 }
 0x3a9   : > { %4911 = vrcp.f32 %v1132_v48  ;;  %v1169_v28 = vmul.f32 %v4898_v19, %v5736_v31  ;;  %v1183_v41 = vpack.c.bf16 %v1171_v46, %v1170_v45  ;;  %v6992_v48 = vld [vmem:[#allocation18_spill] sm:$0xff] }
 0x3aa   : > { %v1135_v55 = vpop.xlane.xlu1 %1134 }
 0x3ab   : > { %4913 = vrcp.f32 %v1135_v55  ;;  %4437 = vmatpush3.bf16.msra.mxu0 %v5584_v30  ;;  %v1427_v42 = vpop.permute.xlu0 %1426  ;;  %v1182_v47 = vpack.c.bf16 %v1169_v28, %v1168_v15 }
 0x3ac   : > { %v4900_v57 = vpop.eup %4899 }
 0x3ad   : > { %v4902_v9 = vpop.eup %4901  ;;  %4430 = vmatprep.mubr.msk.bf16.mxu1 %vm759_vm0, %v1182_v47  ;;  %v1173_v12 = vmul.f32 %v4900_v57, %v5744_v32 }
 0x3ae   : > { %v1425_v31 = vpop.permute.xlu1 %1424  ;;  %4431 = vmatmul.mubr.msk.bf16.vlgmr.msra.gmra.mxu1 %vm759_vm0, %v1183_v41  ;;  %v1172_v59 = vmul.f32 %v4902_v9, %v5748_v0 }
 0x3af   : > { %4443 = vmatpush3.bf16.msra.mxu1 %v6992_v48  ;;  %v1421_v43 = vpop.permute.xlu0 %1420  ;;  %v1435_v46 = vsel %vm759_vm0, %v1425_v31, 0 }
 0x3b0   : > { %4444 = vmatprep.subr.bf16.mxu1 %v5831_v22  ;;  %v1184_v39 = vpack.c.bf16 %v1173_v12, %v1172_v59  ;;  %v4904_v23 = vpop.eup %4903 }
 0x3b1   : > { %v4906_v4 = vpop.eup %4905  ;;  %v1179_v49 = vmul.f32 %v4904_v23, %v5752_v14 }
 0x3b2   : > { %4438 = vmatprep.mubr.msk.bf16.mxu0 %vm759_vm0, %v1184_v39  ;;  %v1419_v32 = vpop.permute.xlu1 %1418  ;;  %v1178_v13 = vmul.f32 %v4906_v4, %v5756_v35  ;;  %v1438_v35 = vsel %vm759_vm0, %v1427_v42, 0 }
 0x3b3   : > { %4445 = vmatpush3.bf16.msra.mxu1 %v5831_v22  ;;  %v1573_v60 = vpop.permute.xlu0 %1572 }
 0x3b4   : > { %v4908_v2 = vpop.eup %4907  ;;  %4682 = vmatprep.subr.msk.bf16.mxu1 %vm759_vm0, %v1427_v42  ;;  %4686 = vmatprep.subr.msk.bf16.mxu0 %vm759_vm0, %v1573_v60  ;;  %v1187_v33 = vpack.c.bf16 %v1179_v49, %v1178_v13 }
 0x3b5   : > { %v4910_v0 = vpop.eup %4909  ;;  %v1177_v10 = vmul.f32 %v4908_v2, %v5760_v44 }
 0x3b6   : > { %v4912_v8 = vpop.eup %4911  ;;  %v1500_v24 = vpop.permute.xlu1 %1499  ;;  %v1176_v5 = vmul.f32 %v4910_v0, %v5764_v34 }
 0x3b7   : > { %v1571_v25 = vpop.permute.xlu0 %1570  ;;  %v1174_v63 = vmul.f32 %v4912_v8, %v5740_v7  ;;  %v1584_v7 = vsel %vm759_vm0, %v1573_v60, 0  ;;  %v1511_v47 = vsel %vm759_vm0, %v1500_v24, 0 }
 0x3b8   : > { %v4914_v20 = vpop.eup %4913  ;;  %v1186_v29 = vpack.c.bf16 %v1177_v10, %v1176_v5  ;;  %v1581_v28 = vsel %vm759_vm0, %v1571_v25, 0 }
 0x3b9   : > { %v1175_v26 = vmul.f32 %v4914_v20, %v5768_v11 }
 0x3ba   : > { %4446 = vmatprep.mubr.msk.bf16.mxu1 %vm759_vm0, %v1186_v29  ;;  %v1498_v1 = vpop.permute.xlu1 %1497 }
 0x3bb   : > { %4447 = vmatmul.mubr.msk.bf16.vlgmr.msra.gmra.mxu1 %vm759_vm0, %v1187_v33  ;;  %v1494_v14 = vpop.permute.xlu0 %1493  ;;  %v1185_v44 = vpack.c.bf16 %v1175_v26, %v1174_v63  ;;  %v1508_v9 = vsel %vm759_vm0, %v1498_v1, 0 }
 0x3bc   : > { %4451 = vmatpush3.bf16.xpose.msra.mxu1 %v1438_v35  ;;  %4454 = vmatprep.mubr.msk.bf16.mxu1 %vm759_vm0, %v1419_v32 }
 0x3bd   : > { %4683 = vmatprep.subr.msk.bf16.mxu1 %vm759_vm0, %v1425_v31  ;;  %4439 = vmatmul.mubr.msk.bf16.vlgmr.msra.gmra.mxu0 %vm759_vm0, %v1185_v44 }
 0x3be   : > { %4467 = vmatpush3.bf16.xpose.msra.mxu0 %v1584_v7  ;;  %v1492_v34 = vpop.permute.xlu1 %1491 }
 0x3bf   : > { %4687 = vmatprep.subr.msk.bf16.mxu0 %vm759_vm0, %v1571_v25  ;;  %v1567_v11 = vpop.permute.xlu0 %1566 }
 0x3c2   : > { %v1646_v19 = vpop.permute.xlu1 %1645 }
 0x3c3   : > { %v1638_v15 = vpop.permute.xlu0 %1637  ;;  %v1657_v59 = vsel %vm759_vm0, %v1646_v19, 0 }
 0x3c4   : > { %4453 = vmatpush3.bf16.xpose.msra.mxu1 %v1435_v46 }
 0x3c5   : > { %4684 = vmatprep.subr.msk.bf16.mxu1 %vm759_vm0, %v1500_v24 }
 0x3c6   : > { %4469 = vmatpush3.bf16.xpose.msra.mxu0 %v1581_v28  ;;  %v1565_v55 = vpop.permute.xlu1 %1564 }
 0x3c7   : > { %v1897_v45 = vpop.permute.xlu0 %1896  ;;  %4470 = vmatprep.mubr.msk.bf16.mxu0 %vm759_vm0, %v1565_v55 }
 0x3c8   : > { %4482 = vmatprep.subr.bf16.mxu0 %v1897_v45 }
 0x3ca   : > { %v1644_v42 = vpop.permute.xlu1 %1643 }
 0x3cb   : > { %4455 = vmatmul.mubr.msk.bf16.vlgmr.msra.gmra.mxu1 %vm759_vm0, %v1421_v43  ;;  %v1654_v43 = vsel %vm759_vm0, %v1644_v42, 0 }
 0x3cc   : > { %4459 = vmatpush3.bf16.xpose.msra.mxu1 %v1511_v47  ;;  %4462 = vmatprep.mubr.msk.bf16.mxu1 %vm759_vm0, %v1492_v34  ;;  %v4189_v34 = vld [vmem:[#allocation5 + $0x18] sm:$0xff]  }
 0x3cd   : > { %4685 = vmatprep.subr.msk.bf16.mxu1 %vm759_vm0, %v1498_v1  ;;  %4471 = vmatmul.mubr.msk.bf16.vlgmr.msra.gmra.mxu0 %vm759_vm0, %v1567_v11  ;;  %v4169_v46 = vunpack.c.l.bf16 %v4189_v34  ;;  %v4170_v47 = vunpack.c.h.bf16 %v4189_v34 }
 0x3ce   : > { %4483 = vmatpush3.bf16.msra.mxu0 %v1897_v45  ;;  %v1640_v57 = vpop.permute.xlu1 %1639 }
 0x3d2   : > { %v1895_v41 = vpop.permute.xlu1 %1894 }
 0x3d3   : > { %4484 = vmatprep.subr.bf16.mxu0 %v1895_v41 }
 0x3d4   : > { %4461 = vmatpush3.bf16.xpose.msra.mxu1 %v1508_v9  ;;  %4485 = vmatpush3.bf16.msra.mxu0 %v1895_v41 }
 0x3d5   : > { %4688 = vmatprep.subr.msk.bf16.mxu1 %vm759_vm0, %v1646_v19  ;;  %v4188_v19 = vld [vmem:[#allocation5 + $0x10] sm:$0xff]  }
 0x3d6   : > { %v1960_v12 = vpop.permute.xlu1 %1959  ;;  %v4165_v55 = vunpack.c.l.bf16 %v4188_v19 }
 0x3da   : > { %v5866_v31 = vpop.permute.xlu1 %2022 }
 0x3db   : > { %4463 = vmatmul.mubr.msk.bf16.vlgmr.msra.gmra.mxu1 %vm759_vm0, %v1494_v14  ;;  %4498 = vmatprep.subr.bf16.mxu0 %v5866_v31 }
 0x3dc   : > { %4475 = vmatpush3.bf16.xpose.msra.mxu1 %v1657_v59  ;;  %4478 = vmatprep.mubr.msk.bf16.mxu1 %vm759_vm0, %v1638_v15  ;;  %v4166_v59 = vunpack.c.h.bf16 %v4188_v19 }
 0x3dd   : > { %4689 = vmatprep.subr.msk.bf16.mxu1 %vm759_vm0, %v1644_v42 }
 0x3e4   : > { %4477 = vmatpush3.bf16.xpose.msra.mxu1 %v1654_v43 }
 0x3e5   : > { %4490 = vmatprep.subr.bf16.mxu1 %v1960_v12 }
 0x3eb   : > { %4479 = vmatmul.mubr.msk.bf16.vlgmr.msra.gmra.mxu1 %vm759_vm0, %v1640_v57 }
 0x3ec   : > { %4491 = vmatpush3.bf16.msra.mxu1 %v1960_v12 }
 0x466   : > { %v5875_v39 = vpop.f32.mrf.mxu0 }
 0x467   : > { %6993 = vst [vmem:[#allocation18_spill] sm:$0xff] %v5875_v39 }
 0x468   : > { %v5877_v23 = vpop.f32.mrf.mxu0 }
 0x469   : > { %6994 = vst [vmem:[#allocation19_spill] sm:$0xff] %v5877_v23 }
 0x46a   : > { %v5879_v4 = vpop.f32.mrf.mxu0 }
 0x46b   : > { %6995 = vst [vmem:[#allocation20_spill] sm:$0xff] %v5879_v4 }
 0x46c   : > { %v5883_v60 = vpop.f32.mrf.mxu0 }
 0x46d   : > { %6996 = vst [vmem:[#allocation21_spill] sm:$0xff] %v5883_v60 }
 0x46e   : > { %v5887_v0 = vpop.f32.mrf.mxu1 }
 0x46f   : > { %6997 = vst [vmem:[#allocation22_spill] sm:$0xff] %v5887_v0 }
 0x470   : > { %v5889_v10 = vpop.f32.mrf.mxu1 }
 0x471   : > { %6998 = vst [vmem:[#allocation23_spill] sm:$0xff] %v5889_v10 }
 0x472   : > { %v5891_v13 = vpop.f32.mrf.mxu1 }
 0x473   : > { %6999 = vst [vmem:[#allocation24_spill] sm:$0xff] %v5891_v13 }
 0x474   : > { %v5895_v8 = vpop.f32.mrf.mxu1 }
 0x475   : > { %7000 = vst [vmem:[#allocation25_spill] sm:$0xff] %v5895_v8 }
 0x47b   : > { %v5899_v5 = vpop.f32.mrf.mxu1 }
 0x47c   : > { %7001 = vst [vmem:[#allocation26_spill] sm:$0xff] %v5899_v5 }
 0x47d   : > { %v5901_v25 = vpop.f32.mrf.mxu1  ;;  %v5903_v20 = vpop.f32.mrf.mxu0 }
 0x47e   : > { %7002 = vst [vmem:[#allocation27_spill] sm:$0xff] %v5901_v25  ;;  %7003 = vst [vmem:[#allocation28_spill] sm:$0xff] %v5903_v20 }
 0x47f   : > { %v5905_v29 = vpop.f32.mrf.mxu1  ;;  %v5907_v33 = vpop.f32.mrf.mxu0 }
 0x480   : > { %7004 = vst [vmem:[#allocation29_spill] sm:$0xff] %v5905_v29  ;;  %7005 = vst [vmem:[#allocation30_spill] sm:$0xff] %v5907_v33 }
 0x481   : > { %v5911_v26 = vpop.f32.mrf.mxu1  ;;  %v5913_v1 = vpop.f32.mrf.mxu0 }
 0x482   : > { %7006 = vst [vmem:[#allocation31_spill] sm:$0xff] %v5911_v26  ;;  %7007 = vst [vmem:[#allocation32_spill] sm:$0xff] %v5913_v1 }
 0x483   : > { %v5919_v44 = vpop.f32.mrf.mxu0 }
 0x484   : > { %7008 = vst [vmem:[#allocation33_spill] sm:$0xff] %v5919_v44 }
 0x48b   : > { %v4456_v11 = vpop.f32.mrf.mxu1 }
 0x48c   : > { %v5931_v35 = vadd.f32 %v4456_v11, %v4169_v46 }
 0x48d   : > { %v1474_v15 = vpop.f32.mrf.mxu1  ;;  %v4472_v28 = vpop.f32.mrf.mxu0 }
 0x48e   : > { %v5923_v45 = vadd.f32 %v4472_v28, %v4169_v46  ;;  %v5939_v7 = vadd.f32 %v4165_v55, %v1474_v15 }
 0x48f   : > { %v1620_v42 = vpop.f32.mrf.mxu0  ;;  %v4457_v9 = vpop.f32.mrf.mxu1 }
 0x490   : > { %v5925_v57 = vadd.f32 %v4165_v55, %v1620_v42  ;;  %v1738_v41 = vsel %vm759_vm0, %v5923_v45, -inf  ;;  %v1708_v15 = vsel %vm759_vm0, %v5939_v7, -inf }
 0x491   : > { %1739 = vmax.xlane.f32.xlu0 %v1738_v41  ;;  %v4473_v12 = vpop.f32.mrf.mxu0  ;;  %v1477_v42 = vpop.f32.mrf.mxu1 }
 0x492   : > { %v5929_v43 = vadd.f32 %v4473_v12, %v4170_v47  ;;  %v1732_v34 = vsel %vm759_vm0, %v5925_v57, -inf  ;;  %v5941_v41 = vadd.f32 %v4166_v59, %v1477_v42  ;;  %v5947_v12 = vadd.f32 %v4457_v9, %v4170_v47 }
 0x493   : > { %v1623_v63 = vpop.f32.mrf.mxu0 }
 0x494   : > { %v5933_v14 = vadd.f32 %v4166_v59, %v1623_v63  ;;  %v1741_v28 = vsel %vm759_vm0, %v5929_v43, -inf  ;;  %v1714_v63 = vsel %vm759_vm0, %v5931_v35, -inf  ;;  %v1711_v32 = vsel %vm759_vm0, %v5941_v41, -inf }
 0x495   : > { %1742 = vmax.xlane.f32.xlu1 %v1741_v28  ;;  %1733 = vmax.xlane.f32.xlu0 %v1732_v34 }
 0x496   : > { %v1735_v19 = vsel %vm759_vm0, %v5933_v14, -inf }
 0x499   : > { %1736 = vmax.xlane.f32.xlu1 %v1735_v19  ;;  %1715 = vmax.xlane.f32.xlu0 %v1714_v63  ;;  %v1717_v19 = vsel %vm759_vm0, %v5947_v12, -inf }
 0x49b   : > { %v4464_v11 = vpop.f32.mrf.mxu1 }
 0x49c   : > { %v5953_v42 = vadd.f32 %v4464_v11, %v4169_v46 }
 0x49d   : > { %v1547_v28 = vpop.f32.mrf.mxu1  ;;  %1712 = vmax.xlane.f32.xlu1 %v1711_v32  ;;  %1709 = vmax.xlane.f32.xlu0 %v1708_v15 }
 0x49e   : > { %v5963_v24 = vadd.f32 %v4165_v55, %v1547_v28  ;;  %v1726_v32 = vsel %vm759_vm0, %v5953_v42, -inf }
 0x49f   : > { %v4465_v34 = vpop.f32.mrf.mxu1 }
 0x4a0   : > { %v5955_v2 = vadd.f32 %v4465_v34, %v4170_v47  ;;  %v1720_v15 = vsel %vm759_vm0, %v5963_v24, -inf }
 0x4a1   : > { %v1550_v63 = vpop.f32.mrf.mxu1  ;;  %1718 = vmax.xlane.f32.xlu0 %v1717_v19 }
 0x4a2   : > { %v5959_v9 = vadd.f32 %v4166_v59, %v1550_v63  ;;  %v1729_v49 = vsel %vm759_vm0, %v5955_v2, -inf }
 0x4a3   : > { %1730 = vmax.xlane.f32.xlu1 %v1729_v49 }
 0x4a4   : > { %v1723_v11 = vsel %vm759_vm0, %v5959_v9, -inf }
 0x4a5   : > { %1727 = vmax.xlane.f32.xlu0 %v1726_v32 }
 0x4a7   : > { %1724 = vmax.xlane.f32.xlu1 %v1723_v11 }
 0x4a9   : > { %1721 = vmax.xlane.f32.xlu0 %v1720_v15 }
 0x4ab   : > { %v4480_v34 = vpop.f32.mrf.mxu1 }
 0x4ac   : > { %v5971_v19 = vadd.f32 %v4480_v34, %v4169_v46 }
 0x4ad   : > { %v1693_v63 = vpop.f32.mrf.mxu1 }
 0x4ae   : > { %v5973_v5 = vadd.f32 %v4165_v55, %v1693_v63  ;;  %v1750_v49 = vsel %vm759_vm0, %v5971_v19, -inf }
 0x4af   : > { %1751 = vmax.xlane.f32.xlu0 %v1750_v49  ;;  %v4481_v28 = vpop.f32.mrf.mxu1 }
 0x4b0   : > { %v5977_v32 = vadd.f32 %v4481_v28, %v4170_v47  ;;  %v1744_v46 = vsel %vm759_vm0, %v5973_v5, -inf  ;;  %v7009_v47 = vld [vmem:[#allocation17_spill] sm:$0xff] }
 0x4b1   : > { %v1696_v29 = vpop.f32.mrf.mxu1 }
 0x4b2   : > { %v5979_v25 = vadd.f32 %v4166_v59, %v1696_v29  ;;  %v1753_v11 = vsel %vm759_vm0, %v5977_v32, -inf }
 0x4b3   : > { %1754 = vmax.xlane.f32.xlu1 %v1753_v11  ;;  %1745 = vmax.xlane.f32.xlu0 %v1744_v46 }
 0x4b4   : > { %v1747_v55 = vsel %vm759_vm0, %v5979_v25, -inf }
 0x4b7   : > { %1748 = vmax.xlane.f32.xlu1 %v1747_v55 }
 0x4c8   : > { %2020 = vrot.lane.b32.xlu1 %v5584_v30, %s5314_s1 }
 0x4c9   : > { %1957 = vrot.lane.b32.xlu0 %v7009_v47, %s5314_s1 }
 0x4cc   : > { %2158 = vrot.lane.b32.xlu1 %v5538_v58, %s5315_s26 }
 0x4cd   : > { %2085 = vrot.lane.b32.xlu0 %v6992_v48, %s5314_s1 }
 0x4d0   : > { %2156 = vrot.lane.b32.xlu1 %v5540_v61, %s5315_s26 }
 0x4d1   : > { %2083 = vrot.lane.b32.xlu0 %v5831_v22, %s5314_s1 }
 0x51a   : > { %v1740_v29 = vpop.xlane.xlu0 %1739 }
 0x51b   : > { %v1766_v59 = vsub.f32 %v5923_v45, %v1740_v29 }
 0x51d   : > { %v1792_v15 = vmul.f32 1.442695, %v1766_v59 }
 0x51e   : > { %v1743_v34 = vpop.xlane.xlu1 %1742  ;;  %v1734_v63 = vpop.xlane.xlu0 %1733 }
 0x51f   : > { %4915 = vpow2.f32 %v1792_v15  ;;  %v1767_v49 = vsub.f32 %v5929_v43, %v1743_v34  ;;  %v1764_v28 = vsub.f32 %v5925_v57, %v1734_v63 }
 0x521   : > { %v1794_v11 = vmul.f32 1.442695, %v1767_v49  ;;  %v1788_v46 = vmul.f32 1.442695, %v1764_v28 }
 0x522   : > { %v1737_v55 = vpop.xlane.xlu1 %1736  ;;  %v1716_v26 = vpop.xlane.xlu0 %1715 }
 0x523   : > { %4917 = vpow2.f32 %v1794_v11  ;;  %v1765_v20 = vsub.f32 %v5933_v14, %v1737_v55  ;;  %v1758_v1 = vsub.f32 %v5931_v35, %v1716_v26 }
 0x524   : > { %4919 = vpow2.f32 %v1788_v46 }
 0x525   : > { %v1790_v33 = vmul.f32 1.442695, %v1765_v20  ;;  %v1776_v45 = vmul.f32 1.442695, %v1758_v1 }
 0x526   : > { %v1713_v29 = vpop.xlane.xlu1 %1712  ;;  %v1710_v59 = vpop.xlane.xlu0 %1709 }
 0x527   : > { %4921 = vpow2.f32 %v1790_v33  ;;  %v1756_v15 = vsub.f32 %v5939_v7, %v1710_v59  ;;  %v1757_v57 = vsub.f32 %v5941_v41, %v1713_v29 }
 0x528   : > { %4923 = vpow2.f32 %v1776_v45 }
 0x529   : > { %v1772_v43 = vmul.f32 1.442695, %v1756_v15  ;;  %v1774_v14 = vmul.f32 1.442695, %v1757_v57 }
 0x52a   : > { %v1719_v34 = vpop.xlane.xlu0 %1718 }
 0x52b   : > { %v1759_v63 = vsub.f32 %v5947_v12, %v1719_v34  ;;  %4925 = vpow2.f32 %v1772_v43 }
 0x52c   : > { %v6007_v49 = vpop.eup %4915  ;;  %v1731_v26 = vpop.xlane.xlu1 %1730 }
 0x52d   : > { %v1778_v35 = vmul.f32 1.442695, %v1759_v63  ;;  %v1763_v20 = vsub.f32 %v5955_v2, %v1731_v26  ;;  %v1834_v33 = vsel %vm759_vm0, %v6007_v49, 0.0 }
 0x52e   : > { %1835 = vadd.xlane.f32.xlu0 %v1834_v33  ;;  %v1728_v1 = vpop.xlane.xlu0 %1727 }
 0x52f   : > { %4927 = vpow2.f32 %v1778_v35  ;;  %v1762_v7 = vsub.f32 %v5953_v42, %v1728_v1  ;;  %v1786_v11 = vmul.f32 1.442695, %v1763_v20 }
 0x530   : > { %v6013_v41 = vpop.eup %4917  ;;  %4929 = vpow2.f32 %v1774_v14  ;;  %v1725_v12 = vpop.xlane.xlu1 %1724 }
 0x531   : > { %v6015_v28 = vpop.eup %4919  ;;  %v1784_v46 = vmul.f32 1.442695, %v1762_v7  ;;  %v1761_v55 = vsub.f32 %v5959_v9, %v1725_v12  ;;  %v1837_v2 = vsel %vm759_vm0, %v6013_v41, 0.0 }
 0x532   : > { %1838 = vadd.xlane.f32.xlu1 %v1837_v2  ;;  %v1828_v45 = vsel %vm759_vm0, %v6015_v28, 0.0  ;;  %v1722_v29 = vpop.xlane.xlu0 %1721 }
 0x533   : > { %4931 = vpow2.f32 %v1784_v46  ;;  %1829 = vadd.xlane.f32.xlu0 %v1828_v45  ;;  %v1760_v42 = vsub.f32 %v5963_v24, %v1722_v29  ;;  %v1782_v57 = vmul.f32 1.442695, %v1761_v55 }
 0x534   : > { %v6023_v59 = vpop.eup %4921  ;;  %4933 = vpow2.f32 %v1786_v11 }
 0x535   : > { %v6025_v15 = vpop.eup %4923  ;;  %v1780_v43 = vmul.f32 1.442695, %v1760_v42  ;;  %v1831_v9 = vsel %vm759_vm0, %v6023_v59, 0.0 }
 0x536   : > { %1832 = vadd.xlane.f32.xlu1 %v1831_v9  ;;  %v1810_v34 = vsel %vm759_vm0, %v6025_v15, 0.0 }
 0x537   : > { %4935 = vpow2.f32 %v1780_v43  ;;  %1811 = vadd.xlane.f32.xlu0 %v1810_v34 }
 0x538   : > { %v1752_v63 = vpop.xlane.xlu0 %1751  ;;  %v6031_v14 = vpop.eup %4925  ;;  %4937 = vpow2.f32 %v1782_v57 }
 0x539   : > { %v1770_v24 = vsub.f32 %v5971_v19, %v1752_v63  ;;  %v1804_v26 = vsel %vm759_vm0, %v6031_v14, 0.0 }
 0x53b   : > { %v1800_v35 = vmul.f32 1.442695, %v1770_v24  ;;  %1805 = vadd.xlane.f32.xlu0 %v1804_v26 }
 0x53c   : > { %v6036_v20 = vpop.eup %4927  ;;  %v1755_v33 = vpop.xlane.xlu1 %1754 }
 0x53d   : > { %v1746_v1 = vpop.xlane.xlu0 %1745  ;;  %v6038_v7 = vpop.eup %4929  ;;  %4939 = vpow2.f32 %v1800_v35  ;;  %v1771_v12 = vsub.f32 %v5977_v32, %v1755_v33  ;;  %v1813_v46 = vsel %vm759_vm0, %v6036_v20, 0.0 }
 0x53e   : > { %v1768_v11 = vsub.f32 %v5973_v5, %v1746_v1  ;;  %1814 = vadd.xlane.f32.xlu1 %v1813_v46  ;;  %v1807_v57 = vsel %vm759_vm0, %v6038_v7, 0.0 }
 0x53f   : > { %v1802_v19 = vmul.f32 1.442695, %v1771_v12 }
 0x540   : > { %v1796_v55 = vmul.f32 1.442695, %v1768_v11  ;;  %v6044_v2 = vpop.eup %4931  ;;  %v1749_v45 = vpop.xlane.xlu1 %1748 }
 0x541   : > { %v1958_v29 = vpop.permute.xlu0 %1957  ;;  %4941 = vpow2.f32 %v1802_v19  ;;  %v1769_v42 = vsub.f32 %v5979_v25, %v1749_v45  ;;  %v1822_v5 = vsel %vm759_vm0, %v6044_v2, 0.0  ;;  %v6051_v32 = vpop.eup %4933 }
 0x542   : > { %4492 = vmatprep.subr.bf16.mxu1 %v1958_v29  ;;  %4943 = vpow2.f32 %v1796_v55  ;;  %1808 = vadd.xlane.f32.xlu1 %v1807_v57  ;;  %v1825_v25 = vsel %vm759_vm0, %v6051_v32, 0.0 }
 0x543   : > { %4493 = vmatpush3.bf16.msra.mxu1 %v1958_v29  ;;  %v1798_v43 = vmul.f32 1.442695, %v1769_v42  ;;  %1823 = vadd.xlane.f32.xlu0 %v1822_v5 }
 0x544   : > { %v6053_v9 = vpop.eup %4935  ;;  %v6118_v45 = vpop.permute.xlu1 %2020 }
 0x545   : > { %v6055_v34 = vpop.permute.xlu0 %2085  ;;  %4945 = vpow2.f32 %v1798_v43  ;;  %v1816_v63 = vsel %vm759_vm0, %v6053_v9, 0.0  ;;  %v6062_v24 = vpop.eup %4937 }
 0x546   : > { %4506 = vmatprep.subr.bf16.mxu1 %v6055_v34  ;;  %1826 = vadd.xlane.f32.xlu1 %v1825_v25  ;;  %v1819_v26 = vsel %vm759_vm0, %v6062_v24, 0.0 }
 0x547   : > { %1817 = vadd.xlane.f32.xlu0 %v1816_v63 }
 0x548   : > { %v6120_v29 = vpop.permute.xlu1 %2158 }
 0x549   : > { %v6122_v42 = vpop.permute.xlu0 %2083 }
 0x54a   : > { %v6066_v35 = vpop.eup %4939  ;;  %1820 = vadd.xlane.f32.xlu1 %v1819_v26 }
 0x54b   : > { %v1846_v33 = vsel %vm759_vm0, %v6066_v35, 0.0 }
 0x54c   : > { %1847 = vadd.xlane.f32.xlu0 %v1846_v33  ;;  %v6124_v5 = vpop.permute.xlu1 %2156 }
 0x54e   : > { %v6070_v1 = vpop.eup %4941 }
 0x54f   : > { %v6072_v12 = vpop.eup %4943  ;;  %v1849_v11 = vsel %vm759_vm0, %v6070_v1, 0.0 }
 0x550   : > { %1850 = vadd.xlane.f32.xlu1 %v1849_v11  ;;  %v1840_v46 = vsel %vm759_vm0, %v6072_v12, 0.0 }
 0x551   : > { %1841 = vadd.xlane.f32.xlu0 %v1840_v46 }
 0x552   : > { %v6078_v19 = vpop.eup %4945 }
 0x553   : > { %v1843_v55 = vsel %vm759_vm0, %v6078_v19, 0.0 }
 0x554   : > { %1844 = vadd.xlane.f32.xlu1 %v1843_v55 }
 0x565   : > { %2152 = vrot.lane.b32.xlu1 %v5534_v52, %s5315_s26 }
 0x567   : > { %2227 = vrot.lane.b32.xlu0 %v5566_v17, %s5315_s26 }
 0x569   : > { %2296 = vrot.lane.b32.xlu1 %v5591_v37, %s5315_s26 }
 0x56b   : > { %2225 = vrot.lane.b32.xlu0 %v5570_v21, %s5315_s26 }
 0x56d   : > { %2221 = vrot.lane.b32.xlu1 %v5568_v18, %s5315_s26 }
 0x56f   : > { %2154 = vrot.lane.b32.xlu0 %v5564_v16, %s5315_s26 }
 0x571   : > { %2365 = vrot.lane.b32.xlu1 %v5611_v51, %s5315_s26 }
 0x573   : > { %2294 = vrot.lane.b32.xlu0 %v5595_v40, %s5315_s26 }
 0x575   : > { %2290 = vrot.lane.b32.xlu1 %v5593_v38, %s5315_s26 }
 0x577   : > { %2223 = vrot.lane.b32.xlu0 %v5589_v36, %s5315_s26 }
 0x579   : > { %2363 = vrot.lane.b32.xlu1 %v5615_v54, %s5315_s26 }
 0x57b   : > { %2292 = vrot.lane.b32.xlu0 %v5609_v50, %s5315_s26 }
 0x57d   : > { %2361 = vrot.lane.b32.xlu1 %v5635_v62, %s5315_s26 }
 0x57f   : > { %2359 = vrot.lane.b32.xlu0 %v5613_v53, %s5315_s26 }
 0x581   : > { %2612 = vrot.lane.b32.xlu1 %v5550_v6, %s5315_s26 }
 0x583   : > { %2614 = vrot.lane.b32.xlu0 %v5548_v3, %s5315_s26 }
 0x585   : > { %2675 = vrot.lane.b32.xlu1 %v5628_v56, %s5315_s26 }
 0x589   : > { %2736 = vrot.lane.b32.xlu1 %v5582_v27, %s5315_s26 }
 0x5b7   : > { %v1836_v57 = vpop.xlane.xlu0 %1835 }
 0x5bb   : > { %v1839_v25 = vpop.xlane.xlu1 %1838 }
 0x5bc   : > { %v1830_v43 = vpop.xlane.xlu0 %1829 }
 0x5bd   : > { %4947 = vrcp.f32 %v1830_v43 }
 0x5bf   : > { %v1833_v26 = vpop.xlane.xlu1 %1832 }
 0x5c0   : > { %v1812_v63 = vpop.xlane.xlu0 %1811  ;;  %4949 = vrcp.f32 %v1833_v26 }
 0x5c4   : > { %v1806_v33 = vpop.xlane.xlu0 %1805 }
 0x5c7   : > { %v1815_v11 = vpop.xlane.xlu1 %1814 }
 0x5c8   : > { %4951 = vrcp.f32 %v1815_v11 }
 0x5c9   : > { %4953 = vrcp.f32 %v1806_v33 }
 0x5ca   : > { %4955 = vrcp.f32 %v1812_v63  ;;  %v4948_v23 = vpop.eup %4947 }
 0x5cb   : > { %v1809_v46 = vpop.xlane.xlu1 %1808  ;;  %v1876_v10 = vmul.f32 %v4948_v23, %v6015_v28 }
 0x5cc   : > { %4957 = vrcp.f32 %v1809_v46  ;;  %v1824_v55 = vpop.xlane.xlu0 %1823 }
 0x5cd   : > { %4959 = vrcp.f32 %v1836_v57  ;;  %v4950_v43 = vpop.eup %4949 }
 0x5ce   : > { %4961 = vrcp.f32 %v1839_v25 }
 0x5cf   : > { %v1827_v44 = vpop.xlane.xlu1 %1826 }
 0x5d0   : > { %v1818_v39 = vpop.xlane.xlu0 %1817  ;;  %4963 = vrcp.f32 %v1827_v44 }
 0x5d1   : > { %4965 = vrcp.f32 %v1818_v39  ;;  %v1877_v39 = vmul.f32 %v4950_v43, %v6023_v59 }
 0x5d2   : > { %4967 = vrcp.f32 %v1824_v55 }
 0x5d3   : > { %v1821_v4 = vpop.xlane.xlu1 %1820 }
 0x5d4   : > { %4969 = vrcp.f32 %v1821_v4 }
 0x5d5   : > { %v1848_v60 = vpop.xlane.xlu0 %1847  ;;  %v4952_v0 = vpop.eup %4951 }
 0x5d6   : > { %v4954_v26 = vpop.eup %4953  ;;  %v1871_v46 = vmul.f32 %v4952_v0, %v6036_v20 }
 0x5d7   : > { %v4956_v11 = vpop.eup %4955  ;;  %v1868_v57 = vmul.f32 %v4954_v26, %v6031_v14  ;;  %v1888_v14 = vpack.c.bf16 %v1877_v39, %v1876_v10 }
 0x5d8   : > { %v1870_v44 = vmul.f32 %v4956_v11, %v6025_v15 }
 0x5d9   : > { %v4958_v33 = vpop.eup %4957  ;;  %v1851_v63 = vpop.xlane.xlu1 %1850 }
 0x5da   : > { %v1842_v13 = vpop.xlane.xlu0 %1841  ;;  %v1869_v25 = vmul.f32 %v4958_v33, %v6038_v7  ;;  %4971 = vrcp.f32 %v1851_v63  ;;  %v4960_v4 = vpop.eup %4959  ;;  %v1885_v56 = vpack.c.bf16 %v1871_v46, %v1870_v44  ;;  %v2167_v44 = vsel %vm759_vm0, %v6124_v5, 0 }
 0x5db   : > { %4973 = vrcp.f32 %v1842_v13  ;;  %v4962_v8 = vpop.eup %4961  ;;  %v1878_v43 = vmul.f32 %v4960_v4, %v6007_v49 }
 0x5dc   : > { %v1884_v55 = vpack.c.bf16 %v1869_v25, %v1868_v57  ;;  %4975 = vrcp.f32 %v1848_v60 }
 0x5dd   : > { %v1845_v27 = vpop.xlane.xlu1 %1844  ;;  %v4964_v0 = vpop.eup %4963 }
 0x5de   : > { %4977 = vrcp.f32 %v1845_v27  ;;  %v2228_v20 = vpop.permute.xlu0 %2227  ;;  %4486 = vmatprep.mubr.msk.bf16.mxu0 %vm759_vm0, %v1884_v55  ;;  %v4966_v7 = vpop.eup %4965  ;;  %v1875_v60 = vmul.f32 %v4964_v0, %v6051_v32  ;;  %v1879_v27 = vmul.f32 %v4962_v8, %v6013_v41  ;;  %v2170_v8 = vsel %vm759_vm0, %v6120_v29, 0 }
 0x5df   : > { %4487 = vmatmul.mubr.msk.bf16.vlgmr.msra.gmra.mxu0 %vm759_vm0, %v1885_v56  ;;  %v4968_v59 = vpop.eup %4967  ;;  %v1872_v15 = vmul.f32 %v4966_v7, %v6053_v9 }
 0x5e0   : > { %4499 = vmatpush3.bf16.msra.mxu0 %v5866_v31  ;;  %4502 = vmatprep.mubr.msk.bf16.mxu0 %vm759_vm0, %v1888_v14  ;;  %v1874_v56 = vmul.f32 %v4968_v59, %v6044_v2  ;;  %v1889_v32 = vpack.c.bf16 %v1879_v27, %v1878_v43 }
 0x5e1   : > { %v4970_v13 = vpop.eup %4969  ;;  %v2153_v23 = vpop.permute.xlu1 %2152  ;;  %4500 = vmatprep.subr.bf16.mxu0 %v6118_v45 }
 0x5e2   : > { %v2226_v28 = vpop.permute.xlu0 %2225  ;;  %v1873_v10 = vmul.f32 %v4970_v13, %v6062_v24  ;;  %v1887_v11 = vpack.c.bf16 %v1875_v60, %v1874_v56 }
 0x5e4   : > { %4501 = vmatpush3.bf16.msra.mxu0 %v6118_v45  ;;  %v1886_v31 = vpack.c.bf16 %v1873_v10, %v1872_v15 }
 0x5e5   : > { %v2297_v26 = vpop.permute.xlu1 %2296  ;;  %4690 = vmatprep.subr.msk.bf16.mxu0 %vm759_vm0, %v6120_v29 }
 0x5e6   : > { %v2155_v33 = vpop.permute.xlu0 %2154  ;;  %4494 = vmatprep.mubr.msk.bf16.mxu1 %vm759_vm0, %v1886_v31 }
 0x5e7   : > { %4495 = vmatmul.mubr.msk.bf16.vlgmr.msra.gmra.mxu1 %vm759_vm0, %v1887_v11  ;;  %4503 = vmatmul.mubr.msk.bf16.vlgmr.msra.gmra.mxu0 %vm759_vm0, %v1889_v32  ;;  %v4972_v49 = vpop.eup %4971 }
 0x5e8   : > { %4507 = vmatpush3.bf16.msra.mxu1 %v6055_v34  ;;  %4515 = vmatpush3.bf16.xpose.msra.mxu0 %v2170_v8  ;;  %v4974_v41 = vpop.eup %4973  ;;  %v1883_v63 = vmul.f32 %v4972_v49, %v6070_v1 }
 0x5e9   : > { %v2222_v2 = vpop.permute.xlu1 %2221  ;;  %4508 = vmatprep.subr.bf16.mxu1 %v6122_v42  ;;  %4691 = vmatprep.subr.msk.bf16.mxu0 %vm759_vm0, %v6124_v5  ;;  %v4976_v9 = vpop.eup %4975  ;;  %v1880_v29 = vmul.f32 %v4974_v41, %v6072_v12  ;;  %v2239_v12 = vsel %vm759_vm0, %v2228_v20, 0  ;;  %v2236_v5 = vsel %vm759_vm0, %v2226_v28, 0 }
 0x5ea   : > { %4518 = vmatprep.mubr.msk.bf16.mxu0 %vm759_vm0, %v2153_v23  ;;  %v2295_v24 = vpop.permute.xlu0 %2294  ;;  %v1882_v57 = vmul.f32 %v4976_v9, %v6066_v35 }
 0x5eb   : > { %v4978_v45 = vpop.eup %4977 }
 0x5ec   : > { %4509 = vmatpush3.bf16.msra.mxu1 %v6122_v42  ;;  %v1881_v34 = vmul.f32 %v4978_v45, %v6078_v19  ;;  %v1891_v4 = vpack.c.bf16 %v1883_v63, %v1882_v57  ;;  %v2308_v42 = vsel %vm759_vm0, %v2297_v26, 0 }
 0x5ed   : > { %v2366_v46 = vpop.permute.xlu1 %2365  ;;  %4692 = vmatprep.subr.msk.bf16.mxu1 %vm759_vm0, %v2228_v20  ;;  %v2305_v20 = vsel %vm759_vm0, %v2295_v24, 0 }
 0x5ee   : > { %v2224_v25 = vpop.permute.xlu0 %2223  ;;  %v1890_v39 = vpack.c.bf16 %v1881_v34, %v1880_v29  ;;  %v2377_v59 = vsel %vm759_vm0, %v2366_v46, 0  ;;  %v4191_v29 = vld [vmem:[#allocation5 + $0x28] sm:$0xff]  }
 0x5ef   : > { %v4177_v57 = vunpack.c.l.bf16 %v4191_v29 }
 0x5f0   : > { %4510 = vmatprep.mubr.msk.bf16.mxu1 %vm759_vm0, %v1890_v39  ;;  %4517 = vmatpush3.bf16.xpose.msra.mxu0 %v2167_v44 }
 0x5f1   : > { %v2291_v1 = vpop.permute.xlu1 %2290  ;;  %4511 = vmatmul.mubr.msk.bf16.vlgmr.msra.gmra.mxu1 %vm759_vm0, %v1891_v4  ;;  %4694 = vmatprep.subr.msk.bf16.mxu0 %vm759_vm0, %v2297_v26 }
 0x5f2   : > { %4523 = vmatpush3.bf16.xpose.msra.mxu1 %v2239_v12  ;;  %4526 = vmatprep.mubr.msk.bf16.mxu1 %vm759_vm0, %v2222_v2  ;;  %v2293_v35 = vpop.permute.xlu0 %2292 }
 0x5f3   : > { %4693 = vmatprep.subr.msk.bf16.mxu1 %vm759_vm0, %v2226_v28 }
 0x5f5   : > { %v2364_v19 = vpop.permute.xlu1 %2363 }
 0x5f6   : > { %v2360_v55 = vpop.permute.xlu0 %2359  ;;  %v2374_v23 = vsel %vm759_vm0, %v2364_v19, 0 }
 0x5f7   : > { %4519 = vmatmul.mubr.msk.bf16.vlgmr.msra.gmra.mxu0 %vm759_vm0, %v2155_v33 }
 0x5f8   : > { %4531 = vmatpush3.bf16.xpose.msra.mxu0 %v2308_v42  ;;  %4534 = vmatprep.mubr.msk.bf16.mxu0 %vm759_vm0, %v2291_v1 }
 0x5f9   : > { %4695 = vmatprep.subr.msk.bf16.mxu0 %vm759_vm0, %v2295_v24  ;;  %v2362_v0 = vpop.permute.xlu1 %2361 }
 0x5fa   : > { %4525 = vmatpush3.bf16.xpose.msra.mxu1 %v2236_v5  ;;  %v2615_v14 = vpop.permute.xlu0 %2614 }
 0x5fb   : > { %4696 = vmatprep.subr.msk.bf16.mxu1 %vm759_vm0, %v2366_v46  ;;  %v4190_v46 = vld [vmem:[#allocation5 + $0x20] sm:$0xff]  }
 0x5fc   : > { %v4173_v44 = vunpack.c.l.bf16 %v4190_v46 }
 0x5fd   : > { %v2613_v7 = vpop.permute.xlu1 %2612 }
 0x600   : > { %4533 = vmatpush3.bf16.xpose.msra.mxu0 %v2305_v20 }
 0x601   : > { %4527 = vmatmul.mubr.msk.bf16.vlgmr.msra.gmra.mxu1 %vm759_vm0, %v2224_v25  ;;  %4546 = vmatprep.subr.bf16.mxu0 %v2615_v14  ;;  %v2676_v13 = vpop.permute.xlu1 %2675 }
 0x602   : > { %4539 = vmatpush3.bf16.xpose.msra.mxu1 %v2377_v59  ;;  %4542 = vmatprep.mubr.msk.bf16.mxu1 %vm759_vm0, %v2360_v55  ;;  %v4178_v55 = vunpack.c.h.bf16 %v4191_v29 }
 0x603   : > { %4697 = vmatprep.subr.msk.bf16.mxu1 %vm759_vm0, %v2364_v19 }
 0x605   : > { %v6183_v60 = vpop.permute.xlu1 %2736 }
 0x607   : > { %4535 = vmatmul.mubr.msk.bf16.vlgmr.msra.gmra.mxu0 %vm759_vm0, %v2293_v35 }
 0x608   : > { %4547 = vmatpush3.bf16.msra.mxu0 %v2615_v14 }
 0x609   : > { %4548 = vmatprep.subr.bf16.mxu0 %v2613_v7 }
 0x60a   : > { %4541 = vmatpush3.bf16.xpose.msra.mxu1 %v2374_v23 }
 0x60b   : > { %4554 = vmatprep.subr.bf16.mxu1 %v2676_v13 }
 0x60c   : > { %4549 = vmatpush3.bf16.msra.mxu0 %v2613_v7 }
 0x60d   : > { %4562 = vmatprep.subr.bf16.mxu0 %v6183_v60 }
 0x611   : > { %4543 = vmatmul.mubr.msk.bf16.vlgmr.msra.gmra.mxu1 %vm759_vm0, %v2362_v0  ;;  %v4174_v0 = vunpack.c.h.bf16 %v4190_v46 }
 0x612   : > { %4555 = vmatpush3.bf16.msra.mxu1 %v2676_v13 }
 0x69f   : > { %v6187_v27 = vpop.f32.mrf.mxu0 }
 0x6a1   : > { %v6189_v28 = vpop.f32.mrf.mxu0 }
 0x6a3   : > { %v6191_v15 = vpop.f32.mrf.mxu0 }
 0x6a5   : > { %v6195_v56 = vpop.f32.mrf.mxu0 }
 0x6a7   : > { %v6199_v31 = vpop.f32.mrf.mxu1  ;;  %v6201_v26 = vpop.f32.mrf.mxu0 }
 0x6a9   : > { %v6203_v11 = vpop.f32.mrf.mxu1  ;;  %v6205_v32 = vpop.f32.mrf.mxu0 }
 0x6ab   : > { %v6207_v33 = vpop.f32.mrf.mxu1  ;;  %v6209_v8 = vpop.f32.mrf.mxu0 }
 0x6ad   : > { %v6215_v2 = vpop.f32.mrf.mxu1  ;;  %v6217_v9 = vpop.f32.mrf.mxu0 }
 0x6b1   : > { %v6223_v63 = vpop.f32.mrf.mxu1 }
 0x6b3   : > { %v6225_v34 = vpop.f32.mrf.mxu1 }
 0x6b4   : > { %7010 = vst [vmem:[#allocation17_spill] sm:$0xff] %v6225_v34 }
 0x6b5   : > { %v6227_v25 = vpop.f32.mrf.mxu1 }
 0x6b7   : > { %v6231_v4 = vpop.f32.mrf.mxu1  ;;  %v4520_v1 = vpop.f32.mrf.mxu0 }
 0x6b8   : > { %7011 = vst [vmem:[#allocation34_spill] sm:$0xff] %v6231_v4  ;;  %v6235_v35 = vadd.f32 %v4520_v1, %v4177_v57 }
 0x6b9   : > { %v2206_v19 = vpop.f32.mrf.mxu0 }
 0x6ba   : > { %v6237_v42 = vadd.f32 %v4173_v44, %v2206_v19  ;;  %v2434_v5 = vsel %vm759_vm0, %v6235_v35, -inf }
 0x6bb   : > { %2435 = vmax.xlane.f32.xlu0 %v2434_v5  ;;  %v4521_v20 = vpop.f32.mrf.mxu0 }
 0x6bc   : > { %v6241_v7 = vadd.f32 %v4521_v20, %v4178_v55  ;;  %v2428_v13 = vsel %vm759_vm0, %v6237_v42, -inf }
 0x6bd   : > { %v2209_v14 = vpop.f32.mrf.mxu0 }
 0x6be   : > { %v6243_v59 = vadd.f32 %v4174_v0, %v2209_v14  ;;  %v2437_v1 = vsel %vm759_vm0, %v6241_v7, -inf }
 0x6bf   : > { %2429 = vmax.xlane.f32.xlu0 %v2428_v13 }
 0x6c0   : > { %v2431_v23 = vsel %vm759_vm0, %v6243_v59, -inf }
 0x6c1   : > { %2432 = vmax.xlane.f32.xlu1 %v2431_v23  ;;  %v4528_v29 = vpop.f32.mrf.mxu1 }
 0x6c2   : > { %v6259_v49 = vadd.f32 %v4528_v29, %v4177_v57 }
 0x6c3   : > { %2438 = vmax.xlane.f32.xlu0 %v2437_v1  ;;  %v2275_v46 = vpop.f32.mrf.mxu1 }
 0x6c4   : > { %v6267_v24 = vadd.f32 %v4173_v44, %v2275_v46  ;;  %v2446_v29 = vsel %vm759_vm0, %v6259_v49, -inf }
 0x6c5   : > { %v4529_v13 = vpop.f32.mrf.mxu1 }
 0x6c6   : > { %v2440_v46 = vsel %vm759_vm0, %v6267_v24, -inf }
 0x6c7   : > { %v4536_v19 = vpop.f32.mrf.mxu0 }
 0x6c8   : > { %v6251_v5 = vadd.f32 %v4536_v19, %v4177_v57 }
 0x6c9   : > { %v2344_v20 = vpop.f32.mrf.mxu0 }
 0x6ca   : > { %v6253_v14 = vadd.f32 %v4173_v44, %v2344_v20  ;;  %v2458_v12 = vsel %vm759_vm0, %v6251_v5, -inf  ;;  %v2278_v20 = vpop.f32.mrf.mxu1 }
 0x6cb   : > { %2459 = vmax.xlane.f32.xlu0 %v2458_v12  ;;  %v4537_v39 = vpop.f32.mrf.mxu0  ;;  %v6269_v12 = vadd.f32 %v4529_v13, %v4178_v55  ;;  %v6275_v43 = vadd.f32 %v4174_v0, %v2278_v20 }
 0x6cc   : > { %v6257_v41 = vadd.f32 %v4537_v39, %v4178_v55  ;;  %v2452_v19 = vsel %vm759_vm0, %v6253_v14, -inf }
 0x6cd   : > { %v2347_v23 = vpop.f32.mrf.mxu0 }
 0x6ce   : > { %v6261_v10 = vadd.f32 %v4174_v0, %v2347_v23  ;;  %v2461_v1 = vsel %vm759_vm0, %v6257_v41, -inf }
 0x6cf   : > { %2462 = vmax.xlane.f32.xlu1 %v2461_v1  ;;  %2453 = vmax.xlane.f32.xlu0 %v2452_v19  ;;  %v2449_v1 = vsel %vm759_vm0, %v6269_v12, -inf }
 0x6d0   : > { %v2455_v39 = vsel %vm759_vm0, %v6261_v10, -inf }
 0x6d1   : > { %v4544_v45 = vpop.f32.mrf.mxu1 }
 0x6d2   : > { %v6277_v34 = vadd.f32 %v4544_v45, %v4177_v57 }
 0x6d3   : > { %v2413_v23 = vpop.f32.mrf.mxu1  ;;  %2456 = vmax.xlane.f32.xlu1 %v2455_v39  ;;  %2447 = vmax.xlane.f32.xlu0 %v2446_v29  ;;  %v2443_v39 = vsel %vm759_vm0, %v6275_v43, -inf }
 0x6d4   : > { %v6283_v19 = vadd.f32 %v4173_v44, %v2413_v23  ;;  %v2470_v45 = vsel %vm759_vm0, %v6277_v34, -inf }
 0x6d5   : > { %v4545_v13 = vpop.f32.mrf.mxu1 }
 0x6d6   : > { %v6285_v4 = vadd.f32 %v4545_v13, %v4178_v55  ;;  %v2464_v44 = vsel %vm759_vm0, %v6283_v19, -inf }
 0x6d7   : > { %2450 = vmax.xlane.f32.xlu1 %v2449_v1  ;;  %2441 = vmax.xlane.f32.xlu0 %v2440_v46  ;;  %v2416_v57 = vpop.f32.mrf.mxu1 }
 0x6d8   : > { %v6291_v20 = vadd.f32 %v4174_v0, %v2416_v57  ;;  %v2473_v29 = vsel %vm759_vm0, %v6285_v4, -inf }
 0x6da   : > { %v2467_v55 = vsel %vm759_vm0, %v6291_v20, -inf }
 0x6db   : > { %2444 = vmax.xlane.f32.xlu1 %v2443_v39  ;;  %2471 = vmax.xlane.f32.xlu0 %v2470_v45 }
 0x6df   : > { %2474 = vmax.xlane.f32.xlu1 %v2473_v29  ;;  %2465 = vmax.xlane.f32.xlu0 %v2464_v44 }
 0x6e3   : > { %2468 = vmax.xlane.f32.xlu1 %v2467_v55 }
 0x6f4   : > { %2734 = vrot.lane.b32.xlu1 %v5584_v30, %s5315_s26 }
 0x6f5   : > { %2673 = vrot.lane.b32.xlu0 %v7009_v47, %s5315_s26 }
 0x6f8   : > { %2870 = vrot.lane.b32.xlu1 %v5538_v58, %s5316_s28 }
 0x6f9   : > { %2797 = vrot.lane.b32.xlu0 %v6992_v48, %s5315_s26 }
 0x6fc   : > { %2868 = vrot.lane.b32.xlu1 %v5540_v61, %s5316_s28 }
 0x6fd   : > { %2795 = vrot.lane.b32.xlu0 %v5831_v22, %s5315_s26 }
 0x744   : > { %v2436_v0 = vpop.xlane.xlu0 %2435 }
 0x745   : > { %v2478_v23 = vsub.f32 %v6235_v35, %v2436_v0 }
 0x747   : > { %v2496_v1 = vmul.f32 1.442695, %v2478_v23 }
 0x748   : > { %v2430_v46 = vpop.xlane.xlu0 %2429 }
 0x749   : > { %4979 = vpow2.f32 %v2496_v1  ;;  %v2476_v13 = vsub.f32 %v6237_v42, %v2430_v46 }
 0x74a   : > { %v2433_v39 = vpop.xlane.xlu1 %2432 }
 0x74b   : > { %v2492_v45 = vmul.f32 1.442695, %v2476_v13  ;;  %v2477_v58 = vsub.f32 %v6243_v59, %v2433_v39 }
 0x74c   : > { %v2439_v57 = vpop.xlane.xlu0 %2438 }
 0x74d   : > { %4981 = vpow2.f32 %v2492_v45  ;;  %v2479_v29 = vsub.f32 %v6241_v7, %v2439_v57  ;;  %v2494_v61 = vmul.f32 1.442695, %v2477_v58 }
 0x74f   : > { %v2498_v44 = vmul.f32 1.442695, %v2479_v29 }
 0x751   : > { %4983 = vpow2.f32 %v2498_v44 }
 0x752   : > { %4985 = vpow2.f32 %v2494_v61 }
 0x754   : > { %v2460_v55 = vpop.xlane.xlu0 %2459 }
 0x755   : > { %v2486_v35 = vsub.f32 %v6251_v5, %v2460_v55 }
 0x756   : > { %v6316_v0 = vpop.eup %4979 }
 0x757   : > { %v2512_v23 = vmul.f32 1.442695, %v2486_v35  ;;  %v2530_v42 = vsel %vm759_vm0, %v6316_v0, 0.0 }
 0x758   : > { %v2463_v1 = vpop.xlane.xlu1 %2462  ;;  %2531 = vadd.xlane.f32.xlu0 %v2530_v42  ;;  %v2454_v59 = vpop.xlane.xlu0 %2453 }
 0x759   : > { %4987 = vpow2.f32 %v2512_v23  ;;  %v2487_v46 = vsub.f32 %v6257_v41, %v2463_v1  ;;  %v2484_v7 = vsub.f32 %v6253_v14, %v2454_v59 }
 0x75a   : > { %v6322_v13 = vpop.eup %4981 }
 0x75b   : > { %v2514_v39 = vmul.f32 1.442695, %v2487_v46  ;;  %v2508_v45 = vmul.f32 1.442695, %v2484_v7  ;;  %v2524_v5 = vsel %vm759_vm0, %v6322_v13, 0.0 }
 0x75c   : > { %v2457_v58 = vpop.xlane.xlu1 %2456  ;;  %2525 = vadd.xlane.f32.xlu0 %v2524_v5  ;;  %v2448_v57 = vpop.xlane.xlu0 %2447 }
 0x75d   : > { %4989 = vpow2.f32 %v2514_v39  ;;  %v2485_v29 = vsub.f32 %v6261_v10, %v2457_v58  ;;  %v2482_v61 = vsub.f32 %v6259_v49, %v2448_v57 }
 0x75e   : > { %v6328_v44 = vpop.eup %4983  ;;  %4991 = vpow2.f32 %v2508_v45 }
 0x75f   : > { %v2510_v41 = vmul.f32 1.442695, %v2485_v29  ;;  %v2504_v14 = vmul.f32 1.442695, %v2482_v61  ;;  %v2533_v55 = vsel %vm759_vm0, %v6328_v44, 0.0  ;;  %v6332_v35 = vpop.eup %4985 }
 0x760   : > { %v2451_v23 = vpop.xlane.xlu1 %2450  ;;  %2534 = vadd.xlane.f32.xlu1 %v2533_v55  ;;  %v2442_v42 = vpop.xlane.xlu0 %2441  ;;  %v2527_v46 = vsel %vm759_vm0, %v6332_v35, 0.0 }
 0x761   : > { %4993 = vpow2.f32 %v2510_v41  ;;  %v2483_v1 = vsub.f32 %v6269_v12, %v2451_v23  ;;  %v2480_v10 = vsub.f32 %v6267_v24, %v2442_v42 }
 0x762   : > { %4995 = vpow2.f32 %v2504_v14 }
 0x763   : > { %v2506_v49 = vmul.f32 1.442695, %v2483_v1  ;;  %v2500_v59 = vmul.f32 1.442695, %v2480_v10 }
 0x764   : > { %v2445_v7 = vpop.xlane.xlu1 %2444  ;;  %2528 = vadd.xlane.f32.xlu1 %v2527_v46  ;;  %v2472_v39 = vpop.xlane.xlu0 %2471 }
 0x765   : > { %4997 = vpow2.f32 %v2506_v49  ;;  %v2481_v45 = vsub.f32 %v6275_v43, %v2445_v7  ;;  %v2490_v5 = vsub.f32 %v6277_v34, %v2472_v39 }
 0x766   : > { %v6340_v58 = vpop.eup %4987  ;;  %4999 = vpow2.f32 %v2500_v59 }
 0x767   : > { %v2502_v12 = vmul.f32 1.442695, %v2481_v45  ;;  %v2520_v57 = vmul.f32 1.442695, %v2490_v5  ;;  %v2554_v24 = vsel %vm759_vm0, %v6340_v58, 0.0 }
 0x768   : > { %v2475_v29 = vpop.xlane.xlu1 %2474  ;;  %2555 = vadd.xlane.f32.xlu0 %v2554_v24  ;;  %v2466_v61 = vpop.xlane.xlu0 %2465 }
 0x769   : > { %5001 = vpow2.f32 %v2502_v12  ;;  %v2491_v41 = vsub.f32 %v6285_v4, %v2475_v29  ;;  %v2488_v14 = vsub.f32 %v6283_v19, %v2466_v61 }
 0x76a   : > { %v6346_v55 = vpop.eup %4989  ;;  %5003 = vpow2.f32 %v2520_v57 }
 0x76b   : > { %v6348_v43 = vpop.eup %4991  ;;  %v2522_v34 = vmul.f32 1.442695, %v2491_v41  ;;  %v2516_v23 = vmul.f32 1.442695, %v2488_v14  ;;  %v2557_v42 = vsel %vm759_vm0, %v6346_v55, 0.0 }
 0x76c   : > { %v2469_v1 = vpop.xlane.xlu1 %2468  ;;  %2558 = vadd.xlane.f32.xlu1 %v2557_v42  ;;  %v2548_v10 = vsel %vm759_vm0, %v6348_v43, 0.0  ;;  %v2674_v49 = vpop.permute.xlu0 %2673 }
 0x76d   : > { %5005 = vpow2.f32 %v2522_v34  ;;  %v2489_v4 = vsub.f32 %v6291_v20, %v2469_v1  ;;  %2549 = vadd.xlane.f32.xlu0 %v2548_v10  ;;  %4556 = vmatprep.subr.bf16.mxu1 %v2674_v49 }
 0x76e   : > { %v6355_v19 = vpop.eup %4993  ;;  %5007 = vpow2.f32 %v2516_v23  ;;  %4557 = vmatpush3.bf16.msra.mxu1 %v2674_v49 }
 0x76f   : > { %v6357_v59 = vpop.eup %4995  ;;  %v2518_v46 = vmul.f32 1.442695, %v2489_v4  ;;  %v2551_v7 = vsel %vm759_vm0, %v6355_v19, 0.0 }
 0x770   : > { %2552 = vadd.xlane.f32.xlu1 %v2551_v7  ;;  %v2542_v39 = vsel %vm759_vm0, %v6357_v59, 0.0  ;;  %v6363_v45 = vpop.permute.xlu0 %2797 }
 0x771   : > { %5009 = vpow2.f32 %v2518_v46  ;;  %2543 = vadd.xlane.f32.xlu0 %v2542_v39  ;;  %4570 = vmatprep.subr.bf16.mxu1 %v6363_v45 }
 0x772   : > { %v6366_v20 = vpop.eup %4997 }
 0x773   : > { %v6368_v5 = vpop.eup %4999  ;;  %v2545_v12 = vsel %vm759_vm0, %v6366_v20, 0.0 }
 0x774   : > { %2546 = vadd.xlane.f32.xlu1 %v2545_v12  ;;  %v2536_v57 = vsel %vm759_vm0, %v6368_v5, 0.0 }
 0x775   : > { %2537 = vadd.xlane.f32.xlu0 %v2536_v57 }
 0x776   : > { %v6374_v24 = vpop.eup %5001 }
 0x777   : > { %v6376_v29 = vpop.eup %5003  ;;  %v2539_v61 = vsel %vm759_vm0, %v6374_v24, 0.0 }
 0x778   : > { %2540 = vadd.xlane.f32.xlu1 %v2539_v61  ;;  %v2566_v41 = vsel %vm759_vm0, %v6376_v29, 0.0 }
 0x779   : > { %2567 = vadd.xlane.f32.xlu0 %v2566_v41 }
 0x77a   : > { %v6382_v14 = vpop.eup %5005 }
 0x77b   : > { %v6384_v34 = vpop.eup %5007  ;;  %v2569_v23 = vsel %vm759_vm0, %v6382_v14, 0.0 }
 0x77c   : > { %2570 = vadd.xlane.f32.xlu1 %v2569_v23  ;;  %v2560_v42 = vsel %vm759_vm0, %v6384_v34, 0.0 }
 0x77d   : > { %2561 = vadd.xlane.f32.xlu0 %v2560_v42 }
 0x77e   : > { %v6390_v1 = vpop.eup %5009 }
 0x77f   : > { %v2563_v10 = vsel %vm759_vm0, %v6390_v1, 0.0 }
 0x780   : > { %2564 = vadd.xlane.f32.xlu1 %v2563_v10 }
 0x791   : > { %2864 = vrot.lane.b32.xlu1 %v5534_v52, %s5316_s28  ;;  %v2735_v52 = vpop.permute.xlu1 %2734 }
 0x793   : > { %2939 = vrot.lane.b32.xlu0 %v5566_v17, %s5316_s28  ;;  %v6428_v17 = vpop.permute.xlu0 %2795 }
 0x795   : > { %2937 = vrot.lane.b32.xlu1 %v5570_v21, %s5316_s28 }
 0x797   : > { %2866 = vrot.lane.b32.xlu0 %v5564_v16, %s5316_s28  ;;  %v6426_v16 = vpop.permute.xlu1 %2870 }
 0x799   : > { %2933 = vrot.lane.b32.xlu1 %v5568_v18, %s5316_s28 }
 0x79b   : > { %3008 = vrot.lane.b32.xlu0 %v5591_v37, %s5316_s28  ;;  %v6430_v21 = vpop.permute.xlu1 %2868 }
 0x79d   : > { %3006 = vrot.lane.b32.xlu1 %v5595_v40, %s5316_s28 }
 0x79f   : > { %2935 = vrot.lane.b32.xlu0 %v5589_v36, %s5316_s28 }
 0x7a1   : > { %3002 = vrot.lane.b32.xlu1 %v5593_v38, %s5316_s28 }
 0x7a3   : > { %3077 = vrot.lane.b32.xlu0 %v5611_v51, %s5316_s28 }
 0x7a5   : > { %3075 = vrot.lane.b32.xlu1 %v5615_v54, %s5316_s28 }
 0x7a7   : > { %3004 = vrot.lane.b32.xlu0 %v5609_v50, %s5316_s28 }
 0x7a9   : > { %3073 = vrot.lane.b32.xlu1 %v5635_v62, %s5316_s28 }
 0x7ab   : > { %3071 = vrot.lane.b32.xlu0 %v5613_v53, %s5316_s28 }
 0x7ad   : > { %3324 = vrot.lane.b32.xlu1 %v5550_v6, %s5316_s28 }
 0x7af   : > { %3326 = vrot.lane.b32.xlu0 %v5548_v3, %s5316_s28 }
 0x7e1   : > { %v2532_v18 = vpop.xlane.xlu0 %2531 }
 0x7e5   : > { %v2526_v36 = vpop.xlane.xlu0 %2525 }
 0x7e9   : > { %v2535_v37 = vpop.xlane.xlu1 %2534 }
 0x7ea   : > { %5011 = vrcp.f32 %v2535_v37 }
 0x7eb   : > { %5013 = vrcp.f32 %v2526_v36 }
 0x7ec   : > { %5015 = vrcp.f32 %v2532_v18 }
 0x7ed   : > { %v2529_v38 = vpop.xlane.xlu1 %2528 }
 0x7ee   : > { %5017 = vrcp.f32 %v2529_v38 }
 0x7f1   : > { %v2556_v40 = vpop.xlane.xlu0 %2555 }
 0x7f5   : > { %v2559_v6 = vpop.xlane.xlu1 %2558 }
 0x7f6   : > { %v2550_v50 = vpop.xlane.xlu0 %2549  ;;  %5019 = vrcp.f32 %v2559_v6 }
 0x7f7   : > { %v5012_v3 = vpop.eup %5011  ;;  %5021 = vrcp.f32 %v2550_v50 }
 0x7f8   : > { %v5014_v51 = vpop.eup %5013  ;;  %5023 = vrcp.f32 %v2556_v40  ;;  %v2591_v4 = vmul.f32 %v5012_v3, %v6328_v44 }
 0x7f9   : > { %v2553_v53 = vpop.xlane.xlu1 %2552  ;;  %v5016_v54 = vpop.eup %5015  ;;  %v2588_v46 = vmul.f32 %v5014_v51, %v6322_v13 }
 0x7fa   : > { %5025 = vrcp.f32 %v2553_v53  ;;  %v2544_v62 = vpop.xlane.xlu0 %2543  ;;  %v2590_v12 = vmul.f32 %v5016_v54, %v6316_v0 }
 0x7fb   : > { %v5018_v49 = vpop.eup %5017 }
 0x7fc   : > { %v2589_v7 = vmul.f32 %v5018_v49, %v6332_v35  ;;  %v2605_v41 = vpack.c.bf16 %v2591_v4, %v2590_v12 }
 0x7fd   : > { %v2547_v39 = vpop.xlane.xlu1 %2546 }
 0x7fe   : > { %v2538_v57 = vpop.xlane.xlu0 %2537  ;;  %v2604_v61 = vpack.c.bf16 %v2589_v7, %v2588_v46  ;;  %5027 = vrcp.f32 %v2547_v39 }
 0x7ff   : > { %5029 = vrcp.f32 %v2538_v57 }
 0x800   : > { %4550 = vmatprep.mubr.msk.bf16.mxu0 %vm759_vm0, %v2604_v61  ;;  %5031 = vrcp.f32 %v2544_v62  ;;  %v2879_v61 = vsel %vm759_vm0, %v6430_v21, 0 }
 0x801   : > { %v2541_v23 = vpop.xlane.xlu1 %2540  ;;  %4551 = vmatmul.mubr.msk.bf16.vlgmr.msra.gmra.mxu0 %vm759_vm0, %v2605_v41 }
 0x802   : > { %5033 = vrcp.f32 %v2541_v23  ;;  %4563 = vmatpush3.bf16.msra.mxu0 %v6183_v60  ;;  %v2568_v13 = vpop.xlane.xlu0 %2567 }
 0x803   : > { %4564 = vmatprep.subr.bf16.mxu0 %v2735_v52  ;;  %v5020_v44 = vpop.eup %5019 }
 0x804   : > { %v5022_v35 = vpop.eup %5021  ;;  %v2599_v36 = vmul.f32 %v5020_v44, %v6346_v55  ;;  %v2882_v55 = vsel %vm759_vm0, %v6426_v16, 0 }
 0x805   : > { %v2571_v42 = vpop.xlane.xlu1 %2570  ;;  %v5024_v0 = vpop.eup %5023  ;;  %v2596_v37 = vmul.f32 %v5022_v35, %v6348_v43 }
 0x806   : > { %4565 = vmatpush3.bf16.msra.mxu0 %v2735_v52  ;;  %v2562_v10 = vpop.xlane.xlu0 %2561  ;;  %5035 = vrcp.f32 %v2571_v42  ;;  %v2598_v40 = vmul.f32 %v5024_v0, %v6340_v58 }
 0x807   : > { %v5026_v18 = vpop.eup %5025  ;;  %4698 = vmatprep.subr.msk.bf16.mxu0 %vm759_vm0, %v6426_v16  ;;  %5037 = vrcp.f32 %v2562_v10 }
 0x808   : > { %v2597_v60 = vmul.f32 %v5026_v18, %v6355_v19  ;;  %5039 = vrcp.f32 %v2568_v13  ;;  %v2609_v50 = vpack.c.bf16 %v2599_v36, %v2598_v40 }
 0x809   : > { %v2565_v38 = vpop.xlane.xlu1 %2564 }
 0x80a   : > { %5041 = vrcp.f32 %v2565_v38  ;;  %v2940_v6 = vpop.permute.xlu0 %2939  ;;  %v2608_v52 = vpack.c.bf16 %v2597_v60, %v2596_v37 }
 0x80b   : > { %v5028_v3 = vpop.eup %5027  ;;  %v2951_v0 = vsel %vm759_vm0, %v2940_v6, 0 }
 0x80c   : > { %4566 = vmatprep.mubr.msk.bf16.mxu0 %vm759_vm0, %v2608_v52  ;;  %v5030_v51 = vpop.eup %5029  ;;  %v2595_v54 = vmul.f32 %v5028_v3, %v6366_v20 }
 0x80d   : > { %v2865_v53 = vpop.permute.xlu1 %2864  ;;  %4567 = vmatmul.mubr.msk.bf16.vlgmr.msra.gmra.mxu0 %vm759_vm0, %v2609_v50  ;;  %v5032_v43 = vpop.eup %5031  ;;  %v2592_v62 = vmul.f32 %v5030_v51, %v6368_v5 }
 0x80e   : > { %4579 = vmatpush3.bf16.xpose.msra.mxu0 %v2882_v55  ;;  %v2867_v19 = vpop.permute.xlu0 %2866  ;;  %4582 = vmatprep.mubr.msk.bf16.mxu0 %vm759_vm0, %v2865_v53  ;;  %v2594_v16 = vmul.f32 %v5032_v43, %v6357_v59 }
 0x80f   : > { %v5034_v58 = vpop.eup %5033  ;;  %4699 = vmatprep.subr.msk.bf16.mxu0 %vm759_vm0, %v6430_v21 }
 0x810   : > { %v2593_v49 = vmul.f32 %v5034_v58, %v6374_v24  ;;  %v2607_v39 = vpack.c.bf16 %v2595_v54, %v2594_v16  ;;  %v4193_v16 = vld [vmem:[#allocation5 + $0x38] sm:$0xff]  }
 0x811   : > { %v2938_v4 = vpop.permute.xlu1 %2937 }
 0x812   : > { %v3009_v46 = vpop.permute.xlu0 %3008  ;;  %v2606_v7 = vpack.c.bf16 %v2593_v49, %v2592_v62  ;;  %v2948_v10 = vsel %vm759_vm0, %v2938_v4, 0 }
 0x813   : > { %v5036_v12 = vpop.eup %5035 }
 0x814   : > { %4558 = vmatprep.mubr.msk.bf16.mxu1 %vm759_vm0, %v2606_v7  ;;  %v5038_v57 = vpop.eup %5037  ;;  %v2603_v59 = vmul.f32 %v5036_v12, %v6382_v14  ;;  %v3020_v14 = vsel %vm759_vm0, %v3009_v46, 0  ;;  %v4192_v7 = vld [vmem:[#allocation5 + $0x30] sm:$0xff]   ;;  %v6520_v12 = vunpack.c.l.bf16 %v4193_v16 }
 0x815   : > { %v2934_v41 = vpop.permute.xlu1 %2933  ;;  %4559 = vmatmul.mubr.msk.bf16.vlgmr.msra.gmra.mxu1 %vm759_vm0, %v2607_v39  ;;  %v5040_v20 = vpop.eup %5039  ;;  %v2600_v23 = vmul.f32 %v5038_v57, %v6384_v34 }
 0x816   : > { %4571 = vmatpush3.bf16.msra.mxu1 %v6363_v45  ;;  %4581 = vmatpush3.bf16.xpose.msra.mxu0 %v2879_v61  ;;  %v2936_v5 = vpop.permute.xlu0 %2935  ;;  %v2602_v44 = vmul.f32 %v5040_v20, %v6376_v29 }
 0x817   : > { %v5042_v24 = vpop.eup %5041  ;;  %4572 = vmatprep.subr.bf16.mxu1 %v6428_v17  ;;  %4702 = vmatprep.subr.msk.bf16.mxu0 %vm759_vm0, %v3009_v46 }
 0x818   : > { %v2601_v13 = vmul.f32 %v5042_v24, %v6390_v1  ;;  %v2611_v42 = vpack.c.bf16 %v2603_v59, %v2602_v44  ;;  %v4186_v44 = vunpack.c.h.bf16 %v4193_v16 }
 0x819   : > { %v3007_v21 = vpop.permute.xlu1 %3006 }
 0x81a   : > { %4573 = vmatpush3.bf16.msra.mxu1 %v6428_v17  ;;  %v3078_v35 = vpop.permute.xlu0 %3077  ;;  %v2610_v45 = vpack.c.bf16 %v2601_v13, %v2600_v23  ;;  %v3017_v18 = vsel %vm759_vm0, %v3007_v21, 0 }
 0x81b   : > { %4700 = vmatprep.subr.msk.bf16.mxu1 %vm759_vm0, %v2940_v6  ;;  %v3089_v60 = vsel %vm759_vm0, %v3078_v35, 0 }
 0x81c   : > { %4574 = vmatprep.mubr.msk.bf16.mxu1 %vm759_vm0, %v2610_v45 }
 0x81d   : > { %4583 = vmatmul.mubr.msk.bf16.vlgmr.msra.gmra.mxu0 %vm759_vm0, %v2867_v19  ;;  %v3003_v34 = vpop.permute.xlu1 %3002  ;;  %4575 = vmatmul.mubr.msk.bf16.vlgmr.msra.gmra.mxu1 %vm759_vm0, %v2611_v42 }
 0x81e   : > { %4587 = vmatpush3.bf16.xpose.msra.mxu1 %v2951_v0  ;;  %4595 = vmatpush3.bf16.xpose.msra.mxu0 %v3020_v14  ;;  %v3005_v29 = vpop.permute.xlu0 %3004 }
 0x81f   : > { %4701 = vmatprep.subr.msk.bf16.mxu1 %vm759_vm0, %v2938_v4  ;;  %4590 = vmatprep.mubr.msk.bf16.mxu1 %vm759_vm0, %v2934_v41  ;;  %v6526_v41 = vunpack.c.l.bf16 %v4192_v7 }
 0x820   : > { %4703 = vmatprep.subr.msk.bf16.mxu0 %vm759_vm0, %v3007_v21  ;;  %4598 = vmatprep.mubr.msk.bf16.mxu0 %vm759_vm0, %v3003_v34 }
 0x821   : > { %v3076_v17 = vpop.permute.xlu1 %3075 }
 0x822   : > { %v3072_v1 = vpop.permute.xlu0 %3071  ;;  %v3086_v40 = vsel %vm759_vm0, %v3076_v17, 0 }
 0x825   : > { %v3074_v37 = vpop.permute.xlu1 %3073 }
 0x826   : > { %4589 = vmatpush3.bf16.xpose.msra.mxu1 %v2948_v10  ;;  %4597 = vmatpush3.bf16.xpose.msra.mxu0 %v3017_v18  ;;  %v3327_v36 = vpop.permute.xlu0 %3326 }
 0x827   : > { %4704 = vmatprep.subr.msk.bf16.mxu1 %vm759_vm0, %v3078_v35  ;;  %4610 = vmatprep.subr.bf16.mxu0 %v3327_v36  ;;  %v4182_v35 = vunpack.c.h.bf16 %v4192_v7 }
 0x829   : > { %v3325_v38 = vpop.permute.xlu1 %3324 }
 0x82d   : > { %4591 = vmatmul.mubr.msk.bf16.vlgmr.msra.gmra.mxu1 %vm759_vm0, %v2936_v5  ;;  %4599 = vmatmul.mubr.msk.bf16.vlgmr.msra.gmra.mxu0 %vm759_vm0, %v3005_v29 }
 0x82e   : > { %4603 = vmatpush3.bf16.xpose.msra.mxu1 %v3089_v60  ;;  %4606 = vmatprep.mubr.msk.bf16.mxu1 %vm759_vm0, %v3072_v1 }
 0x82f   : > { %4611 = vmatpush3.bf16.msra.mxu0 %v3327_v36  ;;  %4705 = vmatprep.subr.msk.bf16.mxu1 %vm759_vm0, %v3076_v17 }
 0x830   : > { %4612 = vmatprep.subr.bf16.mxu0 %v3325_v38 }
 0x833   : > { %4613 = vmatpush3.bf16.msra.mxu0 %v3325_v38 }
 0x836   : > { %4605 = vmatpush3.bf16.xpose.msra.mxu1 %v3086_v40 }
 0x83d   : > { %4607 = vmatmul.mubr.msk.bf16.vlgmr.msra.gmra.mxu1 %vm759_vm0, %v3074_v37 }
 0x8c1   : > { %v6488_v6 = vpop.f32.mrf.mxu0 }
 0x8c3   : > { %v6490_v52 = vpop.f32.mrf.mxu0 }
 0x8c5   : > { %v6492_v50 = vpop.f32.mrf.mxu0 }
 0x8c7   : > { %v6496_v51 = vpop.f32.mrf.mxu0 }
 0x8c8   : > { %v2856_v55 = vpack.c.bf16 %v6496_v51, %v6490_v52 }
 0x8cd   : > { %v6500_v53 = vpop.f32.mrf.mxu0 }
 0x8cf   : > { %v6502_v43 = vpop.f32.mrf.mxu0 }
 0x8d1   : > { %v6504_v19 = vpop.f32.mrf.mxu0 }
 0x8d3   : > { %v6508_v54 = vpop.f32.mrf.mxu0 }
 0x8d5   : > { %v6512_v49 = vpop.f32.mrf.mxu1 }
 0x8d7   : > { %v6514_v4 = vpop.f32.mrf.mxu1 }
 0x8d9   : > { %v6516_v46 = vpop.f32.mrf.mxu1 }
 0x8db   : > { %v6522_v57 = vpop.f32.mrf.mxu1 }
 0x8dc   : > { %v2858_v61 = vpack.c.bf16 %v6522_v57, %v6514_v4 }
 0x8dd   : > { %v4584_v20 = vpop.f32.mrf.mxu0  ;;  %v6528_v5 = vpop.f32.mrf.mxu1 }
 0x8de   : > { %v6531_v24 = vadd.f32 %v4584_v20, %v6520_v12 }
 0x8df   : > { %v2918_v59 = vpop.f32.mrf.mxu0  ;;  %v6533_v23 = vpop.f32.mrf.mxu1 }
 0x8e0   : > { %v6536_v13 = vadd.f32 %v6526_v41, %v2918_v59  ;;  %v3146_v21 = vsel %vm759_vm0, %v6531_v24, -inf }
 0x8e1   : > { %3147 = vmax.xlane.f32.xlu0 %v3146_v21  ;;  %v4585_v45 = vpop.f32.mrf.mxu0  ;;  %v6540_v42 = vpop.f32.mrf.mxu1 }
 0x8e2   : > { %v6546_v29 = vadd.f32 %v4585_v45, %v4186_v44  ;;  %v3140_v10 = vsel %vm759_vm0, %v6536_v13, -inf }
 0x8e3   : > { %v2921_v14 = vpop.f32.mrf.mxu0  ;;  %v6544_v34 = vpop.f32.mrf.mxu1 }
 0x8e4   : > { %v6548_v1 = vadd.f32 %v4182_v35, %v2921_v14  ;;  %v3149_v36 = vsel %vm759_vm0, %v6546_v29, -inf }
 0x8e5   : > { %3141 = vmax.xlane.f32.xlu0 %v3140_v10 }
 0x8e6   : > { %v3143_v18 = vsel %vm759_vm0, %v6548_v1, -inf }
 0x8e7   : > { %3144 = vmax.xlane.f32.xlu1 %v3143_v18 }
 0x8e9   : > { %3150 = vmax.xlane.f32.xlu0 %v3149_v36 }
 0x8ed   : > { %v4592_v37 = vpop.f32.mrf.mxu1  ;;  %v4600_v60 = vpop.f32.mrf.mxu0 }
 0x8ee   : > { %v6559_v38 = vadd.f32 %v4600_v60, %v6520_v12  ;;  %v6569_v14 = vadd.f32 %v4592_v37, %v6520_v12 }
 0x8ef   : > { %v3056_v40 = vpop.f32.mrf.mxu0  ;;  %v2987_v20 = vpop.f32.mrf.mxu1 }
 0x8f0   : > { %v6562_v16 = vadd.f32 %v6526_v41, %v3056_v40  ;;  %v3170_v7 = vsel %vm759_vm0, %v6559_v38, -inf  ;;  %v6578_v40 = vadd.f32 %v6526_v41, %v2987_v20 }
 0x8f1   : > { %3171 = vmax.xlane.f32.xlu0 %v3170_v7  ;;  %v4601_v59 = vpop.f32.mrf.mxu0  ;;  %v4593_v60 = vpop.f32.mrf.mxu1 }
 0x8f2   : > { %v6566_v21 = vadd.f32 %v4601_v59, %v4186_v44  ;;  %v3164_v36 = vsel %vm759_vm0, %v6562_v16, -inf  ;;  %v6580_v7 = vadd.f32 %v4593_v60, %v4186_v44  ;;  %v3158_v59 = vsel %vm759_vm0, %v6569_v14, -inf }
 0x8f3   : > { %v3059_v45 = vpop.f32.mrf.mxu0  ;;  %v3152_v20 = vsel %vm759_vm0, %v6578_v40, -inf }
 0x8f4   : > { %v6571_v10 = vadd.f32 %v4182_v35, %v3059_v45  ;;  %v3173_v18 = vsel %vm759_vm0, %v6566_v21, -inf  ;;  %v2990_v45 = vpop.f32.mrf.mxu1 }
 0x8f5   : > { %3174 = vmax.xlane.f32.xlu1 %v3173_v18  ;;  %3165 = vmax.xlane.f32.xlu0 %v3164_v36  ;;  %v6586_v17 = vadd.f32 %v4182_v35, %v2990_v45  ;;  %v3161_v18 = vsel %vm759_vm0, %v6580_v7, -inf }
 0x8f6   : > { %v3167_v37 = vsel %vm759_vm0, %v6571_v10, -inf }
 0x8f7   : > { %v3155_v0 = vsel %vm759_vm0, %v6586_v17, -inf }
 0x8f9   : > { %3168 = vmax.xlane.f32.xlu1 %v3167_v37  ;;  %3159 = vmax.xlane.f32.xlu0 %v3158_v59 }
 0x8fd   : > { %3162 = vmax.xlane.f32.xlu1 %v3161_v18  ;;  %3153 = vmax.xlane.f32.xlu0 %v3152_v20  ;;  %v4608_v36 = vpop.f32.mrf.mxu1  ;;  %v7012_v20 = vld [vmem:[#allocation16_spill] sm:$0xff] }
 0x8fe   : > { %v6605_v39 = vadd.f32 %v4608_v36, %v6520_v12 }
 0x8ff   : > { %v3125_v60 = vpop.f32.mrf.mxu1 }
 0x901   : > { %3156 = vmax.xlane.f32.xlu1 %v3155_v0  ;;  %v4609_v62 = vpop.f32.mrf.mxu1 }
 0x902   : > { %v6594_v58 = vadd.f32 %v4609_v62, %v4186_v44  ;;  %v6608_v62 = vadd.f32 %v6526_v41, %v3125_v60  ;;  %v3182_v44 = vsel %vm759_vm0, %v6605_v39, -inf }
 0x903   : > { %v3128_v37 = vpop.f32.mrf.mxu1 }
 0x904   : > { %v6596_v59 = vadd.f32 %v4182_v35, %v3128_v37  ;;  %v3185_v45 = vsel %vm759_vm0, %v6594_v58, -inf  ;;  %v3176_v35 = vsel %vm759_vm0, %v6608_v62, -inf }
 0x905   : > { %3186 = vmax.xlane.f32.xlu1 %v3185_v45 }
 0x906   : > { %v3179_v18 = vsel %vm759_vm0, %v6596_v59, -inf }
 0x909   : > { %3180 = vmax.xlane.f32.xlu1 %v3179_v18 }
 0x913   : > { %3387 = vrot.lane.b32.xlu0 %v7012_v20, %s5316_s28 }
 0x932   : > { %3183 = vmax.xlane.f32.xlu0 %v3182_v44 }
 0x936   : > { %3177 = vmax.xlane.f32.xlu0 %v3176_v35 }
 0x94c   : > { %3385 = vrot.lane.b32.xlu0 %v7009_v47, %s5316_s28 }
 0x96a   : > { %v3148_v0 = vpop.xlane.xlu0 %3147 }
 0x96b   : > { %v3190_v37 = vsub.f32 %v6531_v24, %v3148_v0 }
 0x96d   : > { %v3208_v45 = vmul.f32 1.442695, %v3190_v37 }
 0x96e   : > { %v3142_v12 = vpop.xlane.xlu0 %3141 }
 0x96f   : > { %5043 = vpow2.f32 %v3208_v45  ;;  %v3188_v41 = vsub.f32 %v6536_v13, %v3142_v12 }
 0x970   : > { %v3145_v36 = vpop.xlane.xlu1 %3144 }
 0x971   : > { %v3204_v60 = vmul.f32 1.442695, %v3188_v41  ;;  %v3189_v18 = vsub.f32 %v6548_v1, %v3145_v36 }
 0x972   : > { %v3151_v20 = vpop.xlane.xlu0 %3150 }
 0x973   : > { %5045 = vpow2.f32 %v3204_v60  ;;  %v3191_v44 = vsub.f32 %v6546_v29, %v3151_v20  ;;  %v3206_v35 = vmul.f32 1.442695, %v3189_v18 }
 0x975   : > { %v3210_v3 = vmul.f32 1.442695, %v3191_v44 }
 0x977   : > { %5047 = vpow2.f32 %v3210_v3 }
 0x978   : > { %5049 = vpow2.f32 %v3206_v35 }
 0x97a   : > { %v3172_v47 = vpop.xlane.xlu0 %3171 }
 0x97b   : > { %v3198_v24 = vsub.f32 %v6559_v38, %v3172_v47 }
 0x97c   : > { %v6621_v0 = vpop.eup %5043 }
 0x97d   : > { %v3224_v37 = vmul.f32 1.442695, %v3198_v24  ;;  %v3242_v13 = vsel %vm759_vm0, %v6621_v0, 0.0 }
 0x97e   : > { %v3175_v45 = vpop.xlane.xlu1 %3174  ;;  %3243 = vadd.xlane.f32.xlu0 %v3242_v13  ;;  %v3166_v1 = vpop.xlane.xlu0 %3165 }
 0x97f   : > { %5051 = vpow2.f32 %v3224_v37  ;;  %v3199_v12 = vsub.f32 %v6566_v21, %v3175_v45  ;;  %v3196_v29 = vsub.f32 %v6562_v16, %v3166_v1 }
 0x980   : > { %v6627_v41 = vpop.eup %5045 }
 0x981   : > { %v3226_v3 = vmul.f32 1.442695, %v3199_v12  ;;  %v3220_v36 = vmul.f32 1.442695, %v3196_v29  ;;  %v3236_v38 = vsel %vm759_vm0, %v6627_v41, 0.0 }
 0x982   : > { %v3169_v60 = vpop.xlane.xlu1 %3168  ;;  %3237 = vadd.xlane.f32.xlu0 %v3236_v38  ;;  %v3160_v18 = vpop.xlane.xlu0 %3159 }
 0x983   : > { %5053 = vpow2.f32 %v3226_v3  ;;  %v3197_v20 = vsub.f32 %v6571_v10, %v3169_v60  ;;  %v3194_v44 = vsub.f32 %v6569_v14, %v3160_v18 }
 0x984   : > { %v6633_v35 = vpop.eup %5047  ;;  %5055 = vpow2.f32 %v3220_v36 }
 0x985   : > { %v3222_v21 = vmul.f32 1.442695, %v3197_v20  ;;  %v3216_v16 = vmul.f32 1.442695, %v3194_v44  ;;  %v3245_v47 = vsel %vm759_vm0, %v6633_v35, 0.0  ;;  %v6637_v24 = vpop.eup %5049 }
 0x986   : > { %3246 = vadd.xlane.f32.xlu1 %v3245_v47  ;;  %v3154_v37 = vpop.xlane.xlu0 %3153  ;;  %v3239_v14 = vsel %vm759_vm0, %v6637_v24, 0.0  ;;  %v7013_v47 = vld [vmem:[#allocation15_spill] sm:$0xff] }
 0x987   : > { %5057 = vpow2.f32 %v3222_v21  ;;  %v3192_v13 = vsub.f32 %v6578_v40, %v3154_v37 }
 0x988   : > { %5059 = vpow2.f32 %v3216_v16  ;;  %v3163_v16 = vpop.xlane.xlu1 %3162 }
 0x989   : > { %v3212_v45 = vmul.f32 1.442695, %v3192_v13  ;;  %v3195_v37 = vsub.f32 %v6580_v7, %v3163_v16 }
 0x98a   : > { %3240 = vadd.xlane.f32.xlu1 %v3239_v14  ;;  %v3388_v10 = vpop.permute.xlu0 %3387 }
 0x98b   : > { %4618 = vmatprep.subr.bf16.mxu1 %v3388_v10  ;;  %5061 = vpow2.f32 %v3212_v45  ;;  %v3218_v45 = vmul.f32 1.442695, %v3195_v37  ;;  %v7017_v37 = vpack.c.bf16 %v6191_v15, %v6187_v27 }
 0x98c   : > { %v6642_v1 = vpop.eup %5051  ;;  %4619 = vmatpush3.bf16.msra.mxu1 %v3388_v10  ;;  %v3157_v13 = vpop.xlane.xlu1 %3156  ;;  %v7014_v10 = vpack.c.bf16 %v6195_v56, %v6189_v28  ;;  %v7015_v28 = vpack.c.bf16 %v6215_v2, %v6203_v11  ;;  %v7016_v11 = vpack.c.bf16 %v6217_v9, %v6205_v32 }
 0x98d   : > { %v3266_v12 = vsel %vm759_vm0, %v6642_v1, 0.0  ;;  %v3193_v14 = vsub.f32 %v6586_v17, %v3157_v13  ;;  %5063 = vpow2.f32 %v3218_v45  ;;  %v7018_v13 = vpack.c.bf16 %v6492_v50, %v6488_v6 }
 0x98e   : > { %3267 = vadd.xlane.f32.xlu0 %v3266_v12  ;;  %v7019_v45 = vpack.c.bf16 %v6207_v33, %v6199_v31 }
 0x990   : > { %v6646_v29 = vpop.eup %5053 }
 0x991   : > { %v6648_v3 = vpop.eup %5055  ;;  %v3269_v40 = vsel %vm759_vm0, %v6646_v29, 0.0 }
 0x992   : > { %3270 = vadd.xlane.f32.xlu1 %v3269_v40  ;;  %v3260_v36 = vsel %vm759_vm0, %v6648_v3, 0.0 }
 0x993   : > { %3261 = vadd.xlane.f32.xlu0 %v3260_v36  ;;  %v3187_v36 = vpop.xlane.xlu1 %3186 }
 0x994   : > { %v6654_v38 = vpop.eup %5057  ;;  %v3203_v56 = vsub.f32 %v6594_v58, %v3187_v36 }
 0x995   : > { %v6656_v60 = vpop.eup %5059  ;;  %v3263_v18 = vsel %vm759_vm0, %v6654_v38, 0.0 }
 0x996   : > { %3264 = vadd.xlane.f32.xlu1 %v3263_v18  ;;  %v3254_v20 = vsel %vm759_vm0, %v6656_v60, 0.0  ;;  %v3234_v52 = vmul.f32 1.442695, %v3203_v56 }
 0x997   : > { %3255 = vadd.xlane.f32.xlu0 %v3254_v20  ;;  %v3181_v18 = vpop.xlane.xlu1 %3180 }
 0x998   : > { %v6662_v44 = vpop.eup %5061  ;;  %v3201_v51 = vsub.f32 %v6596_v59, %v3181_v18 }
 0x999   : > { %v3248_v21 = vsel %vm759_vm0, %v6662_v44, 0.0 }
 0x99a   : > { %v3230_v2 = vmul.f32 1.442695, %v3201_v51 }
 0x99b   : > { %3249 = vadd.xlane.f32.xlu0 %v3248_v21 }
 0x9a7   : > { %3446 = vrot.lane.b32.xlu1 %v5584_v30, %s5316_s28  ;;  %v3214_v30 = vmul.f32 1.442695, %v3193_v14  ;;  %v7020_v14 = vpack.c.bf16 %v6516_v46, %v6512_v49 }
 0x9a9   : > { %5065 = vpow2.f32 %v3214_v30 }
 0x9b1   : > { %3448 = vrot.lane.b32.xlu0 %v7013_v47, %s5316_s28 }
 0x9b5   : > { %3509 = vrot.lane.b32.xlu0 %v6992_v48, %s5316_s28 }
 0x9b9   : > { %3584 = vrot.lane.b32.xlu0 %v7014_v10, %s5316_s28 }
 0x9bb   : > { %v3184_v12 = vpop.xlane.xlu0 %3183 }
 0x9bc   : > { %v3202_v40 = vsub.f32 %v6605_v39, %v3184_v12 }
 0x9bd   : > { %3608 = vrot.lane.b32.xlu0 %v2856_v55, %s5315_s26  ;;  %v6694_v55 = vpop.eup %5063 }
 0x9be   : > { %v3232_v48 = vmul.f32 1.442695, %v3202_v40  ;;  %v3257_v58 = vsel %vm759_vm0, %v6694_v55, 0.0 }
 0x9bf   : > { %v3178_v7 = vpop.xlane.xlu0 %3177 }
 0x9c0   : > { %v3200_v17 = vsub.f32 %v6608_v62, %v3178_v7  ;;  %5067 = vpow2.f32 %v3232_v48  ;;  %v6702_v62 = vpop.eup %5065 }
 0x9c1   : > { %3588 = vrot.lane.b32.xlu0 %v7015_v28, %s5316_s28  ;;  %v3251_v4 = vsel %vm759_vm0, %v6702_v62, 0.0 }
 0x9c2   : > { %v3228_v39 = vmul.f32 1.442695, %v3200_v17 }
 0x9c3   : > { %v3386_v20 = vpop.permute.xlu0 %3385 }
 0x9c4   : > { %4620 = vmatprep.subr.bf16.mxu1 %v3386_v20  ;;  %5069 = vpow2.f32 %v3228_v39 }
 0x9c5   : > { %3612 = vrot.lane.b32.xlu0 %v2858_v61, %s5315_s26  ;;  %4621 = vmatpush3.bf16.msra.mxu1 %v3386_v20  ;;  %5071 = vpow2.f32 %v3234_v52 }
 0x9c6   : > { %5073 = vpow2.f32 %v3230_v2 }
 0x9c9   : > { %3592 = vrot.lane.b32.xlu0 %v7016_v11, %s5316_s28 }
 0x9cb   : > { %3258 = vadd.xlane.f32.xlu1 %v3257_v58 }
 0x9cd   : > { %v6706_v57 = vpop.eup %5067 }
 0x9ce   : > { %v3278_v61 = vsel %vm759_vm0, %v6706_v57, 0.0 }
 0x9cf   : > { %3252 = vadd.xlane.f32.xlu1 %v3251_v4 }
 0x9d1   : > { %v6710_v32 = vpop.eup %5069 }
 0x9d2   : > { %v3272_v9 = vsel %vm759_vm0, %v6710_v32, 0.0  ;;  %v6714_v59 = vpop.eup %5071 }
 0x9d3   : > { %3279 = vadd.xlane.f32.xlu1 %v3278_v61  ;;  %v3281_v21 = vsel %vm759_vm0, %v6714_v59, 0.0  ;;  %v6718_v16 = vpop.eup %5073 }
 0x9d4   : > { %v3275_v47 = vsel %vm759_vm0, %v6718_v16, 0.0 }
 0x9d7   : > { %3273 = vadd.xlane.f32.xlu1 %v3272_v9 }
 0x9db   : > { %3282 = vadd.xlane.f32.xlu1 %v3281_v21 }
 0x9df   : > { %3276 = vadd.xlane.f32.xlu1 %v3275_v47  ;;  %v7022_v47 = vld [vmem:[#allocation25_spill] sm:$0xff] }
 0x9f0   : > { %3507 = vrot.lane.b32.xlu1 %v5831_v22, %s5316_s28  ;;  %v7021_v22 = vpack.c.bf16 %v6209_v8, %v6201_v26 }
 0x9f4   : > { %3586 = vrot.lane.b32.xlu1 %v7017_v37, %s5316_s28 }
 0x9f8   : > { %3610 = vrot.lane.b32.xlu1 %v7018_v13, %s5315_s26 }
 0x9fc   : > { %3590 = vrot.lane.b32.xlu1 %v7019_v45, %s5316_s28 }
 0xa00   : > { %3614 = vrot.lane.b32.xlu1 %v7020_v14, %s5315_s26 }
 0xa04   : > { %3594 = vrot.lane.b32.xlu1 %v7021_v22, %s5316_s28 }
 0xa07   : > { %v3244_v27 = vpop.xlane.xlu0 %3243 }
 0xa0b   : > { %v3238_v15 = vpop.xlane.xlu0 %3237 }
 0xa0f   : > { %v3247_v10 = vpop.xlane.xlu1 %3246 }
 0xa10   : > { %5075 = vrcp.f32 %v3247_v10 }
 0xa11   : > { %5077 = vrcp.f32 %v3238_v15 }
 0xa12   : > { %5079 = vrcp.f32 %v3244_v27 }
 0xa13   : > { %v3241_v6 = vpop.xlane.xlu1 %3240 }
 0xa14   : > { %5081 = vrcp.f32 %v3241_v6 }
 0xa17   : > { %v3268_v31 = vpop.xlane.xlu0 %3267 }
 0xa1b   : > { %v3271_v33 = vpop.xlane.xlu1 %3270 }
 0xa1c   : > { %v3262_v50 = vpop.xlane.xlu0 %3261  ;;  %5083 = vrcp.f32 %v3271_v33 }
 0xa1d   : > { %v5076_v30 = vpop.eup %5075  ;;  %5085 = vrcp.f32 %v3262_v50 }
 0xa1e   : > { %v5078_v49 = vpop.eup %5077  ;;  %5087 = vrcp.f32 %v3268_v31  ;;  %v3303_v40 = vmul.f32 %v5076_v30, %v6633_v35 }
 0xa1f   : > { %v3265_v46 = vpop.xlane.xlu1 %3264  ;;  %v5080_v12 = vpop.eup %5079  ;;  %v3300_v36 = vmul.f32 %v5078_v49, %v6627_v41 }
 0xa20   : > { %5089 = vrcp.f32 %v3265_v46  ;;  %v3256_v26 = vpop.xlane.xlu0 %3255  ;;  %v3302_v7 = vmul.f32 %v5080_v12, %v6621_v0 }
 0xa21   : > { %v5082_v8 = vpop.eup %5081 }
 0xa22   : > { %v3301_v48 = vmul.f32 %v5082_v8, %v6637_v24  ;;  %v3317_v56 = vpack.c.bf16 %v3303_v40, %v3302_v7 }
 0xa23   : > { %v3447_v20 = vpop.permute.xlu1 %3446 }
 0xa24   : > { %v3250_v17 = vpop.xlane.xlu0 %3249  ;;  %v3316_v28 = vpack.c.bf16 %v3301_v48, %v3300_v36 }
 0xa26   : > { %4614 = vmatprep.mubr.msk.bf16.mxu0 %vm759_vm0, %v3316_v28 }
 0xa27   : > { %4615 = vmatmul.mubr.msk.bf16.vlgmr.msra.gmra.mxu0 %vm759_vm0, %v3317_v56 }
 0xa28   : > { %v3449_v39 = vpop.permute.xlu0 %3448 }
 0xa29   : > { %4626 = vmatprep.subr.bf16.mxu0 %v3449_v39  ;;  %v5084_v18 = vpop.eup %5083 }
 0xa2a   : > { %4627 = vmatpush3.bf16.msra.mxu0 %v3449_v39  ;;  %v5086_v52 = vpop.eup %5085  ;;  %v3311_v0 = vmul.f32 %v5084_v18, %v6646_v29  ;;  %v7023_v29 = vld [vmem:[#allocation23_spill] sm:$0xff]  ;;  %v7025_v39 = vld [vmem:[#allocation24_spill] sm:$0xff]  ;;  %v7026_v18 = vld [vmem:[#allocation22_spill] sm:$0xff] }
 0xa2b   : > { %4628 = vmatprep.subr.bf16.mxu0 %v3447_v20  ;;  %v5088_v35 = vpop.eup %5087  ;;  %v3308_v24 = vmul.f32 %v5086_v52, %v6648_v3  ;;  %v7024_v37 = vpack.c.bf16 %v7022_v47, %v7023_v29 }
 0xa2c   : > { %v3510_v41 = vpop.permute.xlu0 %3509  ;;  %v3310_v2 = vmul.f32 %v5088_v35, %v6642_v1 }
 0xa2d   : > { %v5090_v51 = vpop.eup %5089  ;;  %4634 = vmatprep.subr.bf16.mxu1 %v3510_v41 }
 0xa2e   : > { %4629 = vmatpush3.bf16.msra.mxu0 %v3447_v20  ;;  %v3309_v11 = vmul.f32 %v5090_v51, %v6654_v38  ;;  %v3321_v61 = vpack.c.bf16 %v3311_v0, %v3310_v2  ;;  %v7027_v20 = vpack.c.bf16 %v7025_v39, %v7026_v18  ;;  %v4846_v0 = vld [vmem:[#allocation8 + $0x20] sm:$0xff]   ;;  %v4849_v2 = vld [vmem:[#allocation8 + $0x8] sm:$0xff]  }
 0xa30   : > { %v6754_v58 = vpop.permute.xlu0 %3584  ;;  %v3320_v4 = vpack.c.bf16 %v3309_v11, %v3308_v24  ;;  %v4847_v24 = vld [vmem:[#allocation8 + $0x18] sm:$0xff]   ;;  %v4848_v11 = vld [vmem:[#allocation8 + $0x10] sm:$0xff]  }
 0xa32   : > { %4630 = vmatprep.mubr.msk.bf16.mxu0 %vm759_vm0, %v3320_v4  ;;  %v4850_v4 = vld [vmem:[#allocation8] sm:$0xff]  }
 0xa33   : > { %4631 = vmatmul.mubr.msk.bf16.vlgmr.msra.gmra.mxu0 %vm759_vm0, %v3321_v61 }
 0xa34   : > { %v6758_v9 = vpop.permute.xlu0 %3608 }
 0xa38   : > { %v3589_v21 = vpop.permute.xlu0 %3588 }
 0xa39   : > { %v3656_v3 = vsel %vm759_vm0, %v7024_v37, %v3589_v21 }
 0xa3c   : > { %v3613_v38 = vpop.permute.xlu0 %3612 }
 0xa3d   : > { %v6765_v1 = vsel %vm3672_vm1, %v3656_v3, %v3613_v38  ;;  %v7028_v38 = vpack.c.bf16 %v6504_v19, %v6500_v53 }
 0xa54   : > { %v3259_v13 = vpop.xlane.xlu1 %3258 }
 0xa55   : > { %5091 = vrcp.f32 %v3259_v13  ;;  %v7029_v13 = vpack.c.bf16 %v6508_v54, %v6502_v43  ;;  %v7030_v43 = vpack.c.bf16 %v6227_v25, %v6223_v63  ;;  %v7031_v54 = vld [vmem:[#allocation34_spill] sm:$0xff] }
 0xa56   : > { %5093 = vrcp.f32 %v3250_v17 }
 0xa57   : > { %5095 = vrcp.f32 %v3256_v26 }
 0xa58   : > { %v3253_v45 = vpop.xlane.xlu1 %3252 }
 0xa59   : > { %5097 = vrcp.f32 %v3253_v45 }
 0xa5c   : > { %v3280_v14 = vpop.xlane.xlu1 %3279 }
 0xa60   : > { %v3274_v22 = vpop.xlane.xlu1 %3273 }
 0xa62   : > { %v5092_v27 = vpop.eup %5091 }
 0xa63   : > { %v5094_v15 = vpop.eup %5093  ;;  %v3307_v33 = vmul.f32 %v5092_v27, %v6694_v55 }
 0xa64   : > { %v3283_v10 = vpop.xlane.xlu1 %3282  ;;  %v5096_v6 = vpop.eup %5095  ;;  %v3304_v50 = vmul.f32 %v5094_v15, %v6662_v44 }
 0xa65   : > { %5099 = vrcp.f32 %v3283_v10  ;;  %v3306_v46 = vmul.f32 %v5096_v6, %v6656_v60 }
 0xa66   : > { %v5098_v31 = vpop.eup %5097  ;;  %5101 = vrcp.f32 %v3274_v22 }
 0xa67   : > { %v3305_v30 = vmul.f32 %v5098_v31, %v6702_v62  ;;  %5103 = vrcp.f32 %v3280_v14  ;;  %v3319_v26 = vpack.c.bf16 %v3307_v33, %v3306_v46 }
 0xa68   : > { %v3277_v49 = vpop.xlane.xlu1 %3276 }
 0xa69   : > { %5105 = vrcp.f32 %v3277_v49  ;;  %v3318_v12 = vpack.c.bf16 %v3305_v30, %v3304_v50  ;;  %v7032_v49 = vld [vmem:[#allocation17_spill] sm:$0xff] }
 0xa6a   : > { %v7033_v46 = vpack.c.bf16 %v7031_v54, %v7032_v49  ;;  %v4136_v54 = vld [vmem:[%s6948_s4] ss:$0 sm:$0xff] }
 0xa6b   : > { %4622 = vmatprep.mubr.msk.bf16.mxu1 %vm759_vm0, %v3318_v12 }
 0xa6c   : > { %v3508_v8 = vpop.permute.xlu1 %3507  ;;  %4623 = vmatmul.mubr.msk.bf16.vlgmr.msra.gmra.mxu1 %vm759_vm0, %v3319_v26  ;;  %v7034_v26 = vpack.c.bf16 %v6540_v42, %v6528_v5 }
 0xa6d   : > { %4635 = vmatpush3.bf16.msra.mxu1 %v3510_v41 }
 0xa6e   : > { %4636 = vmatprep.subr.bf16.mxu1 %v3508_v8 }
 0xa70   : > { %v6773_v55 = vpop.permute.xlu1 %3586 }
 0xa71   : > { %4637 = vmatpush3.bf16.msra.mxu1 %v3508_v8 }
 0xa72   : > { %v5100_v44 = vpop.eup %5099 }
 0xa73   : > { %v5102_v40 = vpop.eup %5101  ;;  %v3315_v60 = vmul.f32 %v5100_v44, %v6714_v59 }
 0xa74   : > { %v6775_v62 = vpop.permute.xlu1 %3610  ;;  %v5104_v36 = vpop.eup %5103  ;;  %v3312_v7 = vmul.f32 %v5102_v40, %v6710_v32  ;;  %v4843_v32 = vld [vmem:[#allocation8 + $0x38] sm:$0xff]   ;;  %v7035_v40 = vpack.c.bf16 %v6544_v34, %v6533_v23  ;;  %v7039_v34 = vld [vmem:[#allocation20_spill] sm:$0xff] }
 0xa75   : > { %v3314_v56 = vmul.f32 %v5104_v36, %v6706_v57  ;;  %4642 = vmatprep.subr.bf16.mxu0 %v4843_v32  ;;  %v4845_v57 = vld [vmem:[#allocation8 + $0x28] sm:$0xff]  }
 0xa76   : > { %v5106_v48 = vpop.eup %5105  ;;  %4643 = vmatpush3.bf16.msra.mxu0 %v4843_v32 }
 0xa77   : > { %v3313_v17 = vmul.f32 %v5106_v48, %v6718_v16  ;;  %v3323_v41 = vpack.c.bf16 %v3315_v60, %v3314_v56  ;;  %v4844_v16 = vld [vmem:[#allocation8 + $0x30] sm:$0xff]   ;;  %v3593_v48 = vpop.permute.xlu0 %3592 }
 0xa78   : > { %v3591_v28 = vpop.permute.xlu1 %3590  ;;  %4644 = vmatprep.subr.bf16.mxu0 %v4844_v16  ;;  %v7036_v60 = vld [vmem:[#allocation21_spill] sm:$0xff] }
 0xa79   : > { %v3659_v52 = vsel %vm759_vm0, %v7027_v20, %v3591_v28  ;;  %v3322_v35 = vpack.c.bf16 %v3313_v17, %v3312_v7  ;;  %v7037_v7 = vld [vmem:[#allocation19_spill] sm:$0xff]  ;;  %v7040_v28 = vld [vmem:[#allocation18_spill] sm:$0xff] }
 0xa7a   : > { %4645 = vmatpush3.bf16.msra.mxu0 %v4844_v16  ;;  %v7038_v5 = vpack.c.bf16 %v7036_v60, %v7037_v7  ;;  %v7041_v56 = vpack.c.bf16 %v7039_v34, %v7040_v28 }
 0xa7b   : > { %4638 = vmatprep.mubr.msk.bf16.mxu1 %vm759_vm0, %v3322_v35  ;;  %4646 = vmatprep.subr.bf16.mxu0 %v4845_v57 }
 0xa7c   : > { %v3615_v51 = vpop.permute.xlu1 %3614  ;;  %4639 = vmatmul.mubr.msk.bf16.vlgmr.msra.gmra.mxu1 %vm759_vm0, %v3323_v41  ;;  %v3650_v42 = vsel %vm759_vm0, %v7038_v5, %v6754_v58  ;;  %v3653_v39 = vsel %vm759_vm0, %v7041_v56, %v6773_v55 }
 0xa7d   : > { %v6788_v59 = vsel %vm3672_vm1, %v3659_v52, %v3615_v51  ;;  %v3674_v23 = vsel %vm3672_vm1, %v3650_v42, %v6758_v9  ;;  %v3676_v20 = vsel %vm3672_vm1, %v3653_v39, %v6775_v62  ;;  %v7043_v62 = vld [vmem:[#allocation30_spill] sm:$0xff] }
 0xa7e   : > { %4647 = vmatpush3.bf16.msra.mxu0 %v4845_v57  ;;  %v7042_v57 = vld [vmem:[#allocation33_spill] sm:$0xff] }
 0xa7f   : > { %4648 = vmatprep.subr.bf16.mxu0 %v4846_v0 }
 0xa80   : > { %v3595_v36 = vpop.permute.xlu1 %3594 }
 0xa82   : > { %4649 = vmatpush3.bf16.msra.mxu0 %v4846_v0  ;;  %v7044_v0 = vpack.c.bf16 %v7042_v57, %v7043_v62 }
 0xa83   : > { %4650 = vmatprep.subr.bf16.mxu0 %v4847_v24 }
 0xa86   : > { %4651 = vmatpush3.bf16.msra.mxu0 %v4847_v24  ;;  %v3662_v24 = vsel %vm759_vm0, %v7044_v0, %v3593_v48 }
 0xa87   : > { %4652 = vmatprep.subr.bf16.mxu0 %v4848_v11 }
 0xa8a   : > { %4653 = vmatpush3.bf16.msra.mxu0 %v4848_v11 }
 0xa8b   : > { %4654 = vmatprep.subr.bf16.mxu0 %v4849_v2 }
 0xa8e   : > { %4655 = vmatpush3.bf16.msra.mxu0 %v4849_v2 }
 0xa8f   : > { %4656 = vmatprep.subr.bf16.mxu0 %v4850_v4 }
 0xa92   : > { %4657 = vmatpush3.bf16.msra.mxu0 %v4850_v4 }
 0xae7   : > { %v4616_v61 = vpop.f32.mrf.mxu0 }
 0xae9   : > { %v3370_v21 = vpop.f32.mrf.mxu0 }
 0xaeb   : > { %v4617_v47 = vpop.f32.mrf.mxu0 }
 0xaec   : > { %v3569_v29 = vpack.c.bf16 %v4617_v47, %v4616_v61 }
 0xaed   : > { %v3373_v37 = vpop.f32.mrf.mxu0 }
 0xaee   : > { %v3568_v3 = vpack.c.bf16 %v3373_v37, %v3370_v21  ;;  %3634 = vrot.lane.b32.xlu1 %v3569_v29, %s5314_s1  ;;  %v7045_v21 = vld [vmem:[#allocation32_spill] sm:$0xff] }
 0xaf0   : > { %3632 = vrot.lane.b32.xlu0 %v3568_v3, %s5314_s1 }
 0xaf2   : > { %3618 = vrot.lane.b32.xlu1 %v7028_v38, %s5315_s26 }
 0xaf3   : > { %v4632_v45 = vpop.f32.mrf.mxu0 }
 0xaf4   : > { %3616 = vrot.lane.b32.xlu0 %v7029_v13, %s5315_s26 }
 0xaf5   : > { %v3492_v14 = vpop.f32.mrf.mxu0 }
 0xaf7   : > { %v4633_v15 = vpop.f32.mrf.mxu0 }
 0xaf8   : > { %v3573_v30 = vpack.c.bf16 %v4633_v15, %v4632_v45  ;;  %v7048_v45 = vld [vmem:[#allocation31_spill] sm:$0xff] }
 0xaf9   : > { %v3495_v50 = vpop.f32.mrf.mxu0 }
 0xafa   : > { %v3572_v53 = vpack.c.bf16 %v3495_v50, %v3492_v14  ;;  %v7049_v14 = vld [vmem:[#allocation27_spill] sm:$0xff] }
 0xb2c   : > { %v4624_v22 = vpop.f32.mrf.mxu1 }
 0xb2e   : > { %v3431_v27 = vpop.f32.mrf.mxu1 }
 0xb30   : > { %v4625_v10 = vpop.f32.mrf.mxu1 }
 0xb31   : > { %v3571_v6 = vpack.c.bf16 %v4625_v10, %v4624_v22  ;;  %v7050_v22 = vpack.c.bf16 %v7048_v45, %v7049_v14  ;;  %v7051_v10 = vld [vmem:[#allocation29_spill] sm:$0xff] }
 0xb32   : > { %v3434_v31 = vpop.f32.mrf.mxu1 }
 0xb33   : > { %v3570_v33 = vpack.c.bf16 %v3434_v31, %v3431_v27  ;;  %3638 = vrot.lane.b32.xlu1 %v3571_v6, %s5314_s1  ;;  %v7052_v6 = vld [vmem:[#allocation26_spill] sm:$0xff] }
 0xb34   : > { %v7053_v31 = vpack.c.bf16 %v7051_v10, %v7052_v6 }
 0xb35   : > { %3636 = vrot.lane.b32.xlu0 %v3570_v33, %s5314_s1 }
 0xb37   : > { %3642 = vrot.lane.b32.xlu1 %v3573_v30, %s5314_s1 }
 0xb39   : > { %3640 = vrot.lane.b32.xlu0 %v3572_v53, %s5314_s1 }
 0xb3b   : > { %3598 = vrot.lane.b32.xlu1 %v7030_v43, %s5316_s28 }
 0xb3c   : > { %v4640_v19 = vpop.f32.mrf.mxu1 }
 0xb3d   : > { %3596 = vrot.lane.b32.xlu0 %v7033_v46, %s5316_s28 }
 0xb3e   : > { %v3553_v12 = vpop.f32.mrf.mxu1 }
 0xb3f   : > { %3622 = vrot.lane.b32.xlu1 %v7034_v26, %s5315_s26 }
 0xb40   : > { %v4641_v8 = vpop.f32.mrf.mxu1 }
 0xb41   : > { %v3575_v44 = vpack.c.bf16 %v4641_v8, %v4640_v19  ;;  %3620 = vrot.lane.b32.xlu0 %v7035_v40, %s5315_s26 }
 0xb42   : > { %v3556_v63 = vpop.f32.mrf.mxu1 }
 0xb43   : > { %v3574_v25 = vpack.c.bf16 %v3556_v63, %v3553_v12  ;;  %3646 = vrot.lane.b32.xlu1 %v3575_v44, %s5314_s1 }
 0xb45   : > { %3644 = vrot.lane.b32.xlu0 %v3574_v25, %s5314_s1 }
 0xb60   : > { %v3635_v17 = vpop.permute.xlu1 %3634 }
 0xb61   : > { %v3694_v35 = vsel %vm3689_vm2, %v3676_v20, %v3635_v17 }
 0xb62   : > { %v3633_v18 = vpop.permute.xlu0 %3632 }
 0xb63   : > { %v3691_v52 = vsel %vm3689_vm2, %v3674_v23, %v3633_v18 }
 0xb64   : > { %4658 = vmatprep.mubr.bf16.mxu0 %v3691_v52  ;;  %v3619_v58 = vpop.permute.xlu1 %3618 }
 0xb65   : > { %4659 = vmatmul.mubr.bf16.vlgmr.msra.gmra.mxu0 %v3694_v35 }
 0xb66   : > { %v3617_v41 = vpop.permute.xlu0 %3616 }
 0xb67   : > { %v3682_v11 = vsel %vm3672_vm1, %v3662_v24, %v3617_v41 }
 0xba5   : > { %v3639_v51 = vpop.permute.xlu1 %3638 }
 0xba6   : > { %v3700_v55 = vsel %vm3689_vm2, %v6788_v59, %v3639_v51 }
 0xba7   : > { %v3637_v9 = vpop.permute.xlu0 %3636 }
 0xba8   : > { %v3697_v32 = vsel %vm3689_vm2, %v6765_v1, %v3637_v9  ;;  %v7046_v1 = vld [vmem:[#allocation28_spill] sm:$0xff] }
 0xba9   : > { %v3643_v16 = vpop.permute.xlu1 %3642  ;;  %4662 = vmatprep.mubr.bf16.mxu0 %v3697_v32  ;;  %v7047_v47 = vpack.c.bf16 %v7045_v21, %v7046_v1 }
 0xbaa   : > { %4663 = vmatmul.mubr.bf16.gmra.mxu0 %v3700_v55 }
 0xbab   : > { %v3641_v2 = vpop.permute.xlu0 %3640  ;;  %v3665_v29 = vsel %vm759_vm0, %v7047_v47, %v3595_v36 }
 0xbac   : > { %v3703_v4 = vsel %vm3689_vm2, %v3682_v11, %v3641_v2  ;;  %v3684_v59 = vsel %vm3672_vm1, %v3665_v29, %v3619_v58 }
 0xbad   : > { %v3599_v61 = vpop.permute.xlu1 %3598  ;;  %4666 = vmatprep.mubr.bf16.mxu0 %v3703_v4  ;;  %v3706_v38 = vsel %vm3689_vm2, %v3684_v59, %v3643_v16 }
 0xbae   : > { %v3671_v33 = vsel %vm759_vm0, %v7053_v31, %v3599_v61 }
 0xbaf   : > { %v3597_v37 = vpop.permute.xlu0 %3596 }
 0xbb0   : > { %v3668_v27 = vsel %vm759_vm0, %v7050_v22, %v3597_v37 }
 0xbb1   : > { %v3623_v3 = vpop.permute.xlu1 %3622 }
 0xbb2   : > { %4667 = vmatmul.mubr.bf16.gmra.mxu0 %v3706_v38  ;;  %v3688_v53 = vsel %vm3672_vm1, %v3671_v33, %v3623_v3 }
 0xbb3   : > { %v3621_v13 = vpop.permute.xlu0 %3620 }
 0xbb4   : > { %v3686_v50 = vsel %vm3672_vm1, %v3668_v27, %v3621_v13 }
 0xbb5   : > { %v3647_v15 = vpop.permute.xlu1 %3646 }
 0xbb6   : > { %v3712_v19 = vsel %vm3689_vm2, %v3688_v53, %v3647_v15 }
 0xbb7   : > { %v3645_v30 = vpop.permute.xlu0 %3644 }
 0xbb8   : > { %v3709_v43 = vsel %vm3689_vm2, %v3686_v50, %v3645_v30 }
 0xbb9   : > { %4670 = vmatprep.mubr.bf16.mxu0 %v3709_v43 }
 0xbba   : > { %4671 = vmatmul.mubr.bf16.gmra.mxu0 %v3712_v19 }
 0xc25   : > { %v4660_v49 = vpop.f32.mrf.mxu0 }
 0xc26   : > { %v3828_v46 = vadd.f32 %v4660_v49, %v4136_v54 }
 0xc27   : > { %v3819_v12 = vpop.f32.mrf.mxu0 }
 0xc28   : > { %3884 = vst [vmem:[%s6871_s10 + $0x10] sm:$0xff] %v3828_v46  ;;  %v3820_v26 = vadd.f32 %v4136_v54, %v3819_v12 }
 0xc29   : > { %v4661_v8 = vpop.f32.mrf.mxu0 }
 0xc2a   : > { %3882 = vst [vmem:[%s6871_s10] sm:$0xff] %v3820_v26  ;;  %v3831_v44 = vadd.f32 %v4661_v8, %v4136_v54 }
 0xc2b   : > { %v3822_v40 = vpop.f32.mrf.mxu0 }
 0xc2c   : > { %3885 = vst [vmem:[%s6871_s10 + $0x18] sm:$0xff] %v3831_v44  ;;  %v3823_v63 = vadd.f32 %v4136_v54, %v3822_v40 }
 0xc2e   : > { %3883 = vst [vmem:[%s6871_s10 + $0x8] sm:$0xff] %v3823_v63 }
 0xc6a   : > { %v4664_v25 = vpop.f32.mrf.mxu0 }
 0xc6b   : > { %v3844_v36 = vadd.f32 %v4664_v25, %v4136_v54 }
 0xc6c   : > { %v3835_v48 = vpop.f32.mrf.mxu0 }
 0xc6d   : > { %3888 = vst [vmem:[%s6871_s10 + $0x30] sm:$0xff] %v3844_v36  ;;  %v3836_v60 = vadd.f32 %v4136_v54, %v3835_v48 }
 0xc6e   : > { %v4665_v7 = vpop.f32.mrf.mxu0 }
 0xc6f   : > { %3886 = vst [vmem:[%s6871_s10 + $0x20] sm:$0xff] %v3836_v60  ;;  %v3847_v5 = vadd.f32 %v4665_v7, %v4136_v54 }
 0xc70   : > { %v3838_v42 = vpop.f32.mrf.mxu0 }
 0xc71   : > { %3889 = vst [vmem:[%s6871_s10 + $0x38] sm:$0xff] %v3847_v5  ;;  %v3839_v17 = vadd.f32 %v4136_v54, %v3838_v42 }
 0xc72   : > { %v4668_v23 = vpop.f32.mrf.mxu0 }
 0xc73   : > { %3887 = vst [vmem:[%s6871_s10 + $0x28] sm:$0xff] %v3839_v17  ;;  %v3860_v34 = vadd.f32 %v4668_v23, %v4136_v54 }
 0xc74   : > { %v3851_v28 = vpop.f32.mrf.mxu0 }
 0xc75   : > { %3892 = vst [vmem:[%s6871_s10 + $0x50] sm:$0xff] %v3860_v34  ;;  %v3852_v56 = vadd.f32 %v4136_v54, %v3851_v28 }
 0xc76   : > { %v4669_v39 = vpop.f32.mrf.mxu0 }
 0xc77   : > { %3890 = vst [vmem:[%s6871_s10 + $0x40] sm:$0xff] %v3852_v56  ;;  %v3863_v18 = vadd.f32 %v4669_v39, %v4136_v54 }
 0xc78   : > { %v3854_v20 = vpop.f32.mrf.mxu0 }
 0xc79   : > { %3893 = vst [vmem:[%s6871_s10 + $0x58] sm:$0xff] %v3863_v18  ;;  %v3855_v52 = vadd.f32 %v4136_v54, %v3854_v20 }
 0xc7a   : > { %v4672_v35 = vpop.f32.mrf.mxu0 }
 0xc7b   : > { %3891 = vst [vmem:[%s6871_s10 + $0x48] sm:$0xff] %v3855_v52  ;;  %v3876_v58 = vadd.f32 %v4672_v35, %v4136_v54 }
 0xc7c   : > { %v3867_v41 = vpop.f32.mrf.mxu0 }
 0xc7d   : > { %3896 = vst [vmem:[%s6871_s10 + $0x70] sm:$0xff] %v3876_v58  ;;  %v3868_v51 = vadd.f32 %v4136_v54, %v3867_v41 }
 0xc7e   : > { %v4673_v9 = vpop.f32.mrf.mxu0 }
 0xc7f   : > { %3894 = vst [vmem:[%s6871_s10 + $0x60] sm:$0xff] %v3868_v51  ;;  %v3879_v32 = vadd.f32 %v4673_v9, %v4136_v54 }
 0xc80   : > { %v3870_v16 = vpop.f32.mrf.mxu0 }
 0xc81   : > { %3897 = vst [vmem:[%s6871_s10 + $0x78] sm:$0xff] %v3879_v32  ;;  %v3871_v55 = vadd.f32 %v4136_v54, %v3870_v16 }
 0xc83   : > { %3895 = vst [vmem:[%s6871_s10 + $0x68] sm:$0xff] %v3871_v55 }
 0xc84   : > { %5226 = shalt.err (!%p5223_p2)
}
 0xc85   : > { %s5227_s9 = scalar_lea.hbm %s6892_s6, 2048  ;;  %s5231_s28 = scalar_lea.hbm %s6949_s5, 4096 }
 0xc86   : > { %p5228_p7 = scmp.ne.s32.totalorder %s6892_s6, %s5227_s9  ;;  %p5232_p13 = scmp.lt.s32.totalorder %s6892_s6, %s6949_s5 }
 0xc87   : > { %p5233_p0 = scmp.lt.s32.totalorder %s5231_s28, %s5227_s9 }
 0xc88   : > { %p5229_p9 = pnand %p5228_p7, %p7054_p4 }
 0xc89   : > { %p5234_p3 = por %p5233_p0, %p5232_p13 }
 0xc8a   : > { %p5230_p12 = pneg %p5229_p9 }
 0xc8c   : > { %p5235_p1 = pnand %p5234_p3, %p5230_p12 }
 0xc8e   : > { %5238 = shalt.err (!%p5235_p1)
}
 0xc8f   : > { %s5318_s10 = smov 128   ;;  %s5319_s14 = smov 8  }
 0xc90   : > { %4720 = dma.vmem_to_hbm [thread:$0]  (%p7054_p4), %s6894_s27, 2048, %s6892_s6, %s3899_s16, %s5318_s10, %s5318_s10, %s5319_s14  }
 0xc91 PF: > { %s3930_s24 = sand.u32 1, %s5281_s18   ;;  %p7055_p6 = scmp.ne.s32.totalorder %s6980_s29, 0 }
 0xc92   : > { %p7056_p8 = scmp.ge.s32.totalorder %s5301_s23, 2  ;;  %s3931_s8 = scalar_lea.sflag [#allocation4], %s3930_s24 }
 0xc94   : > { %p4737_p10 = pnand %p7056_p8, %p7055_p6 }
 0xc96   : > { %p4738_p5 = pneg %p4737_p10 }
 0xc98   : > { %5276 = dma.done.wait (%p4738_p5), %s3931_s8, 2048  }
 0xc99   : > { %5278 = vsyncadd (%p4738_p5), %s3931_s8, 4294965248  ;;  %s23_s23 = sadd.s32 1, %s5301_s23   ;;  %s7057_s18 = smov %s5285_s19 }
 0xc9a   : > { %p20_p11 = scmp.ge.s32.totalorder %s23_s23, 4   ;;  %s7058_s19 = smov %s5289_s20 }
 0xc9b   : > { %s7059_s20 = smov %s5471_s25  ;;  %s7060_s21 = smov %s5297_s22 }
 0xc9c   : > { %s7061_s22 = smov %s7063_s15  ;;  %22 = sbr.rel (!%p20_p11) target bundleno = 11 (0xb), region = 97 }
 0xca1   :  { %3936 = vsyncpa [#allocation3], 1 }
 0xca2   :  { %3938 = vsyncpa [#allocation3 + $0x1], 1 }
 0xca3   :  { %3939 = vsyncpa [#allocation6], 1 }
 0xca4   :  { %3940 = vsyncpa [#allocation9], 1 }
 0xca5   :  { %3941 = vsyncpa [#allocation4], 1 }
 0xca6   :  { %3943 = vsyncpa [#allocation4 + $0x1], 1 }

</bundles_post_ra>
